<compile_context>
chip_gen: v7x
topology: tpu7x:2x2x1
jax: 0.10.0
libtpu: 0.0.40
codegen_flags: <defaults>
</compile_context>

<pallas_src>
import jax
import jax.numpy as jnp
from jax.experimental import pallas as pl
from jax.experimental.pallas import tpu as pltpu

BN_EPS = 1e-5
KSIZE = 4
_LANE = 128
_VMEM_LIMIT = 32 * 1024 * 1024
_PHASES = ((0, 0), (0, 1), (1, 0), (1, 1))          # (row-phase, col-phase)


def _round_up(n, m):
    return ((n + m - 1) // m) * m


def _pick_tile(m, max_t):
    """Largest power-of-two row tile (>=16, bf16-sublane safe) dividing m, else full m."""
    t = max_t
    while t >= 16:
        if m % t == 0:
            return t
        t //= 2
    return m            # fall back to the full dim (always a legal block)


# ----------------------------- Pallas kernels ------------------------------

def _matmul_stats_kernel(a_ref, w_ref, y_ref, sum_ref, ssq_ref):
    """bf16 matmul (f32 accumulate) + per-column BN sum / sum-of-squares."""
    y = jnp.dot(a_ref[0], w_ref[0], preferred_element_type=jnp.float32)
    y_ref[0] = y.astype(y_ref.dtype)

    @pl.when(pl.program_id(1) == 0)      # new phase block -> re-init accumulators
    def _():
        sum_ref[...] = jnp.zeros_like(sum_ref)
        ssq_ref[...] = jnp.zeros_like(ssq_ref)

    sum_ref[0] += jnp.sum(y, axis=0, keepdims=True)
    ssq_ref[0] += jnp.sum(y * y, axis=0, keepdims=True)


def _matmul_tanh_kernel(a_ref, w_ref, o_ref):
    """Final conv-as-matmul (bf16 operands, f32 accumulate) fused with tanh."""
    y = jnp.dot(a_ref[0], w_ref[0], preferred_element_type=jnp.float32)
    o_ref[0] = jnp.tanh(y)


def _scale_shift_relu_kernel(y_ref, scale_ref, shift_ref, o_ref):
    """Fused BatchNorm (pre-folded scale/shift) + ReLU, bf16 output."""
    z = y_ref[...].astype(jnp.float32) * scale_ref[...] + shift_ref[...]
    o_ref[...] = jnp.maximum(z, 0.0).astype(o_ref.dtype)


# ----------------------------- Pallas wrappers -----------------------------

def _phase_matmul_stats(patches, w_mats):
    """patches: (P, M, Kd) bf16; w_mats: (P, Kd, Cop) bf16.

    Returns y (P, M, Cop) bf16 and per-column sum / sum-of-squares (Cop,) f32.
    """
    P, M, Kd = patches.shape
    Cop = w_mats.shape[-1]
    tm = _pick_tile(M, 256)
    nb = M // tm
    y, s, q = pl.pallas_call(
        _matmul_stats_kernel,
        out_shape=(jax.ShapeDtypeStruct((P, M, Cop), jnp.bfloat16),
                   jax.ShapeDtypeStruct((P, 1, Cop), jnp.float32),
                   jax.ShapeDtypeStruct((P, 1, Cop), jnp.float32)),
        grid_spec=pltpu.PrefetchScalarGridSpec(
            num_scalar_prefetch=0,
            grid=(P, nb),
            in_specs=[pl.BlockSpec((1, tm, Kd), lambda p, i: (p, i, 0)),
                      pl.BlockSpec((1, Kd, Cop), lambda p, i: (p, 0, 0))],
            out_specs=(pl.BlockSpec((1, tm, Cop), lambda p, i: (p, i, 0)),
                       pl.BlockSpec((1, 1, Cop), lambda p, i: (p, 0, 0)),
                       pl.BlockSpec((1, 1, Cop), lambda p, i: (p, 0, 0)))),
        compiler_params=pltpu.CompilerParams(
            dimension_semantics=("parallel", "arbitrary"),
            vmem_limit_bytes=_VMEM_LIMIT),
    )(patches, w_mats)
    return y, jnp.sum(s, axis=(0, 1)), jnp.sum(q, axis=(0, 1))


def _phase_matmul_tanh(patches, w_mats):
    P, M, Kd = patches.shape
    Cop = w_mats.shape[-1]
    tm = _pick_tile(M, 256)
    return pl.pallas_call(
        _matmul_tanh_kernel,
        out_shape=jax.ShapeDtypeStruct((P, M, Cop), jnp.float32),
        grid_spec=pltpu.PrefetchScalarGridSpec(
            num_scalar_prefetch=0,
            grid=(P, M // tm),
            in_specs=[pl.BlockSpec((1, tm, Kd), lambda p, i: (p, i, 0)),
                      pl.BlockSpec((1, Kd, Cop), lambda p, i: (p, 0, 0))],
            out_specs=pl.BlockSpec((1, tm, Cop), lambda p, i: (p, i, 0))),
        compiler_params=pltpu.CompilerParams(
            dimension_semantics=("parallel", "parallel"),
            vmem_limit_bytes=_VMEM_LIMIT),
    )(patches, w_mats)


def _scale_shift_relu(y, scale_row, shift_row):
    M, C = y.shape
    tm = _pick_tile(M, 1024)          # mem-bound pass: large row tiles
    return pl.pallas_call(
        _scale_shift_relu_kernel,
        out_shape=jax.ShapeDtypeStruct((M, C), jnp.bfloat16),
        grid_spec=pltpu.PrefetchScalarGridSpec(
            num_scalar_prefetch=0,
            grid=(M // tm,),
            in_specs=[pl.BlockSpec((tm, C), lambda i: (i, 0)),
                      pl.BlockSpec((1, C), lambda i: (0, 0)),
                      pl.BlockSpec((1, C), lambda i: (0, 0))],
            out_specs=pl.BlockSpec((tm, C), lambda i: (i, 0))),
        compiler_params=pltpu.CompilerParams(
            dimension_semantics=("parallel",),
            vmem_limit_bytes=_VMEM_LIMIT),
    )(y, scale_row, shift_row)


# ------------------------ sub-pixel ConvTranspose glue ----------------------

def _phase_patches(x_nhwc):
    """4-phase sub-pixel im2col: (N,H,W,Ci) -> (4, N*H*W, 4*Ci) bf16 (no dilation zeros)."""
    N, H, W, Ci = x_nhwc.shape
    xpad = jnp.pad(x_nhwc, ((0, 0), (1, 1), (1, 1), (0, 0)))
    phases = []
    for ry, rx in _PHASES:
        taps = [xpad[:, ry + dy:ry + dy + H, rx + dx:rx + dx + W, :]
                for dy in (0, 1) for dx in (0, 1)]
        p = jnp.stack(taps, axis=3)                         # (N, H, W, 4, Ci)
        phases.append(p.reshape(N * H * W, 4 * Ci))
    return jnp.stack(phases, axis=0).astype(jnp.bfloat16)


def _interleave_phases(z):
    """(4, N, H, W, C) phase outputs -> (N, 2H, 2W, C); phase order matches _PHASES."""
    _, N, H, W, C = z.shape
    row0 = jnp.stack([z[0], z[1]], axis=3)                  # col-phase along axis 3
    row1 = jnp.stack([z[2], z[3]], axis=3)
    out = jnp.stack([row0, row1], axis=2)                   # (N, H, 2, W, 2, C)
    return out.reshape(N, 2 * H, 2 * W, C)


def _bn_scale_shift(s_tot, q_tot, count, gamma, beta):
    mean = s_tot / count
    var = jnp.maximum(q_tot / count - mean * mean, 0.0)     # clamp: no rsqrt of negatives
    scale = gamma * jax.lax.rsqrt(var + BN_EPS)
    shift = beta - mean * scale
    return scale, shift


def _layer1_bn_relu(x_flat, w_mat, gamma, beta):
    """ConvT(hid->co, k4, s1, p0) on a 1x1 input == plain matmul; + BN + ReLU."""
    N = x_flat.shape[0]
    co = gamma.shape[0]
    y, s, q = _phase_matmul_stats(x_flat[None], w_mat[None])      # y: (1, N, co*16)
    s_ch = s.reshape(co, KSIZE * KSIZE).sum(axis=1)               # columns are (co, ky, kx)
    q_ch = q.reshape(co, KSIZE * KSIZE).sum(axis=1)
    scale, shift = _bn_scale_shift(s_ch, q_ch, N * KSIZE * KSIZE, gamma, beta)
    scale_col = jnp.repeat(scale, KSIZE * KSIZE).reshape(1, -1)
    shift_col = jnp.repeat(shift, KSIZE * KSIZE).reshape(1, -1)
    z = _scale_shift_relu(y[0], scale_col, shift_col)             # (N, co*16) bf16
    z = z.reshape(N, co, KSIZE, KSIZE)
    return jnp.transpose(z, (0, 2, 3, 1))                         # (N, 4, 4, co)


def _convt_s2_bn_relu(x, w_mats, gamma, beta):
    """ConvTranspose2d(k=4, s=2, p=1) + BN + ReLU via 4-phase decomposition."""
    N, H, W, _ = x.shape
    co = gamma.shape[0]
    cop = w_mats.shape[-1]
    patches = _phase_patches(x)                                   # (4, N*H*W, 4*Ci)
    y, s, q = _phase_matmul_stats(patches, w_mats)                # (4, M, cop) bf16
    gamma_p = jnp.pad(gamma, (0, cop - co))
    beta_p = jnp.pad(beta, (0, cop - co))
    scale, shift = _bn_scale_shift(s, q, 4 * N * H * W, gamma_p, beta_p)
    M = N * H * W
    z = _scale_shift_relu(y.reshape(4 * M, cop),
                          scale.reshape(1, -1), shift.reshape(1, -1))
    z = z[:, :co].reshape(4, N, H, W, co)
    return _interleave_phases(z)                                  # (N, 2H, 2W, co) bf16


def _convt_s2_tanh(x, w_mats, out_channels):
    N, H, W, _ = x.shape
    patches = _phase_patches(x)
    y = _phase_matmul_tanh(patches, w_mats)                       # (4, M, cop) f32
    z = y[:, :, :out_channels].reshape(4, N, H, W, out_channels)
    return _interleave_phases(z)


# ------------------------------- Generator ---------------------------------

def init_generator_params(key, architecture=8, hid_dim=16):
    """Deterministic DCGAN-style init (normal, std=0.02); BN gamma=1, beta=0."""
    ks = jax.random.split(key, 5)
    a = architecture

    def w(k, cin, cout):
        return 0.02 * jax.random.normal(k, (cin, cout, KSIZE, KSIZE), jnp.float32)

    return {
        "w1": w(ks[0], hid_dim, a * 8), "g1": jnp.ones((a * 8,), jnp.float32), "b1": jnp.zeros((a * 8,), jnp.float32),
        "w2": w(ks[1], a * 8, a * 4),  "g2": jnp.ones((a * 4,), jnp.float32), "b2": jnp.zeros((a * 4,), jnp.float32),
        "w3": w(ks[2], a * 4, a * 2),  "g3": jnp.ones((a * 2,), jnp.float32), "b3": jnp.zeros((a * 2,), jnp.float32),
        "w4": w(ks[3], a * 2, a),      "g4": jnp.ones((a,), jnp.float32),     "b4": jnp.zeros((a,), jnp.float32),
        "w5": w(ks[4], a, 3),
    }


def _phase_weight_mats(w_pt):
    """PyTorch ConvT weight (Ci, Co, 4, 4) -> (4, 4*Ci, Cop) bf16 phase matmul weights."""
    ci, co = w_pt.shape[0], w_pt.shape[1]
    cop = _round_up(co, _LANE)                                # lane-dense output columns
    wf = jnp.transpose(w_pt[:, :, ::-1, ::-1], (2, 3, 0, 1))  # flipped conv: (ky, kx, Ci, Co)
    mats = []
    for ry, rx in _PHASES:
        m = wf[ry::2, rx::2].reshape(4 * ci, co)              # taps (ry+2dy, rx+2dx)
        mats.append(jnp.pad(m, ((0, 0), (0, cop - co))))
    return jnp.stack(mats, axis=0).astype(jnp.bfloat16)


def prepare_generator_params(params):
    """Precompute matmul-ready (flipped / phase-split / Cout-padded / bf16) weights once."""
    w1 = params["w1"]
    hid, co1 = w1.shape[0], w1.shape[1]
    return {
        "w1": w1.reshape(hid, co1 * KSIZE * KSIZE).astype(jnp.bfloat16),
        "g1": params["g1"], "b1": params["b1"],
        "w2": _phase_weight_mats(params["w2"]), "g2": params["g2"], "b2": params["b2"],
        "w3": _phase_weight_mats(params["w3"]), "g3": params["g3"], "b3": params["b3"],
        "w4": _phase_weight_mats(params["w4"]), "g4": params["g4"], "b4": params["b4"],
        "w5": _phase_weight_mats(params["w5"]),
    }


def generator_forward(prep, x_nchw):
    N, hid = x_nchw.shape[0], x_nchw.shape[1]
    x0 = x_nchw.reshape(N, hid).astype(jnp.bfloat16)
    h = _layer1_bn_relu(x0, prep["w1"], prep["g1"], prep["b1"])        # -> (N,  4,  4, 8a)
    h = _convt_s2_bn_relu(h, prep["w2"], prep["g2"], prep["b2"])       # -> (N,  8,  8, 4a)
    h = _convt_s2_bn_relu(h, prep["w3"], prep["g3"], prep["b3"])       # -> (N, 16, 16, 2a)
    h = _convt_s2_bn_relu(h, prep["w4"], prep["g4"], prep["b4"])       # -> (N, 32, 32,  a)
    out = _convt_s2_tanh(h, prep["w5"], out_channels=3)                # -> (N, 64, 64,  3)
    return jnp.transpose(out, (0, 3, 1, 2))                            # NHWC -> NCHW


if __name__ == "__main__":
    key = jax.random.PRNGKey(0)
    kp, kx = jax.random.split(key)
    architecture, hid_dim, batch = 8, 16, 2          # small shapes (module default: 64 / 100)
    params = init_generator_params(kp, architecture, hid_dim)
    prep = prepare_generator_params(params)          # weight prep done once, outside the jitted forward
    x = jax.random.normal(kx, (batch, hid_dim, 1, 1), jnp.float32)

    out = jax.jit(generator_forward)(prep, x)
    out = jax.block_until_ready(out)
    assert out.shape == (batch, 3, 64, 64), out.shape
    assert bool(jnp.all(jnp.isfinite(out)))
    assert bool(jnp.all(jnp.abs(out) <= 1.0))        # tanh output range
    print("KERNEL_OK")
</pallas_src>

<mosaic_0001>
module attributes {stable_mosaic.version = 11 : i64} {
  func.func @_matmul_stats_kernel(%arg0: i32, %arg1: i32, %arg2: memref<1x2x16xbf16, #tpu.memory_space<vmem>>, %arg3: memref<1x16x1024xbf16, #tpu.memory_space<vmem>>, %arg4: memref<1x2x1024xbf16, #tpu.memory_space<vmem>>, %arg5: memref<1x1x1024xf32, #tpu.memory_space<vmem>>, %arg6: memref<1x1x1024xf32, #tpu.memory_space<vmem>>) attributes {dimension_semantics = [#tpu.dimension_semantics<parallel>, #tpu.dimension_semantics<arbitrary>], iteration_bounds = array<i64: 1, 1>, scalar_prefetch = 0 : i64, scratch_operands = 0 : i64, tpu.core_type = #tpu.core_type<tc>, window_params = [{transform_indices = @transform_0, window_bounds = array<i64: 1, 2, 16>}, {transform_indices = @transform_1, window_bounds = array<i64: 1, 16, 1024>}, {transform_indices = @transform_2, window_bounds = array<i64: 1, 2, 1024>}, {transform_indices = @transform_3, window_bounds = array<i64: 1, 1, 1024>}, {transform_indices = @transform_4, window_bounds = array<i64: 1, 1, 1024>}]} {
    %c0 = arith.constant 0 : index
    %c0_0 = arith.constant 0 : index
    %c0_1 = arith.constant 0 : index
    %0 = vector.load %arg2[%c0, %c0_0, %c0_1] : memref<1x2x16xbf16, #tpu.memory_space<vmem>>, vector<1x2x16xbf16>
    %1 = vector.shape_cast %0 : vector<1x2x16xbf16> to vector<2x16xbf16>
    %c0_2 = arith.constant 0 : index
    %c0_3 = arith.constant 0 : index
    %c0_4 = arith.constant 0 : index
    %2 = vector.load %arg3[%c0_2, %c0_3, %c0_4] : memref<1x16x1024xbf16, #tpu.memory_space<vmem>>, vector<1x16x1024xbf16>
    %3 = vector.shape_cast %2 : vector<1x16x1024xbf16> to vector<16x1024xbf16>
    %cst = arith.constant dense<0.000000e+00> : vector<2x1024xf32>
    %4 = tpu.matmul %1, %3, %cst {dimension_numbers = #tpu.dot_dimension_numbers<[1], [0], [0], [1], [0, 0, 1, 1], [], []>} : vector<2x16xbf16>, vector<16x1024xbf16>, vector<2x1024xf32> -> vector<2x1024xf32>
    %5 = arith.truncf %4 : vector<2x1024xf32> to vector<2x1024xbf16>
    %c0_5 = arith.constant 0 : index
    %c0_6 = arith.constant 0 : index
    %c0_7 = arith.constant 0 : index
    %6 = vector.load %arg4[%c0_5, %c0_6, %c0_7] : memref<1x2x1024xbf16, #tpu.memory_space<vmem>>, vector<1x2x1024xbf16>
    %7 = vector.shape_cast %6 : vector<1x2x1024xbf16> to vector<2x1024xbf16>
    %8 = vector.shape_cast %5 : vector<2x1024xbf16> to vector<1x2x1024xbf16>
    tpu.vector_store %arg4[%c0_5, %c0_6, %c0_7], %8 {strides = array<i32>} : memref<1x2x1024xbf16, #tpu.memory_space<vmem>>, vector<1x2x1024xbf16>,
    %c0_i32 = arith.constant 0 : i32
    %9 = arith.cmpi eq, %arg1, %c0_i32 : i32
    %10 = arith.extui %9 : i1 to i32
    %c0_i32_8 = arith.constant 0 : i32
    %11 = arith.cmpi ne, %10, %c0_i32_8 : i32
    scf.if %11 {
      %cst_23 = arith.constant 0.000000e+00 : f32
      %29 = vector.broadcast %cst_23 : f32 to vector<1x1x1024xf32>
      %c0_24 = arith.constant 0 : index
      %c0_25 = arith.constant 0 : index
      %c0_26 = arith.constant 0 : index
      %30 = vector.load %arg5[%c0_24, %c0_25, %c0_26] : memref<1x1x1024xf32, #tpu.memory_space<vmem>>, vector<1x1x1024xf32>
      tpu.vector_store %arg5[%c0_24, %c0_25, %c0_26], %29 {strides = array<i32>} : memref<1x1x1024xf32, #tpu.memory_space<vmem>>, vector<1x1x1024xf32>,
      %cst_27 = arith.constant 0.000000e+00 : f32
      %31 = vector.broadcast %cst_27 : f32 to vector<1x1x1024xf32>
      %c0_28 = arith.constant 0 : index
      %c0_29 = arith.constant 0 : index
      %c0_30 = arith.constant 0 : index
      %32 = vector.load %arg6[%c0_28, %c0_29, %c0_30] : memref<1x1x1024xf32, #tpu.memory_space<vmem>>, vector<1x1x1024xf32>
      tpu.vector_store %arg6[%c0_28, %c0_29, %c0_30], %31 {strides = array<i32>} : memref<1x1x1024xf32, #tpu.memory_space<vmem>>, vector<1x1x1024xf32>,
    } else {
    }
    %c0_9 = arith.constant 0 : index
    %c0_10 = arith.constant 0 : index
    %c0_11 = arith.constant 0 : index
    %12 = vector.load %arg5[%c0_9, %c0_10, %c0_11] : memref<1x1x1024xf32, #tpu.memory_space<vmem>>, vector<1x1x1024xf32>
    %13 = vector.shape_cast %12 : vector<1x1x1024xf32> to vector<1x1024xf32>
    %cst_12 = arith.constant dense<0.000000e+00> : vector<1024xf32>
    %14 = vector.multi_reduction <add>, %4, %cst_12 [0] : vector<2x1024xf32> to vector<1024xf32>
    %15 = vector.shape_cast %14 : vector<1024xf32> to vector<1x1024xf32>
    %16 = arith.addf %13, %15 : vector<1x1024xf32>
    %c0_13 = arith.constant 0 : index
    %c0_14 = arith.constant 0 : index
    %c0_15 = arith.constant 0 : index
    %17 = vector.load %arg5[%c0_13, %c0_14, %c0_15] : memref<1x1x1024xf32, #tpu.memory_space<vmem>>, vector<1x1x1024xf32>
    %18 = vector.shape_cast %17 : vector<1x1x1024xf32> to vector<1x1024xf32>
    %19 = vector.shape_cast %16 : vector<1x1024xf32> to vector<1x1x1024xf32>
    tpu.vector_store %arg5[%c0_13, %c0_14, %c0_15], %19 {strides = array<i32>} : memref<1x1x1024xf32, #tpu.memory_space<vmem>>, vector<1x1x1024xf32>,
    %c0_16 = arith.constant 0 : index
    %c0_17 = arith.constant 0 : index
    %c0_18 = arith.constant 0 : index
    %20 = vector.load %arg6[%c0_16, %c0_17, %c0_18] : memref<1x1x1024xf32, #tpu.memory_space<vmem>>, vector<1x1x1024xf32>
    %21 = vector.shape_cast %20 : vector<1x1x1024xf32> to vector<1x1024xf32>
    %22 = arith.mulf %4, %4 : vector<2x1024xf32>
    %cst_19 = arith.constant dense<0.000000e+00> : vector<1024xf32>
    %23 = vector.multi_reduction <add>, %22, %cst_19 [0] : vector<2x1024xf32> to vector<1024xf32>
    %24 = vector.shape_cast %23 : vector<1024xf32> to vector<1x1024xf32>
    %25 = arith.addf %21, %24 : vector<1x1024xf32>
    %c0_20 = arith.constant 0 : index
    %c0_21 = arith.constant 0 : index
    %c0_22 = arith.constant 0 : index
    %26 = vector.load %arg6[%c0_20, %c0_21, %c0_22] : memref<1x1x1024xf32, #tpu.memory_space<vmem>>, vector<1x1x1024xf32>
    %27 = vector.shape_cast %26 : vector<1x1x1024xf32> to vector<1x1024xf32>
    %28 = vector.shape_cast %25 : vector<1x1024xf32> to vector<1x1x1024xf32>
    tpu.vector_store %arg6[%c0_20, %c0_21, %c0_22], %28 {strides = array<i32>} : memref<1x1x1024xf32, #tpu.memory_space<vmem>>, vector<1x1x1024xf32>,
    return
  }
  func.func @transform_0(%arg0: i32, %arg1: i32) -> (i32, i32, i32) {
    %c0_i32 = arith.constant 0 : i32
    %c0_i32_0 = arith.constant 0 : i32
    return %arg0, %arg1, %c0_i32 : i32, i32, i32
  }
  func.func @transform_1(%arg0: i32, %arg1: i32) -> (i32, i32, i32) {
    %c0_i32 = arith.constant 0 : i32
    %c0_i32_0 = arith.constant 0 : i32
    %c0_i32_1 = arith.constant 0 : i32
    return %arg0, %c0_i32, %c0_i32_0 : i32, i32, i32
  }
  func.func @transform_2(%arg0: i32, %arg1: i32) -> (i32, i32, i32) {
    %c0_i32 = arith.constant 0 : i32
    %c0_i32_0 = arith.constant 0 : i32
    return %arg0, %arg1, %c0_i32 : i32, i32, i32
  }
  func.func @transform_3(%arg0: i32, %arg1: i32) -> (i32, i32, i32) {
    %c0_i32 = arith.constant 0 : i32
    %c0_i32_0 = arith.constant 0 : i32
    %c0_i32_1 = arith.constant 0 : i32
    return %arg0, %c0_i32, %c0_i32_0 : i32, i32, i32
  }
  func.func @transform_4(%arg0: i32, %arg1: i32) -> (i32, i32, i32) {
    %c0_i32 = arith.constant 0 : i32
    %c0_i32_0 = arith.constant 0 : i32
    %c0_i32_1 = arith.constant 0 : i32
    return %arg0, %c0_i32, %c0_i32_0 : i32, i32, i32
  }
}

module attributes {stable_mosaic.version = 11 : i64} {
  func.func @_scale_shift_relu_kernel(%arg0: i32, %arg1: memref<2x1024xbf16, #tpu.memory_space<vmem>>, %arg2: memref<1x1024xf32, #tpu.memory_space<vmem>>, %arg3: memref<1x1024xf32, #tpu.memory_space<vmem>>, %arg4: memref<2x1024xbf16, #tpu.memory_space<vmem>>) attributes {dimension_semantics = [#tpu.dimension_semantics<parallel>], iteration_bounds = array<i64: 1>, scalar_prefetch = 0 : i64, scratch_operands = 0 : i64, tpu.core_type = #tpu.core_type<tc>, window_params = [{transform_indices = @transform_0, window_bounds = array<i64: 2, 1024>}, {pipeline_mode = #tpu.pipeline_mode<synchronous>, transform_indices = @transform_1, window_bounds = array<i64: 1, 1024>}, {pipeline_mode = #tpu.pipeline_mode<synchronous>, transform_indices = @transform_2, window_bounds = array<i64: 1, 1024>}, {transform_indices = @transform_3, window_bounds = array<i64: 2, 1024>}]} {
    %c0 = arith.constant 0 : index
    %c0_0 = arith.constant 0 : index
    %0 = vector.load %arg1[%c0, %c0_0] : memref<2x1024xbf16, #tpu.memory_space<vmem>>, vector<2x1024xbf16>
    %1 = arith.extf %0 : vector<2x1024xbf16> to vector<2x1024xf32>
    %c0_1 = arith.constant 0 : index
    %c0_2 = arith.constant 0 : index
    %2 = vector.load %arg2[%c0_1, %c0_2] : memref<1x1024xf32, #tpu.memory_space<vmem>>, vector<1x1024xf32>
    %3 = vector.broadcast %2 : vector<1x1024xf32> to vector<2x1024xf32>
    %4 = arith.mulf %1, %3 : vector<2x1024xf32>
    %c0_3 = arith.constant 0 : index
    %c0_4 = arith.constant 0 : index
    %5 = vector.load %arg3[%c0_3, %c0_4] : memref<1x1024xf32, #tpu.memory_space<vmem>>, vector<1x1024xf32>
    %6 = vector.broadcast %5 : vector<1x1024xf32> to vector<2x1024xf32>
    %7 = arith.addf %4, %6 : vector<2x1024xf32>
    %cst = arith.constant 0.000000e+00 : f32
    %8 = vector.broadcast %cst : f32 to vector<2x1024xf32>
    %9 = arith.maximumf %7, %8 : vector<2x1024xf32>
    %10 = arith.truncf %9 : vector<2x1024xf32> to vector<2x1024xbf16>
    %c0_5 = arith.constant 0 : index
    %c0_6 = arith.constant 0 : index
    %11 = vector.load %arg4[%c0_5, %c0_6] : memref<2x1024xbf16, #tpu.memory_space<vmem>>, vector<2x1024xbf16>
    tpu.vector_store %arg4[%c0_5, %c0_6], %10 {strides = array<i32>} : memref<2x1024xbf16, #tpu.memory_space<vmem>>, vector<2x1024xbf16>,
    return
  }
  func.func @transform_0(%arg0: i32) -> (i32, i32) {
    %c0_i32 = arith.constant 0 : i32
    %c0_i32_0 = arith.constant 0 : i32
    return %arg0, %c0_i32 : i32, i32
  }
  func.func @transform_1(%arg0: i32) -> (i32, i32) {
    %c0_i32 = arith.constant 0 : i32
    %c0_i32_0 = arith.constant 0 : i32
    %c0_i32_1 = arith.constant 0 : i32
    return %c0_i32, %c0_i32_0 : i32, i32
  }
  func.func @transform_2(%arg0: i32) -> (i32, i32) {
    %c0_i32 = arith.constant 0 : i32
    %c0_i32_0 = arith.constant 0 : i32
    %c0_i32_1 = arith.constant 0 : i32
    return %c0_i32, %c0_i32_0 : i32, i32
  }
  func.func @transform_3(%arg0: i32) -> (i32, i32) {
    %c0_i32 = arith.constant 0 : i32
    %c0_i32_0 = arith.constant 0 : i32
    return %arg0, %c0_i32 : i32, i32
  }
}

module attributes {stable_mosaic.version = 11 : i64} {
  func.func @_matmul_stats_kernel(%arg0: i32, %arg1: i32, %arg2: memref<1x32x256xbf16, #tpu.memory_space<vmem>>, %arg3: memref<1x256x128xbf16, #tpu.memory_space<vmem>>, %arg4: memref<1x32x128xbf16, #tpu.memory_space<vmem>>, %arg5: memref<1x1x128xf32, #tpu.memory_space<vmem>>, %arg6: memref<1x1x128xf32, #tpu.memory_space<vmem>>) attributes {dimension_semantics = [#tpu.dimension_semantics<parallel>, #tpu.dimension_semantics<arbitrary>], iteration_bounds = array<i64: 4, 1>, scalar_prefetch = 0 : i64, scratch_operands = 0 : i64, tpu.core_type = #tpu.core_type<tc>, window_params = [{transform_indices = @transform_0, window_bounds = array<i64: 1, 32, 256>}, {transform_indices = @transform_1, window_bounds = array<i64: 1, 256, 128>}, {transform_indices = @transform_2, window_bounds = array<i64: 1, 32, 128>}, {transform_indices = @transform_3, window_bounds = array<i64: 1, 1, 128>}, {transform_indices = @transform_4, window_bounds = array<i64: 1, 1, 128>}]} {
    %c0 = arith.constant 0 : index
    %c0_0 = arith.constant 0 : index
    %c0_1 = arith.constant 0 : index
    %0 = vector.load %arg2[%c0, %c0_0, %c0_1] : memref<1x32x256xbf16, #tpu.memory_space<vmem>>, vector<1x32x256xbf16>
    %1 = vector.shape_cast %0 : vector<1x32x256xbf16> to vector<32x256xbf16>
    %c0_2 = arith.constant 0 : index
    %c0_3 = arith.constant 0 : index
    %c0_4 = arith.constant 0 : index
    %2 = vector.load %arg3[%c0_2, %c0_3, %c0_4] : memref<1x256x128xbf16, #tpu.memory_space<vmem>>, vector<1x256x128xbf16>
    %3 = vector.shape_cast %2 : vector<1x256x128xbf16> to vector<256x128xbf16>
    %cst = arith.constant dense<0.000000e+00> : vector<32x128xf32>
    %4 = tpu.matmul %1, %3, %cst {dimension_numbers = #tpu.dot_dimension_numbers<[1], [0], [0], [1], [0, 0, 1, 1], [], []>} : vector<32x256xbf16>, vector<256x128xbf16>, vector<32x128xf32> -> vector<32x128xf32>
    %5 = arith.truncf %4 : vector<32x128xf32> to vector<32x128xbf16>
    %c0_5 = arith.constant 0 : index
    %c0_6 = arith.constant 0 : index
    %c0_7 = arith.constant 0 : index
    %6 = vector.load %arg4[%c0_5, %c0_6, %c0_7] : memref<1x32x128xbf16, #tpu.memory_space<vmem>>, vector<1x32x128xbf16>
    %7 = vector.shape_cast %6 : vector<1x32x128xbf16> to vector<32x128xbf16>
    %8 = vector.shape_cast %5 : vector<32x128xbf16> to vector<1x32x128xbf16>
    tpu.vector_store %arg4[%c0_5, %c0_6, %c0_7], %8 {strides = array<i32>} : memref<1x32x128xbf16, #tpu.memory_space<vmem>>, vector<1x32x128xbf16>,
    %c0_i32 = arith.constant 0 : i32
    %9 = arith.cmpi eq, %arg1, %c0_i32 : i32
    %10 = arith.extui %9 : i1 to i32
    %c0_i32_8 = arith.constant 0 : i32
    %11 = arith.cmpi ne, %10, %c0_i32_8 : i32
    scf.if %11 {
      %cst_23 = arith.constant 0.000000e+00 : f32
      %29 = vector.broadcast %cst_23 : f32 to vector<1x1x128xf32>
      %c0_24 = arith.constant 0 : index
      %c0_25 = arith.constant 0 : index
      %c0_26 = arith.constant 0 : index
      %30 = vector.load %arg5[%c0_24, %c0_25, %c0_26] : memref<1x1x128xf32, #tpu.memory_space<vmem>>, vector<1x1x128xf32>
      tpu.vector_store %arg5[%c0_24, %c0_25, %c0_26], %29 {strides = array<i32>} : memref<1x1x128xf32, #tpu.memory_space<vmem>>, vector<1x1x128xf32>,
      %cst_27 = arith.constant 0.000000e+00 : f32
      %31 = vector.broadcast %cst_27 : f32 to vector<1x1x128xf32>
      %c0_28 = arith.constant 0 : index
      %c0_29 = arith.constant 0 : index
      %c0_30 = arith.constant 0 : index
      %32 = vector.load %arg6[%c0_28, %c0_29, %c0_30] : memref<1x1x128xf32, #tpu.memory_space<vmem>>, vector<1x1x128xf32>
      tpu.vector_store %arg6[%c0_28, %c0_29, %c0_30], %31 {strides = array<i32>} : memref<1x1x128xf32, #tpu.memory_space<vmem>>, vector<1x1x128xf32>,
    } else {
    }
    %c0_9 = arith.constant 0 : index
    %c0_10 = arith.constant 0 : index
    %c0_11 = arith.constant 0 : index
    %12 = vector.load %arg5[%c0_9, %c0_10, %c0_11] : memref<1x1x128xf32, #tpu.memory_space<vmem>>, vector<1x1x128xf32>
    %13 = vector.shape_cast %12 : vector<1x1x128xf32> to vector<1x128xf32>
    %cst_12 = arith.constant dense<0.000000e+00> : vector<128xf32>
    %14 = vector.multi_reduction <add>, %4, %cst_12 [0] : vector<32x128xf32> to vector<128xf32>
    %15 = vector.shape_cast %14 : vector<128xf32> to vector<1x128xf32>
    %16 = arith.addf %13, %15 : vector<1x128xf32>
    %c0_13 = arith.constant 0 : index
    %c0_14 = arith.constant 0 : index
    %c0_15 = arith.constant 0 : index
    %17 = vector.load %arg5[%c0_13, %c0_14, %c0_15] : memref<1x1x128xf32, #tpu.memory_space<vmem>>, vector<1x1x128xf32>
    %18 = vector.shape_cast %17 : vector<1x1x128xf32> to vector<1x128xf32>
    %19 = vector.shape_cast %16 : vector<1x128xf32> to vector<1x1x128xf32>
    tpu.vector_store %arg5[%c0_13, %c0_14, %c0_15], %19 {strides = array<i32>} : memref<1x1x128xf32, #tpu.memory_space<vmem>>, vector<1x1x128xf32>,
    %c0_16 = arith.constant 0 : index
    %c0_17 = arith.constant 0 : index
    %c0_18 = arith.constant 0 : index
    %20 = vector.load %arg6[%c0_16, %c0_17, %c0_18] : memref<1x1x128xf32, #tpu.memory_space<vmem>>, vector<1x1x128xf32>
    %21 = vector.shape_cast %20 : vector<1x1x128xf32> to vector<1x128xf32>
    %22 = arith.mulf %4, %4 : vector<32x128xf32>
    %cst_19 = arith.constant dense<0.000000e+00> : vector<128xf32>
    %23 = vector.multi_reduction <add>, %22, %cst_19 [0] : vector<32x128xf32> to vector<128xf32>
    %24 = vector.shape_cast %23 : vector<128xf32> to vector<1x128xf32>
    %25 = arith.addf %21, %24 : vector<1x128xf32>
    %c0_20 = arith.constant 0 : index
    %c0_21 = arith.constant 0 : index
    %c0_22 = arith.constant 0 : index
    %26 = vector.load %arg6[%c0_20, %c0_21, %c0_22] : memref<1x1x128xf32, #tpu.memory_space<vmem>>, vector<1x1x128xf32>
    %27 = vector.shape_cast %26 : vector<1x1x128xf32> to vector<1x128xf32>
    %28 = vector.shape_cast %25 : vector<1x128xf32> to vector<1x1x128xf32>
    tpu.vector_store %arg6[%c0_20, %c0_21, %c0_22], %28 {strides = array<i32>} : memref<1x1x128xf32, #tpu.memory_space<vmem>>, vector<1x1x128xf32>,
    return
  }
  func.func @transform_0(%arg0: i32, %arg1: i32) -> (i32, i32, i32) {
    %c0_i32 = arith.constant 0 : i32
    %c0_i32_0 = arith.constant 0 : i32
    return %arg0, %arg1, %c0_i32 : i32, i32, i32
  }
  func.func @transform_1(%arg0: i32, %arg1: i32) -> (i32, i32, i32) {
    %c0_i32 = arith.constant 0 : i32
    %c0_i32_0 = arith.constant 0 : i32
    %c0_i32_1 = arith.constant 0 : i32
    return %arg0, %c0_i32, %c0_i32_0 : i32, i32, i32
  }
  func.func @transform_2(%arg0: i32, %arg1: i32) -> (i32, i32, i32) {
    %c0_i32 = arith.constant 0 : i32
    %c0_i32_0 = arith.constant 0 : i32
    return %arg0, %arg1, %c0_i32 : i32, i32, i32
  }
  func.func @transform_3(%arg0: i32, %arg1: i32) -> (i32, i32, i32) {
    %c0_i32 = arith.constant 0 : i32
    %c0_i32_0 = arith.constant 0 : i32
    %c0_i32_1 = arith.constant 0 : i32
    return %arg0, %c0_i32, %c0_i32_0 : i32, i32, i32
  }
  func.func @transform_4(%arg0: i32, %arg1: i32) -> (i32, i32, i32) {
    %c0_i32 = arith.constant 0 : i32
    %c0_i32_0 = arith.constant 0 : i32
    %c0_i32_1 = arith.constant 0 : i32
    return %arg0, %c0_i32, %c0_i32_0 : i32, i32, i32
  }
}

module attributes {stable_mosaic.version = 11 : i64} {
  func.func @_scale_shift_relu_kernel(%arg0: i32, %arg1: memref<128x128xbf16, #tpu.memory_space<vmem>>, %arg2: memref<1x128xf32, #tpu.memory_space<vmem>>, %arg3: memref<1x128xf32, #tpu.memory_space<vmem>>, %arg4: memref<128x128xbf16, #tpu.memory_space<vmem>>) attributes {dimension_semantics = [#tpu.dimension_semantics<parallel>], iteration_bounds = array<i64: 1>, scalar_prefetch = 0 : i64, scratch_operands = 0 : i64, tpu.core_type = #tpu.core_type<tc>, window_params = [{transform_indices = @transform_0, window_bounds = array<i64: 128, 128>}, {pipeline_mode = #tpu.pipeline_mode<synchronous>, transform_indices = @transform_1, window_bounds = array<i64: 1, 128>}, {pipeline_mode = #tpu.pipeline_mode<synchronous>, transform_indices = @transform_2, window_bounds = array<i64: 1, 128>}, {transform_indices = @transform_3, window_bounds = array<i64: 128, 128>}]} {
    %c0 = arith.constant 0 : index
    %c0_0 = arith.constant 0 : index
    %0 = vector.load %arg1[%c0, %c0_0] : memref<128x128xbf16, #tpu.memory_space<vmem>>, vector<128x128xbf16>
    %1 = arith.extf %0 : vector<128x128xbf16> to vector<128x128xf32>
    %c0_1 = arith.constant 0 : index
    %c0_2 = arith.constant 0 : index
    %2 = vector.load %arg2[%c0_1, %c0_2] : memref<1x128xf32, #tpu.memory_space<vmem>>, vector<1x128xf32>
    %3 = vector.broadcast %2 : vector<1x128xf32> to vector<128x128xf32>
    %4 = arith.mulf %1, %3 : vector<128x128xf32>
    %c0_3 = arith.constant 0 : index
    %c0_4 = arith.constant 0 : index
    %5 = vector.load %arg3[%c0_3, %c0_4] : memref<1x128xf32, #tpu.memory_space<vmem>>, vector<1x128xf32>
    %6 = vector.broadcast %5 : vector<1x128xf32> to vector<128x128xf32>
    %7 = arith.addf %4, %6 : vector<128x128xf32>
    %cst = arith.constant 0.000000e+00 : f32
    %8 = vector.broadcast %cst : f32 to vector<128x128xf32>
    %9 = arith.maximumf %7, %8 : vector<128x128xf32>
    %10 = arith.truncf %9 : vector<128x128xf32> to vector<128x128xbf16>
    %c0_5 = arith.constant 0 : index
    %c0_6 = arith.constant 0 : index
    %11 = vector.load %arg4[%c0_5, %c0_6] : memref<128x128xbf16, #tpu.memory_space<vmem>>, vector<128x128xbf16>
    tpu.vector_store %arg4[%c0_5, %c0_6], %10 {strides = array<i32>} : memref<128x128xbf16, #tpu.memory_space<vmem>>, vector<128x128xbf16>,
    return
  }
  func.func @transform_0(%arg0: i32) -> (i32, i32) {
    %c0_i32 = arith.constant 0 : i32
    %c0_i32_0 = arith.constant 0 : i32
    return %arg0, %c0_i32 : i32, i32
  }
  func.func @transform_1(%arg0: i32) -> (i32, i32) {
    %c0_i32 = arith.constant 0 : i32
    %c0_i32_0 = arith.constant 0 : i32
    %c0_i32_1 = arith.constant 0 : i32
    return %c0_i32, %c0_i32_0 : i32, i32
  }
  func.func @transform_2(%arg0: i32) -> (i32, i32) {
    %c0_i32 = arith.constant 0 : i32
    %c0_i32_0 = arith.constant 0 : i32
    %c0_i32_1 = arith.constant 0 : i32
    return %c0_i32, %c0_i32_0 : i32, i32
  }
  func.func @transform_3(%arg0: i32) -> (i32, i32) {
    %c0_i32 = arith.constant 0 : i32
    %c0_i32_0 = arith.constant 0 : i32
    return %arg0, %c0_i32 : i32, i32
  }
}

module attributes {stable_mosaic.version = 11 : i64} {
  func.func @_matmul_stats_kernel(%arg0: i32, %arg1: i32, %arg2: memref<1x128x128xbf16, #tpu.memory_space<vmem>>, %arg3: memref<1x128x128xbf16, #tpu.memory_space<vmem>>, %arg4: memref<1x128x128xbf16, #tpu.memory_space<vmem>>, %arg5: memref<1x1x128xf32, #tpu.memory_space<vmem>>, %arg6: memref<1x1x128xf32, #tpu.memory_space<vmem>>) attributes {dimension_semantics = [#tpu.dimension_semantics<parallel>, #tpu.dimension_semantics<arbitrary>], iteration_bounds = array<i64: 4, 1>, scalar_prefetch = 0 : i64, scratch_operands = 0 : i64, tpu.core_type = #tpu.core_type<tc>, window_params = [{transform_indices = @transform_0, window_bounds = array<i64: 1, 128, 128>}, {transform_indices = @transform_1, window_bounds = array<i64: 1, 128, 128>}, {transform_indices = @transform_2, window_bounds = array<i64: 1, 128, 128>}, {transform_indices = @transform_3, window_bounds = array<i64: 1, 1, 128>}, {transform_indices = @transform_4, window_bounds = array<i64: 1, 1, 128>}]} {
    %c0 = arith.constant 0 : index
    %c0_0 = arith.constant 0 : index
    %c0_1 = arith.constant 0 : index
    %0 = vector.load %arg2[%c0, %c0_0, %c0_1] : memref<1x128x128xbf16, #tpu.memory_space<vmem>>, vector<1x128x128xbf16>
    %1 = vector.shape_cast %0 : vector<1x128x128xbf16> to vector<128x128xbf16>
    %c0_2 = arith.constant 0 : index
    %c0_3 = arith.constant 0 : index
    %c0_4 = arith.constant 0 : index
    %2 = vector.load %arg3[%c0_2, %c0_3, %c0_4] : memref<1x128x128xbf16, #tpu.memory_space<vmem>>, vector<1x128x128xbf16>
    %3 = vector.shape_cast %2 : vector<1x128x128xbf16> to vector<128x128xbf16>
    %cst = arith.constant dense<0.000000e+00> : vector<128x128xf32>
    %4 = tpu.matmul %1, %3, %cst {dimension_numbers = #tpu.dot_dimension_numbers<[1], [0], [0], [1], [0, 0, 1, 1], [], []>} : vector<128x128xbf16>, vector<128x128xbf16>, vector<128x128xf32> -> vector<128x128xf32>
    %5 = arith.truncf %4 : vector<128x128xf32> to vector<128x128xbf16>
    %c0_5 = arith.constant 0 : index
    %c0_6 = arith.constant 0 : index
    %c0_7 = arith.constant 0 : index
    %6 = vector.load %arg4[%c0_5, %c0_6, %c0_7] : memref<1x128x128xbf16, #tpu.memory_space<vmem>>, vector<1x128x128xbf16>
    %7 = vector.shape_cast %6 : vector<1x128x128xbf16> to vector<128x128xbf16>
    %8 = vector.shape_cast %5 : vector<128x128xbf16> to vector<1x128x128xbf16>
    tpu.vector_store %arg4[%c0_5, %c0_6, %c0_7], %8 {strides = array<i32>} : memref<1x128x128xbf16, #tpu.memory_space<vmem>>, vector<1x128x128xbf16>,
    %c0_i32 = arith.constant 0 : i32
    %9 = arith.cmpi eq, %arg1, %c0_i32 : i32
    %10 = arith.extui %9 : i1 to i32
    %c0_i32_8 = arith.constant 0 : i32
    %11 = arith.cmpi ne, %10, %c0_i32_8 : i32
    scf.if %11 {
      %cst_23 = arith.constant 0.000000e+00 : f32
      %29 = vector.broadcast %cst_23 : f32 to vector<1x1x128xf32>
      %c0_24 = arith.constant 0 : index
      %c0_25 = arith.constant 0 : index
      %c0_26 = arith.constant 0 : index
      %30 = vector.load %arg5[%c0_24, %c0_25, %c0_26] : memref<1x1x128xf32, #tpu.memory_space<vmem>>, vector<1x1x128xf32>
      tpu.vector_store %arg5[%c0_24, %c0_25, %c0_26], %29 {strides = array<i32>} : memref<1x1x128xf32, #tpu.memory_space<vmem>>, vector<1x1x128xf32>,
      %cst_27 = arith.constant 0.000000e+00 : f32
      %31 = vector.broadcast %cst_27 : f32 to vector<1x1x128xf32>
      %c0_28 = arith.constant 0 : index
      %c0_29 = arith.constant 0 : index
      %c0_30 = arith.constant 0 : index
      %32 = vector.load %arg6[%c0_28, %c0_29, %c0_30] : memref<1x1x128xf32, #tpu.memory_space<vmem>>, vector<1x1x128xf32>
      tpu.vector_store %arg6[%c0_28, %c0_29, %c0_30], %31 {strides = array<i32>} : memref<1x1x128xf32, #tpu.memory_space<vmem>>, vector<1x1x128xf32>,
    } else {
    }
    %c0_9 = arith.constant 0 : index
    %c0_10 = arith.constant 0 : index
    %c0_11 = arith.constant 0 : index
    %12 = vector.load %arg5[%c0_9, %c0_10, %c0_11] : memref<1x1x128xf32, #tpu.memory_space<vmem>>, vector<1x1x128xf32>
    %13 = vector.shape_cast %12 : vector<1x1x128xf32> to vector<1x128xf32>
    %cst_12 = arith.constant dense<0.000000e+00> : vector<128xf32>
    %14 = vector.multi_reduction <add>, %4, %cst_12 [0] : vector<128x128xf32> to vector<128xf32>
    %15 = vector.shape_cast %14 : vector<128xf32> to vector<1x128xf32>
    %16 = arith.addf %13, %15 : vector<1x128xf32>
    %c0_13 = arith.constant 0 : index
    %c0_14 = arith.constant 0 : index
    %c0_15 = arith.constant 0 : index
    %17 = vector.load %arg5[%c0_13, %c0_14, %c0_15] : memref<1x1x128xf32, #tpu.memory_space<vmem>>, vector<1x1x128xf32>
    %18 = vector.shape_cast %17 : vector<1x1x128xf32> to vector<1x128xf32>
    %19 = vector.shape_cast %16 : vector<1x128xf32> to vector<1x1x128xf32>
    tpu.vector_store %arg5[%c0_13, %c0_14, %c0_15], %19 {strides = array<i32>} : memref<1x1x128xf32, #tpu.memory_space<vmem>>, vector<1x1x128xf32>,
    %c0_16 = arith.constant 0 : index
    %c0_17 = arith.constant 0 : index
    %c0_18 = arith.constant 0 : index
    %20 = vector.load %arg6[%c0_16, %c0_17, %c0_18] : memref<1x1x128xf32, #tpu.memory_space<vmem>>, vector<1x1x128xf32>
    %21 = vector.shape_cast %20 : vector<1x1x128xf32> to vector<1x128xf32>
    %22 = arith.mulf %4, %4 : vector<128x128xf32>
    %cst_19 = arith.constant dense<0.000000e+00> : vector<128xf32>
    %23 = vector.multi_reduction <add>, %22, %cst_19 [0] : vector<128x128xf32> to vector<128xf32>
    %24 = vector.shape_cast %23 : vector<128xf32> to vector<1x128xf32>
    %25 = arith.addf %21, %24 : vector<1x128xf32>
    %c0_20 = arith.constant 0 : index
    %c0_21 = arith.constant 0 : index
    %c0_22 = arith.constant 0 : index
    %26 = vector.load %arg6[%c0_20, %c0_21, %c0_22] : memref<1x1x128xf32, #tpu.memory_space<vmem>>, vector<1x1x128xf32>
    %27 = vector.shape_cast %26 : vector<1x1x128xf32> to vector<1x128xf32>
    %28 = vector.shape_cast %25 : vector<1x128xf32> to vector<1x1x128xf32>
    tpu.vector_store %arg6[%c0_20, %c0_21, %c0_22], %28 {strides = array<i32>} : memref<1x1x128xf32, #tpu.memory_space<vmem>>, vector<1x1x128xf32>,
    return
  }
  func.func @transform_0(%arg0: i32, %arg1: i32) -> (i32, i32, i32) {
    %c0_i32 = arith.constant 0 : i32
    %c0_i32_0 = arith.constant 0 : i32
    return %arg0, %arg1, %c0_i32 : i32, i32, i32
  }
  func.func @transform_1(%arg0: i32, %arg1: i32) -> (i32, i32, i32) {
    %c0_i32 = arith.constant 0 : i32
    %c0_i32_0 = arith.constant 0 : i32
    %c0_i32_1 = arith.constant 0 : i32
    return %arg0, %c0_i32, %c0_i32_0 : i32, i32, i32
  }
  func.func @transform_2(%arg0: i32, %arg1: i32) -> (i32, i32, i32) {
    %c0_i32 = arith.constant 0 : i32
    %c0_i32_0 = arith.constant 0 : i32
    return %arg0, %arg1, %c0_i32 : i32, i32, i32
  }
  func.func @transform_3(%arg0: i32, %arg1: i32) -> (i32, i32, i32) {
    %c0_i32 = arith.constant 0 : i32
    %c0_i32_0 = arith.constant 0 : i32
    %c0_i32_1 = arith.constant 0 : i32
    return %arg0, %c0_i32, %c0_i32_0 : i32, i32, i32
  }
  func.func @transform_4(%arg0: i32, %arg1: i32) -> (i32, i32, i32) {
    %c0_i32 = arith.constant 0 : i32
    %c0_i32_0 = arith.constant 0 : i32
    %c0_i32_1 = arith.constant 0 : i32
    return %arg0, %c0_i32, %c0_i32_0 : i32, i32, i32
  }
}

module attributes {stable_mosaic.version = 11 : i64} {
  func.func @_scale_shift_relu_kernel(%arg0: i32, %arg1: memref<512x128xbf16, #tpu.memory_space<vmem>>, %arg2: memref<1x128xf32, #tpu.memory_space<vmem>>, %arg3: memref<1x128xf32, #tpu.memory_space<vmem>>, %arg4: memref<512x128xbf16, #tpu.memory_space<vmem>>) attributes {dimension_semantics = [#tpu.dimension_semantics<parallel>], iteration_bounds = array<i64: 1>, scalar_prefetch = 0 : i64, scratch_operands = 0 : i64, tpu.core_type = #tpu.core_type<tc>, window_params = [{transform_indices = @transform_0, window_bounds = array<i64: 512, 128>}, {pipeline_mode = #tpu.pipeline_mode<synchronous>, transform_indices = @transform_1, window_bounds = array<i64: 1, 128>}, {pipeline_mode = #tpu.pipeline_mode<synchronous>, transform_indices = @transform_2, window_bounds = array<i64: 1, 128>}, {transform_indices = @transform_3, window_bounds = array<i64: 512, 128>}]} {
    %c0 = arith.constant 0 : index
    %c0_0 = arith.constant 0 : index
    %0 = vector.load %arg1[%c0, %c0_0] : memref<512x128xbf16, #tpu.memory_space<vmem>>, vector<512x128xbf16>
    %1 = arith.extf %0 : vector<512x128xbf16> to vector<512x128xf32>
    %c0_1 = arith.constant 0 : index
    %c0_2 = arith.constant 0 : index
    %2 = vector.load %arg2[%c0_1, %c0_2] : memref<1x128xf32, #tpu.memory_space<vmem>>, vector<1x128xf32>
    %3 = vector.broadcast %2 : vector<1x128xf32> to vector<512x128xf32>
    %4 = arith.mulf %1, %3 : vector<512x128xf32>
    %c0_3 = arith.constant 0 : index
    %c0_4 = arith.constant 0 : index
    %5 = vector.load %arg3[%c0_3, %c0_4] : memref<1x128xf32, #tpu.memory_space<vmem>>, vector<1x128xf32>
    %6 = vector.broadcast %5 : vector<1x128xf32> to vector<512x128xf32>
    %7 = arith.addf %4, %6 : vector<512x128xf32>
    %cst = arith.constant 0.000000e+00 : f32
    %8 = vector.broadcast %cst : f32 to vector<512x128xf32>
    %9 = arith.maximumf %7, %8 : vector<512x128xf32>
    %10 = arith.truncf %9 : vector<512x128xf32> to vector<512x128xbf16>
    %c0_5 = arith.constant 0 : index
    %c0_6 = arith.constant 0 : index
    %11 = vector.load %arg4[%c0_5, %c0_6] : memref<512x128xbf16, #tpu.memory_space<vmem>>, vector<512x128xbf16>
    tpu.vector_store %arg4[%c0_5, %c0_6], %10 {strides = array<i32>} : memref<512x128xbf16, #tpu.memory_space<vmem>>, vector<512x128xbf16>,
    return
  }
  func.func @transform_0(%arg0: i32) -> (i32, i32) {
    %c0_i32 = arith.constant 0 : i32
    %c0_i32_0 = arith.constant 0 : i32
    return %arg0, %c0_i32 : i32, i32
  }
  func.func @transform_1(%arg0: i32) -> (i32, i32) {
    %c0_i32 = arith.constant 0 : i32
    %c0_i32_0 = arith.constant 0 : i32
    %c0_i32_1 = arith.constant 0 : i32
    return %c0_i32, %c0_i32_0 : i32, i32
  }
  func.func @transform_2(%arg0: i32) -> (i32, i32) {
    %c0_i32 = arith.constant 0 : i32
    %c0_i32_0 = arith.constant 0 : i32
    %c0_i32_1 = arith.constant 0 : i32
    return %c0_i32, %c0_i32_0 : i32, i32
  }
  func.func @transform_3(%arg0: i32) -> (i32, i32) {
    %c0_i32 = arith.constant 0 : i32
    %c0_i32_0 = arith.constant 0 : i32
    return %arg0, %c0_i32 : i32, i32
  }
}

module attributes {stable_mosaic.version = 11 : i64} {
  func.func @_matmul_stats_kernel(%arg0: i32, %arg1: i32, %arg2: memref<1x256x64xbf16, #tpu.memory_space<vmem>>, %arg3: memref<1x64x128xbf16, #tpu.memory_space<vmem>>, %arg4: memref<1x256x128xbf16, #tpu.memory_space<vmem>>, %arg5: memref<1x1x128xf32, #tpu.memory_space<vmem>>, %arg6: memref<1x1x128xf32, #tpu.memory_space<vmem>>) attributes {dimension_semantics = [#tpu.dimension_semantics<parallel>, #tpu.dimension_semantics<arbitrary>], iteration_bounds = array<i64: 4, 2>, scalar_prefetch = 0 : i64, scratch_operands = 0 : i64, tpu.core_type = #tpu.core_type<tc>, window_params = [{transform_indices = @transform_0, window_bounds = array<i64: 1, 256, 64>}, {transform_indices = @transform_1, window_bounds = array<i64: 1, 64, 128>}, {transform_indices = @transform_2, window_bounds = array<i64: 1, 256, 128>}, {transform_indices = @transform_3, window_bounds = array<i64: 1, 1, 128>}, {transform_indices = @transform_4, window_bounds = array<i64: 1, 1, 128>}]} {
    %c0 = arith.constant 0 : index
    %c0_0 = arith.constant 0 : index
    %c0_1 = arith.constant 0 : index
    %0 = vector.load %arg2[%c0, %c0_0, %c0_1] : memref<1x256x64xbf16, #tpu.memory_space<vmem>>, vector<1x256x64xbf16>
    %1 = vector.shape_cast %0 : vector<1x256x64xbf16> to vector<256x64xbf16>
    %c0_2 = arith.constant 0 : index
    %c0_3 = arith.constant 0 : index
    %c0_4 = arith.constant 0 : index
    %2 = vector.load %arg3[%c0_2, %c0_3, %c0_4] : memref<1x64x128xbf16, #tpu.memory_space<vmem>>, vector<1x64x128xbf16>
    %3 = vector.shape_cast %2 : vector<1x64x128xbf16> to vector<64x128xbf16>
    %cst = arith.constant dense<0.000000e+00> : vector<256x128xf32>
    %4 = tpu.matmul %1, %3, %cst {dimension_numbers = #tpu.dot_dimension_numbers<[1], [0], [0], [1], [0, 0, 1, 1], [], []>} : vector<256x64xbf16>, vector<64x128xbf16>, vector<256x128xf32> -> vector<256x128xf32>
    %5 = arith.truncf %4 : vector<256x128xf32> to vector<256x128xbf16>
    %c0_5 = arith.constant 0 : index
    %c0_6 = arith.constant 0 : index
    %c0_7 = arith.constant 0 : index
    %6 = vector.load %arg4[%c0_5, %c0_6, %c0_7] : memref<1x256x128xbf16, #tpu.memory_space<vmem>>, vector<1x256x128xbf16>
    %7 = vector.shape_cast %6 : vector<1x256x128xbf16> to vector<256x128xbf16>
    %8 = vector.shape_cast %5 : vector<256x128xbf16> to vector<1x256x128xbf16>
    tpu.vector_store %arg4[%c0_5, %c0_6, %c0_7], %8 {strides = array<i32>} : memref<1x256x128xbf16, #tpu.memory_space<vmem>>, vector<1x256x128xbf16>,
    %c0_i32 = arith.constant 0 : i32
    %9 = arith.cmpi eq, %arg1, %c0_i32 : i32
    %10 = arith.extui %9 : i1 to i32
    %c0_i32_8 = arith.constant 0 : i32
    %11 = arith.cmpi ne, %10, %c0_i32_8 : i32
    scf.if %11 {
      %cst_23 = arith.constant 0.000000e+00 : f32
      %29 = vector.broadcast %cst_23 : f32 to vector<1x1x128xf32>
      %c0_24 = arith.constant 0 : index
      %c0_25 = arith.constant 0 : index
      %c0_26 = arith.constant 0 : index
      %30 = vector.load %arg5[%c0_24, %c0_25, %c0_26] : memref<1x1x128xf32, #tpu.memory_space<vmem>>, vector<1x1x128xf32>
      tpu.vector_store %arg5[%c0_24, %c0_25, %c0_26], %29 {strides = array<i32>} : memref<1x1x128xf32, #tpu.memory_space<vmem>>, vector<1x1x128xf32>,
      %cst_27 = arith.constant 0.000000e+00 : f32
      %31 = vector.broadcast %cst_27 : f32 to vector<1x1x128xf32>
      %c0_28 = arith.constant 0 : index
      %c0_29 = arith.constant 0 : index
      %c0_30 = arith.constant 0 : index
      %32 = vector.load %arg6[%c0_28, %c0_29, %c0_30] : memref<1x1x128xf32, #tpu.memory_space<vmem>>, vector<1x1x128xf32>
      tpu.vector_store %arg6[%c0_28, %c0_29, %c0_30], %31 {strides = array<i32>} : memref<1x1x128xf32, #tpu.memory_space<vmem>>, vector<1x1x128xf32>,
    } else {
    }
    %c0_9 = arith.constant 0 : index
    %c0_10 = arith.constant 0 : index
    %c0_11 = arith.constant 0 : index
    %12 = vector.load %arg5[%c0_9, %c0_10, %c0_11] : memref<1x1x128xf32, #tpu.memory_space<vmem>>, vector<1x1x128xf32>
    %13 = vector.shape_cast %12 : vector<1x1x128xf32> to vector<1x128xf32>
    %cst_12 = arith.constant dense<0.000000e+00> : vector<128xf32>
    %14 = vector.multi_reduction <add>, %4, %cst_12 [0] : vector<256x128xf32> to vector<128xf32>
    %15 = vector.shape_cast %14 : vector<128xf32> to vector<1x128xf32>
    %16 = arith.addf %13, %15 : vector<1x128xf32>
    %c0_13 = arith.constant 0 : index
    %c0_14 = arith.constant 0 : index
    %c0_15 = arith.constant 0 : index
    %17 = vector.load %arg5[%c0_13, %c0_14, %c0_15] : memref<1x1x128xf32, #tpu.memory_space<vmem>>, vector<1x1x128xf32>
    %18 = vector.shape_cast %17 : vector<1x1x128xf32> to vector<1x128xf32>
    %19 = vector.shape_cast %16 : vector<1x128xf32> to vector<1x1x128xf32>
    tpu.vector_store %arg5[%c0_13, %c0_14, %c0_15], %19 {strides = array<i32>} : memref<1x1x128xf32, #tpu.memory_space<vmem>>, vector<1x1x128xf32>,
    %c0_16 = arith.constant 0 : index
    %c0_17 = arith.constant 0 : index
    %c0_18 = arith.constant 0 : index
    %20 = vector.load %arg6[%c0_16, %c0_17, %c0_18] : memref<1x1x128xf32, #tpu.memory_space<vmem>>, vector<1x1x128xf32>
    %21 = vector.shape_cast %20 : vector<1x1x128xf32> to vector<1x128xf32>
    %22 = arith.mulf %4, %4 : vector<256x128xf32>
    %cst_19 = arith.constant dense<0.000000e+00> : vector<128xf32>
    %23 = vector.multi_reduction <add>, %22, %cst_19 [0] : vector<256x128xf32> to vector<128xf32>
    %24 = vector.shape_cast %23 : vector<128xf32> to vector<1x128xf32>
    %25 = arith.addf %21, %24 : vector<1x128xf32>
    %c0_20 = arith.constant 0 : index
    %c0_21 = arith.constant 0 : index
    %c0_22 = arith.constant 0 : index
    %26 = vector.load %arg6[%c0_20, %c0_21, %c0_22] : memref<1x1x128xf32, #tpu.memory_space<vmem>>, vector<1x1x128xf32>
    %27 = vector.shape_cast %26 : vector<1x1x128xf32> to vector<1x128xf32>
    %28 = vector.shape_cast %25 : vector<1x128xf32> to vector<1x1x128xf32>
    tpu.vector_store %arg6[%c0_20, %c0_21, %c0_22], %28 {strides = array<i32>} : memref<1x1x128xf32, #tpu.memory_space<vmem>>, vector<1x1x128xf32>,
    return
  }
  func.func @transform_0(%arg0: i32, %arg1: i32) -> (i32, i32, i32) {
    %c0_i32 = arith.constant 0 : i32
    %c0_i32_0 = arith.constant 0 : i32
    return %arg0, %arg1, %c0_i32 : i32, i32, i32
  }
  func.func @transform_1(%arg0: i32, %arg1: i32) -> (i32, i32, i32) {
    %c0_i32 = arith.constant 0 : i32
    %c0_i32_0 = arith.constant 0 : i32
    %c0_i32_1 = arith.constant 0 : i32
    return %arg0, %c0_i32, %c0_i32_0 : i32, i32, i32
  }
  func.func @transform_2(%arg0: i32, %arg1: i32) -> (i32, i32, i32) {
    %c0_i32 = arith.constant 0 : i32
    %c0_i32_0 = arith.constant 0 : i32
    return %arg0, %arg1, %c0_i32 : i32, i32, i32
  }
  func.func @transform_3(%arg0: i32, %arg1: i32) -> (i32, i32, i32) {
    %c0_i32 = arith.constant 0 : i32
    %c0_i32_0 = arith.constant 0 : i32
    %c0_i32_1 = arith.constant 0 : i32
    return %arg0, %c0_i32, %c0_i32_0 : i32, i32, i32
  }
  func.func @transform_4(%arg0: i32, %arg1: i32) -> (i32, i32, i32) {
    %c0_i32 = arith.constant 0 : i32
    %c0_i32_0 = arith.constant 0 : i32
    %c0_i32_1 = arith.constant 0 : i32
    return %arg0, %c0_i32, %c0_i32_0 : i32, i32, i32
  }
}

module attributes {stable_mosaic.version = 11 : i64} {
  func.func @_scale_shift_relu_kernel(%arg0: i32, %arg1: memref<1024x128xbf16, #tpu.memory_space<vmem>>, %arg2: memref<1x128xf32, #tpu.memory_space<vmem>>, %arg3: memref<1x128xf32, #tpu.memory_space<vmem>>, %arg4: memref<1024x128xbf16, #tpu.memory_space<vmem>>) attributes {dimension_semantics = [#tpu.dimension_semantics<parallel>], iteration_bounds = array<i64: 2>, scalar_prefetch = 0 : i64, scratch_operands = 0 : i64, tpu.core_type = #tpu.core_type<tc>, window_params = [{transform_indices = @transform_0, window_bounds = array<i64: 1024, 128>}, {pipeline_mode = #tpu.pipeline_mode<synchronous>, transform_indices = @transform_1, window_bounds = array<i64: 1, 128>}, {pipeline_mode = #tpu.pipeline_mode<synchronous>, transform_indices = @transform_2, window_bounds = array<i64: 1, 128>}, {transform_indices = @transform_3, window_bounds = array<i64: 1024, 128>}]} {
    %c0 = arith.constant 0 : index
    %c0_0 = arith.constant 0 : index
    %0 = vector.load %arg1[%c0, %c0_0] : memref<1024x128xbf16, #tpu.memory_space<vmem>>, vector<1024x128xbf16>
    %1 = arith.extf %0 : vector<1024x128xbf16> to vector<1024x128xf32>
    %c0_1 = arith.constant 0 : index
    %c0_2 = arith.constant 0 : index
    %2 = vector.load %arg2[%c0_1, %c0_2] : memref<1x128xf32, #tpu.memory_space<vmem>>, vector<1x128xf32>
    %3 = vector.broadcast %2 : vector<1x128xf32> to vector<1024x128xf32>
    %4 = arith.mulf %1, %3 : vector<1024x128xf32>
    %c0_3 = arith.constant 0 : index
    %c0_4 = arith.constant 0 : index
    %5 = vector.load %arg3[%c0_3, %c0_4] : memref<1x128xf32, #tpu.memory_space<vmem>>, vector<1x128xf32>
    %6 = vector.broadcast %5 : vector<1x128xf32> to vector<1024x128xf32>
    %7 = arith.addf %4, %6 : vector<1024x128xf32>
    %cst = arith.constant 0.000000e+00 : f32
    %8 = vector.broadcast %cst : f32 to vector<1024x128xf32>
    %9 = arith.maximumf %7, %8 : vector<1024x128xf32>
    %10 = arith.truncf %9 : vector<1024x128xf32> to vector<1024x128xbf16>
    %c0_5 = arith.constant 0 : index
    %c0_6 = arith.constant 0 : index
    %11 = vector.load %arg4[%c0_5, %c0_6] : memref<1024x128xbf16, #tpu.memory_space<vmem>>, vector<1024x128xbf16>
    tpu.vector_store %arg4[%c0_5, %c0_6], %10 {strides = array<i32>} : memref<1024x128xbf16, #tpu.memory_space<vmem>>, vector<1024x128xbf16>,
    return
  }
  func.func @transform_0(%arg0: i32) -> (i32, i32) {
    %c0_i32 = arith.constant 0 : i32
    %c0_i32_0 = arith.constant 0 : i32
    return %arg0, %c0_i32 : i32, i32
  }
  func.func @transform_1(%arg0: i32) -> (i32, i32) {
    %c0_i32 = arith.constant 0 : i32
    %c0_i32_0 = arith.constant 0 : i32
    %c0_i32_1 = arith.constant 0 : i32
    return %c0_i32, %c0_i32_0 : i32, i32
  }
  func.func @transform_2(%arg0: i32) -> (i32, i32) {
    %c0_i32 = arith.constant 0 : i32
    %c0_i32_0 = arith.constant 0 : i32
    %c0_i32_1 = arith.constant 0 : i32
    return %c0_i32, %c0_i32_0 : i32, i32
  }
  func.func @transform_3(%arg0: i32) -> (i32, i32) {
    %c0_i32 = arith.constant 0 : i32
    %c0_i32_0 = arith.constant 0 : i32
    return %arg0, %c0_i32 : i32, i32
  }
}

module attributes {stable_mosaic.version = 11 : i64} {
  func.func @_matmul_tanh_kernel(%arg0: i32, %arg1: i32, %arg2: memref<1x256x32xbf16, #tpu.memory_space<vmem>>, %arg3: memref<1x32x128xbf16, #tpu.memory_space<vmem>>, %arg4: memref<1x256x128xf32, #tpu.memory_space<vmem>>) attributes {dimension_semantics = [#tpu.dimension_semantics<parallel>, #tpu.dimension_semantics<parallel>], iteration_bounds = array<i64: 4, 8>, scalar_prefetch = 0 : i64, scratch_operands = 0 : i64, tpu.core_type = #tpu.core_type<tc>, window_params = [{transform_indices = @transform_0, window_bounds = array<i64: 1, 256, 32>}, {transform_indices = @transform_1, window_bounds = array<i64: 1, 32, 128>}, {transform_indices = @transform_2, window_bounds = array<i64: 1, 256, 128>}]} {
    %c0 = arith.constant 0 : index
    %c0_0 = arith.constant 0 : index
    %c0_1 = arith.constant 0 : index
    %0 = vector.load %arg2[%c0, %c0_0, %c0_1] : memref<1x256x32xbf16, #tpu.memory_space<vmem>>, vector<1x256x32xbf16>
    %1 = vector.shape_cast %0 : vector<1x256x32xbf16> to vector<256x32xbf16>
    %c0_2 = arith.constant 0 : index
    %c0_3 = arith.constant 0 : index
    %c0_4 = arith.constant 0 : index
    %2 = vector.load %arg3[%c0_2, %c0_3, %c0_4] : memref<1x32x128xbf16, #tpu.memory_space<vmem>>, vector<1x32x128xbf16>
    %3 = vector.shape_cast %2 : vector<1x32x128xbf16> to vector<32x128xbf16>
    %cst = arith.constant dense<0.000000e+00> : vector<256x128xf32>
    %4 = tpu.matmul %1, %3, %cst {dimension_numbers = #tpu.dot_dimension_numbers<[1], [0], [0], [1], [0, 0, 1, 1], [], []>} : vector<256x32xbf16>, vector<32x128xbf16>, vector<256x128xf32> -> vector<256x128xf32>
    %5 = math.tanh %4 : vector<256x128xf32>
    %c0_5 = arith.constant 0 : index
    %c0_6 = arith.constant 0 : index
    %c0_7 = arith.constant 0 : index
    %6 = vector.load %arg4[%c0_5, %c0_6, %c0_7] : memref<1x256x128xf32, #tpu.memory_space<vmem>>, vector<1x256x128xf32>
    %7 = vector.shape_cast %6 : vector<1x256x128xf32> to vector<256x128xf32>
    %8 = vector.shape_cast %5 : vector<256x128xf32> to vector<1x256x128xf32>
    tpu.vector_store %arg4[%c0_5, %c0_6, %c0_7], %8 {strides = array<i32>} : memref<1x256x128xf32, #tpu.memory_space<vmem>>, vector<1x256x128xf32>,
    return
  }
  func.func @transform_0(%arg0: i32, %arg1: i32) -> (i32, i32, i32) {
    %c0_i32 = arith.constant 0 : i32
    %c0_i32_0 = arith.constant 0 : i32
    return %arg0, %arg1, %c0_i32 : i32, i32, i32
  }
  func.func @transform_1(%arg0: i32, %arg1: i32) -> (i32, i32, i32) {
    %c0_i32 = arith.constant 0 : i32
    %c0_i32_0 = arith.constant 0 : i32
    %c0_i32_1 = arith.constant 0 : i32
    return %arg0, %c0_i32, %c0_i32_0 : i32, i32, i32
  }
  func.func @transform_2(%arg0: i32, %arg1: i32) -> (i32, i32, i32) {
    %c0_i32 = arith.constant 0 : i32
    %c0_i32_0 = arith.constant 0 : i32
    return %arg0, %arg1, %c0_i32 : i32, i32, i32
  }
}

</mosaic_0001>

<bundles_post_ra>
// kernel: generator_forward.9
= control target key start
LH: loop header
LB: loop body
LE: loop exit
PB: predicated region body
PF: predicated region fallthrough
CT: control target
= control target key end

     0   :  { %10 = vsyncpa [#allocation3], 0  ;;  %s621_s15 = smov [#allocation2]   ;;  %s750_s0 = inlined_call_operand.vmem [shape: bf16[1,2,16], index: 0, kind: input, shape index: {}]   ;;  %s751_s1 = inlined_call_operand.hbm [shape: bf16[1,16,1024], index: 1, kind: input, shape index: {}]   ;;  %s752_s2 = inlined_call_operand.vmem [shape: bf16[1,2,1024], index: 2, kind: output, shape index: {0}]   ;;  %s753_s3 = inlined_call_operand.vmem [shape: f32[1,1,1024], index: 3, kind: output, shape index: {1}]   ;;  %s754_s4 = inlined_call_operand.vmem [shape: f32[1,1,1024], index: 4, kind: output, shape index: {2}]  }
   0x1   :  { %s18_s16 = sshll.u32 %s621_s15, 4  ;;  %s597_s19 = scalar_lea.hbm %s751_s1, 1024  ;;  %s19_s16 = int_to_ptr.vmem [resolvable:$true] %s18_s16 }
   0x2   :  { %p598_p0 = scmp.ne.s32.totalorder %s751_s1, %s597_s19  ;;  %p601_p1 = scmp.lt.u32.totalorder %s597_s19, %s751_s1 }
   0x4   :  { %p603_p2 = pnand %p601_p1, %p598_p0 }
   0x6   :  { %606 = shalt.err (!%p603_p2)
}
   0x7   :  { %s607_s24 = scalar_lea.vmem %s19_s16, 1024  ;;  %p612_p4 = scmp.lt.s32.totalorder %s19_s16, %s19_s16 }
   0x8   :  { %p608_p3 = scmp.ne.s32.totalorder %s19_s16, %s607_s24  ;;  %p613_p5 = scmp.lt.s32.totalorder %s607_s24, %s607_s24 }
   0xa   :  { %p614_p6 = por %p613_p5, %p612_p4 }
   0xc   :  { %p615_p7 = pnand %p614_p6, %p608_p3 }
   0xe   :  { %618 = shalt.err (!%p615_p7)
}
   0xf   :  { %s622_s25 = smov 512   ;;  %s623_s26 = smov 32  }
  0x10   :  { %24 = dma.hbm_to_vmem [thread:$0]  %s751_s1, 1024, %s19_s16, [#allocation3], %s622_s25, %s622_s25, %s623_s26  }
  0x11   :  { %619 = dma.done.wait [#allocation3], 1024  }
  0x12   :  { %620 = vsyncadd [#allocation3], 4294966272  ;;  %v624_v0 = vmov 0   ;;  %v30_v1 = vld [vmem:[#allocation2] sm:$0xff]  ;;  %v31_v3 = vld [vmem:[#allocation2 + $0x8] sm:$0xff]  ;;  %vm78_vm0 = vcmask 130048   ;;  %v269_v20 = vlaneseq }
  0x13   :  { %114 = vmatprep.mubr.bf16.mxu0 %v624_v0  ;;  %155 = vmatprep.mubr.bf16.mxu1 %v624_v0  ;;  %v34_v2 = vld [vmem:[#allocation2 + $0x20] sm:$0xff]  ;;  %v35_v5 = vld [vmem:[#allocation2 + $0x28] sm:$0xff]  ;;  %v32_v7 = vld [vmem:[#allocation2 + $0x10] sm:$0xff]  ;;  %v625_v18 = vmov 1966171168   ;;  %vm320_vm1 = vcmask 1041408  }
  0x14   :  { %v576_v4 = vcombine.high %v30_v1, %v34_v2  ;;  %v575_v6 = vcombine.low %v30_v1, %v34_v2  ;;  %v578_v8 = vcombine.high %v31_v3, %v35_v5  ;;  %v577_v9 = vcombine.low %v31_v3, %v35_v5  ;;  %v36_v10 = vld [vmem:[#allocation2 + $0x30] sm:$0xff]  ;;  %v33_v11 = vld [vmem:[#allocation2 + $0x18] sm:$0xff]  ;;  %v29_v15 = vld [vmem:[%s750_s0] sm:$0x1] }
  0x15   :  { %v37_v12 = vld [vmem:[#allocation2 + $0x38] sm:$0xff]  ;;  %v580_v13 = vcombine.high %v32_v7, %v36_v10  ;;  %v579_v16 = vcombine.low %v32_v7, %v36_v10  ;;  %v267_v19 = vunpack.c.l.s4 %v625_v18  ;;  %v270_v22 = vshrl.u32 %v269_v20, 7 }
  0x16   :  { %82 = vmatprep.subr.bf16.mxu0 %v576_v4  ;;  %v582_v14 = vcombine.high %v33_v11, %v37_v12  ;;  %123 = vmatprep.subr.bf16.mxu1 %v578_v8  ;;  %v581_v17 = vcombine.low %v33_v11, %v37_v12 }
  0x17   :  { %83 = vmatpush1.bf16.msra.mxu0 %v575_v6  ;;  %124 = vmatpush1.bf16.msra.mxu1 %v577_v9  ;;  %v268_v21 = vunpack.c.0.s8 %v267_v19 }
  0x18   :  { %164 = vmatprep.subr.bf16.mxu0 %v580_v13  ;;  %205 = vmatprep.subr.bf16.mxu1 %v582_v14 }
  0x19   :  { %v666_v24 = vsub.s32 %v268_v21, %v270_v22 }
  0x1a   :  { %583 = vmatmul.mubr.msk.bf16.vlgmr.msra.gmra.mrb[0].mxu0 %vm78_vm0, %v29_v15  ;;  %584 = vmatmul.mubr.msk.bf16.vlgmr.msra.gmra.mrb[0].mxu1 %vm78_vm0, %v29_v15 }
  0x1b   :  { %165 = vmatpush1.bf16.msra.mxu0 %v579_v16  ;;  %206 = vmatpush1.bf16.msra.mxu1 %v581_v17 }
  0x1c   :  { %196 = vmatprep.mubr.bf16.mxu0 %v624_v0  ;;  %237 = vmatprep.mubr.bf16.mxu1 %v624_v0 }
  0x22   :  { %585 = vmatmul.mubr.msk.bf16.vlgmr.msra.gmra.mrb[4].mxu0 %vm78_vm0, %v29_v15  ;;  %586 = vmatmul.mubr.msk.bf16.vlgmr.msra.gmra.mrb[4].mxu1 %vm78_vm0, %v29_v15 }
  0xed   :  { %v116_v23 = vpop.f32.mrb[0].mxu0  ;;  %v157_v27 = vpop.f32.mrb[0].mxu1 }
  0xee   :  { %v321_v25 = vsel %vm320_vm1, %v116_v23, 0.0  ;;  %v438_v26 = vmul.f32 %v116_v23, %v116_v23  ;;  %v118_v28 = vpop.f32.mrb[1].mxu0  ;;  %v335_v30 = vsel %vm320_vm1, %v157_v27, 0.0  ;;  %v440_v31 = vmul.f32 %v157_v27, %v157_v27  ;;  %v159_v33 = vpop.f32.mrb[1].mxu1 }
  0xef   :  { %v322_v29 = vrot.slane %v321_v25, 4  ;;  %v587_v32 = vpack.c.bf16 %v118_v28, %v116_v23  ;;  %v120_v34 = vpop.f32.mrb[2].mxu0  ;;  %v336_v36 = vrot.slane %v335_v30, 4  ;;  %v328_v37 = vsel %vm320_vm1, %v118_v28, 0.0  ;;  %v161_v39 = vpop.f32.mrb[2].mxu1 }
  0xf0   :  { %v446_v35 = vsel %vm320_vm1, %v438_v26, 0.0  ;;  %v439_v38 = vmul.f32 %v118_v28, %v118_v28  ;;  %v121_v40 = vpop.f32.mrb[3].mxu0  ;;  %v460_v43 = vsel %vm320_vm1, %v440_v31, 0.0  ;;  %v162_v45 = vpop.f32.mrb[3].mxu1  ;;  %v329_v48 = vrot.slane %v328_v37, 4 }
  0xf1   :  { %v323_v41 = vadd.f32 %v322_v29, %v321_v25  ;;  %v447_v42 = vrot.slane %v446_v35, 4  ;;  %v674_v44 = vrot.slane %v587_v32, %v666_v24  ;;  %v337_v46 = vadd.f32 %v336_v36, %v335_v30 }
  0xf2   :  { %v461_v47 = vrot.slane %v460_v43, 4  ;;  %v453_v49 = vsel %vm320_vm1, %v439_v38, 0.0  ;;  %v588_v53 = vpack.c.bf16 %v159_v33, %v157_v27  ;;  %v330_v56 = vadd.f32 %v329_v48, %v328_v37 }
  0xf3   :  { %v324_v50 = vrot.slane %v323_v41, 2  ;;  %v448_v51 = vadd.f32 %v447_v42, %v446_v35  ;;  %v454_v52 = vrot.slane %v453_v49, 4  ;;  %v338_v54 = vrot.slane %v337_v46, 2 }
  0xf4   :  { %v462_v55 = vadd.f32 %v461_v47, %v460_v43  ;;  %v342_v57 = vsel %vm320_vm1, %v159_v33, 0.0  ;;  %v679_v61 = vrot.slane %v588_v53, %v666_v24  ;;  %v331_v1 = vrot.slane %v330_v56, 2 }
  0xf5   :  { %v325_v58 = vadd.f32 %v324_v50, %v323_v41  ;;  %v449_v59 = vrot.slane %v448_v51, 2  ;;  %v455_v60 = vadd.f32 %v454_v52, %v453_v49  ;;  %v681_v62 = vpop.f32.mrb[4].mxu0  ;;  %v339_v63 = vadd.f32 %v338_v54, %v337_v46  ;;  %v683_v3 = vpop.f32.mrb[4].mxu1 }
  0xf6   :  { %v463_v0 = vrot.slane %v462_v55, 2  ;;  %v343_v2 = vrot.slane %v342_v57, 4  ;;  %v685_v4 = vpop.f32.mrb[5].mxu0  ;;  %v294_v8 = vcombine.low %v674_v44, %v679_v61  ;;  %v689_v9 = vpop.f32.mrb[5].mxu1  ;;  %v332_v12 = vadd.f32 %v331_v1, %v330_v56 }
  0xf7   :  { %v326_v5 = vrot.slane %v325_v58, 1  ;;  %v450_v6 = vadd.f32 %v449_v59, %v448_v51  ;;  %v456_v7 = vrot.slane %v455_v60, 2  ;;  %v202_v10 = vpop.f32.mrb[6].mxu0  ;;  %v340_v11 = vrot.slane %v339_v63, 1  ;;  %v243_v14 = vpop.f32.mrb[6].mxu1 }
  0xf8   :  { %v344_v13 = vadd.f32 %v343_v2, %v342_v57  ;;  %v203_v15 = vpop.f32.mrb[7].mxu0  ;;  %v244_v18 = vpop.f32.mrb[7].mxu1  ;;  %v464_v20 = vadd.f32 %v463_v0, %v462_v55  ;;  %v333_v21 = vrot.slane %v332_v12, 1  ;;  %v441_v26 = vmul.f32 %v159_v33, %v159_v33 }
  0xf9   :  { %v451_v16 = vrot.slane %v450_v6, 1  ;;  %v457_v17 = vadd.f32 %v456_v7, %v455_v60  ;;  %v327_v19 = vadd.f32 %v326_v5, %v325_v58  ;;  %v349_v27 = vsel %vm320_vm1, %v681_v62, 0.0 }
  0xfa   :  { %v345_v22 = vrot.slane %v344_v13, 2  ;;  %v341_v28 = vadd.f32 %v340_v11, %v339_v63  ;;  %v334_v29 = vadd.f32 %v333_v21, %v332_v12  ;;  %v350_v31 = vrot.slane %v349_v27, 4 }
  0xfb   :  { %v452_v23 = vadd.f32 %v451_v16, %v450_v6  ;;  %v458_v25 = vrot.slane %v457_v17, 1  ;;  %v467_v34 = vsel %vm320_vm1, %v441_v26, 0.0  ;;  %v442_v35 = vmul.f32 %v681_v62, %v681_v62 }
  0xfc   :  { %v346_v30 = vadd.f32 %v345_v22, %v344_v13  ;;  %v363_v36 = vsel %vm320_vm1, %v683_v3, 0.0  ;;  %v385_v37 = vcombine.low %v327_v19, %v334_v29  ;;  %v468_v39 = vrot.slane %v467_v34, 4 }
  0xfd   :  { %v459_v32 = vadd.f32 %v458_v25, %v457_v17  ;;  %v351_v33 = vadd.f32 %v350_v31, %v349_v27  ;;  %v474_v41 = vsel %vm320_vm1, %v442_v35, 0.0  ;;  %v364_v42 = vrot.slane %v363_v36, 4 }
  0xfe   :  { %v347_v38 = vrot.slane %v346_v30, 1  ;;  %v444_v43 = vmul.f32 %v683_v3, %v683_v3  ;;  %v469_v45 = vadd.f32 %v468_v39, %v467_v34  ;;  %v465_v47 = vrot.slane %v464_v20, 1 }
  0xff   :  { %v510_v40 = vcombine.low %v452_v23, %v459_v32  ;;  %v352_v46 = vrot.slane %v351_v33, 2  ;;  %v702_v48 = vrot.slane %v385_v37, %v666_v24  ;;  %v475_v49 = vrot.slane %v474_v41, 4 }
 0x100   :  { %v348_v44 = vadd.f32 %v347_v38, %v346_v30  ;;  %v488_v50 = vsel %vm320_vm1, %v444_v43, 0.0  ;;  %v470_v52 = vrot.slane %v469_v45, 2  ;;  %v365_v53 = vadd.f32 %v364_v42, %v363_v36 }
 0x101   :  { %v489_v54 = vrot.slane %v488_v50, 4  ;;  %v353_v55 = vadd.f32 %v352_v46, %v351_v33  ;;  %v476_v56 = vadd.f32 %v475_v49, %v474_v41  ;;  %v589_v57 = vpack.c.bf16 %v685_v4, %v681_v62 }
 0x102   :  { %v386_v51 = vcombine.low %v341_v28, %v348_v44  ;;  %v356_v58 = vsel %vm320_vm1, %v685_v4, 0.0  ;;  %v471_v60 = vadd.f32 %v470_v52, %v469_v45  ;;  %v466_v1 = vadd.f32 %v465_v47, %v464_v20 }
 0x103   :  { %v490_v61 = vadd.f32 %v489_v54, %v488_v50  ;;  %v477_v63 = vrot.slane %v476_v56, 2  ;;  %v357_v0 = vrot.slane %v356_v58, 4  ;;  %v366_v6 = vrot.slane %v365_v53, 2 }
 0x104   :  { %v710_v59 = vrot.slane %v386_v51, %v666_v24  ;;  %v472_v5 = vrot.slane %v471_v60, 1  ;;  %v302_v7 = vrot.slane %v294_v8, %v666_v24  ;;  %v354_v10 = vrot.slane %v353_v55, 1 }
 0x105   :  { %v358_v62 = vadd.f32 %v357_v0, %v356_v58  ;;  %v443_v11 = vmul.f32 %v685_v4, %v685_v4  ;;  %v491_v13 = vrot.slane %v490_v61, 2  ;;  %v286_v14 = vrot.slane %v589_v57, %v666_v24 }
 0x106   :  { %v417_v2 = vcombine.low %v702_v48, %v710_v59  ;;  %v473_v12 = vadd.f32 %v472_v5, %v471_v60  ;;  %v590_v15 = vpack.c.bf16 %v689_v9, %v683_v3  ;;  %v520_v16 = vrot.slane %v510_v40, %v666_v24 }
 0x107   :  { %v478_v17 = vadd.f32 %v477_v63, %v476_v56  ;;  %v359_v18 = vrot.slane %v358_v62, 2  ;;  %v481_v19 = vsel %vm320_vm1, %v443_v11, 0.0  ;;  %v367_v8 = vadd.f32 %v366_v6, %v365_v53 }
 0x108   :  { %v511_v20 = vcombine.low %v466_v1, %v473_v12  ;;  %v482_v21 = vrot.slane %v481_v19, 4  ;;  %v293_v22 = vrot.slane %v590_v15, %v666_v24  ;;  %v355_v23 = vadd.f32 %v354_v10, %v353_v55 }
 0x109   :  { %v360_v4 = vadd.f32 %v359_v18, %v358_v62  ;;  %v370_v25 = vsel %vm320_vm1, %v689_v9, 0.0  ;;  %v445_v26 = vmul.f32 %v689_v9, %v689_v9  ;;  %v492_v27 = vadd.f32 %v491_v13, %v490_v61 }
 0x10a   :  { %v527_v3 = vrot.slane %v511_v20, %v666_v24  ;;  %v483_v28 = vadd.f32 %v482_v21, %v481_v19  ;;  %v295_v29 = vcombine.low %v286_v14, %v293_v22  ;;  %v479_v30 = vrot.slane %v478_v17, 1 }
 0x10b   :  { %v361_v31 = vrot.slane %v360_v4, 1  ;;  %v371_v32 = vrot.slane %v370_v25, 4  ;;  %v495_v34 = vsel %vm320_vm1, %v445_v26, 0.0  ;;  %v368_v42 = vrot.slane %v367_v8, 1 }
 0x10c   :  { %v542_v35 = vcombine.low %v520_v16, %v527_v3  ;;  %v484_v36 = vrot.slane %v483_v28, 2  ;;  %v309_v37 = vrot.slane %v295_v29, %v666_v24  ;;  %v496_v38 = vrot.slane %v495_v34, 4 }
 0x10d   :  { %v362_v39 = vadd.f32 %v361_v31, %v360_v4  ;;  %v372_v33 = vadd.f32 %v371_v32, %v370_v25  ;;  %v480_v45 = vadd.f32 %v479_v30, %v478_v17  ;;  %v493_v46 = vrot.slane %v492_v27, 1 }
 0x10e   :  { %v485_v40 = vadd.f32 %v484_v36, %v483_v28  ;;  %v310_v41 = vcombine.low %v302_v7, %v309_v37  ;;  %v497_v9 = vadd.f32 %v496_v38, %v495_v34  ;;  %v369_v53 = vadd.f32 %v368_v42, %v367_v8 }
 0x10f   :  { %v387_v43 = vcombine.low %v355_v23, %v362_v39  ;;  %v373_v44 = vrot.slane %v372_v33, 2  ;;  %v494_v55 = vadd.f32 %v493_v46, %v492_v27  ;;  %v425_v62 = vrot.slane %v417_v2, %v666_v24 }
 0x110   :  { %v486_v47 = vrot.slane %v485_v40, 1  ;;  %312 = vst [vmem:[%s752_s2] sm:$0xff] %v310_v41  ;;  %v498_v49 = vrot.slane %v497_v9, 2  ;;  %v550_v12 = vrot.slane %v542_v35, %v666_v24 }
 0x111   :  { %v374_v50 = vadd.f32 %v373_v44, %v372_v33  ;;  %v409_v61 = vrot.slane %v387_v43, %v666_v24 }
 0x112   :  { %v487_v51 = vadd.f32 %v486_v47, %v485_v40  ;;  %v499_v52 = vadd.f32 %v498_v49, %v497_v9 }
 0x113   :  { %v375_v54 = vrot.slane %v374_v50, 1 }
 0x114   :  { %v512_v56 = vcombine.low %v480_v45, %v487_v51  ;;  %v500_v57 = vrot.slane %v499_v52, 1 }
 0x115   :  { %v376_v58 = vadd.f32 %v375_v54, %v374_v50 }
 0x116   :  { %v501_v60 = vadd.f32 %v500_v57, %v499_v52  ;;  %v534_v0 = vrot.slane %v512_v56, %v666_v24 }
 0x117   :  { %v388_v63 = vcombine.low %v369_v53, %v376_v58 }
 0x118   :  { %v513_v1 = vcombine.low %v494_v55, %v501_v60 }
 0x119   :  { %v416_v5 = vrot.slane %v388_v63, %v666_v24 }
 0x11a   :  { %v541_v6 = vrot.slane %v513_v1, %v666_v24 }
 0x11b   :  { %v418_v7 = vcombine.low %v409_v61, %v416_v5 }
 0x11c   :  { %v543_v10 = vcombine.low %v534_v0, %v541_v6 }
 0x11d   :  { %v432_v11 = vrot.slane %v418_v7, %v666_v24 }
 0x11e   :  { %v557_v13 = vrot.slane %v543_v10, %v666_v24 }
 0x11f   :  { %v433_v14 = vcombine.low %v425_v62, %v432_v11 }
 0x120   :  { %v558_v15 = vcombine.low %v550_v12, %v557_v13 }
 0x121   :  { %436 = vst [vmem:[%s753_s3] sm:$0xff] %v433_v14 }
 0x122   :  { %561 = vst [vmem:[%s754_s4] sm:$0xff] %v558_v15 }
 0x123   :  { %574 = vsyncpa [#allocation3], 1 }

// kernel: generator_forward.10
= control target key start
LH: loop header
LB: loop body
LE: loop exit
PB: predicated region body
PF: predicated region fallthrough
CT: control target
= control target key end

     0   :  { %v19_v0 = vlaneseq  ;;  %v284_v2 = vmov 1983009808   ;;  %v285_v53 = vmov 1966171168   ;;  %s318_s0 = inlined_call_operand.vmem [shape: bf16[2,1024], index: 0, kind: input, shape index: {}]   ;;  %s319_s1 = inlined_call_operand.vmem [shape: f32[1,1024], index: 1, kind: input, shape index: {}]   ;;  %s320_s2 = inlined_call_operand.vmem [shape: f32[1,1024], index: 2, kind: input, shape index: {}]   ;;  %s321_s3 = inlined_call_operand.vmem [shape: bf16[2,1024], index: 3, kind: output, shape index: {}]  }
   0x1   :  { %v14_v1 = vld [vmem:[%s318_s0] sm:$0xff]  ;;  %v54_v3 = vunpack.c.l.s4 %v284_v2  ;;  %v228_v54 = vunpack.c.l.s4 %v285_v53 }
   0x2   :  { %v20_v4 = vshrl.u32 %v19_v0, 7  ;;  %v15_v5 = vunpack.c.l.bf16 %v14_v1  ;;  %v16_v6 = vunpack.c.h.bf16 %v14_v1  ;;  %v17_v7 = vld [vmem:[%s319_s1] sm:$0xff] }
   0x3   :  { %v55_v8 = vunpack.c.0.s8 %v54_v3  ;;  %v89_v17 = vld [vmem:[%s320_s2] sm:$0xff]  ;;  %v229_v60 = vunpack.c.0.s8 %v228_v54 }
   0x4   :  { %v21_v9 = vsub.s32 0, %v20_v4  ;;  %v25_v10 = vsub.s32 1, %v20_v4  ;;  %v29_v11 = vsub.s32 2, %v20_v4  ;;  %v33_v12 = vsub.s32 3, %v20_v4 }
   0x5   :  { %v37_v13 = vsub.s32 4, %v20_v4  ;;  %v41_v14 = vsub.s32 5, %v20_v4  ;;  %v45_v15 = vsub.s32 6, %v20_v4  ;;  %v49_v16 = vsub.s32 7, %v20_v4 }
   0x6   :  { %v22_v18 = vrot.slane %v17_v7, %v21_v9  ;;  %v26_v19 = vrot.slane %v17_v7, %v25_v10  ;;  %v30_v20 = vrot.slane %v17_v7, %v29_v11  ;;  %v34_v21 = vrot.slane %v17_v7, %v33_v12 }
   0x7   :  { %v38_v22 = vrot.slane %v17_v7, %v37_v13  ;;  %v42_v23 = vrot.slane %v17_v7, %v41_v14  ;;  %v46_v24 = vrot.slane %v17_v7, %v45_v15  ;;  %v50_v25 = vrot.slane %v17_v7, %v49_v16 }
   0x8   :  { %v51_v26 = vcombine.low %v22_v18, %v26_v19  ;;  %v52_v27 = vcombine.low %v30_v20, %v34_v21  ;;  %v58_v28 = vsub.s32 %v55_v8, %v20_v4  ;;  %v94_v29 = vrot.slane %v89_v17, %v21_v9 }
   0x9   :  { %v68_v30 = vcombine.low %v38_v22, %v42_v23  ;;  %v69_v31 = vcombine.low %v46_v24, %v50_v25  ;;  %v98_v32 = vrot.slane %v89_v17, %v25_v10  ;;  %v102_v33 = vrot.slane %v89_v17, %v29_v11 }
   0xa   :  { %v59_v34 = vrot.slane %v51_v26, %v58_v28  ;;  %v66_v35 = vrot.slane %v52_v27, %v58_v28  ;;  %v106_v36 = vrot.slane %v89_v17, %v33_v12  ;;  %v110_v37 = vrot.slane %v89_v17, %v37_v13 }
   0xb   :  { %v76_v38 = vrot.slane %v68_v30, %v58_v28  ;;  %v83_v39 = vrot.slane %v69_v31, %v58_v28  ;;  %v114_v40 = vrot.slane %v89_v17, %v41_v14  ;;  %v118_v41 = vrot.slane %v89_v17, %v45_v15 }
   0xc   :  { %v67_v42 = vcombine.low %v59_v34, %v66_v35  ;;  %v122_v43 = vrot.slane %v89_v17, %v49_v16  ;;  %v123_v44 = vcombine.low %v94_v29, %v98_v32  ;;  %v124_v45 = vcombine.low %v102_v33, %v106_v36 }
   0xd   :  { %v84_v46 = vcombine.low %v76_v38, %v83_v39  ;;  %v140_v47 = vcombine.low %v110_v37, %v114_v40  ;;  %v232_v2 = vsub.s32 %v229_v60, %v20_v4 }
   0xe   :  { %v87_v48 = vmul.f32 %v67_v42, %v15_v5  ;;  %v131_v49 = vrot.slane %v123_v44, %v58_v28  ;;  %v138_v50 = vrot.slane %v124_v45, %v58_v28  ;;  %v141_v51 = vcombine.low %v118_v41, %v122_v43 }
   0xf   :  { %v148_v52 = vrot.slane %v140_v47, %v58_v28  ;;  %v88_v55 = vmul.f32 %v84_v46, %v16_v6 }
  0x10   :  { %v139_v56 = vcombine.low %v131_v49, %v138_v50  ;;  %v155_v57 = vrot.slane %v141_v51, %v58_v28 }
  0x12   :  { %v156_v58 = vcombine.low %v148_v52, %v155_v57  ;;  %v159_v59 = vadd.f32 %v139_v56, %v87_v48 }
  0x14   :  { %v160_v61 = vadd.f32 %v156_v58, %v88_v55  ;;  %v161_v62 = vmax.f32 %v159_v59, 0.0 }
  0x16   :  { %v162_v63 = vmax.f32 %v160_v61, 0.0  ;;  %v165_v0 = vcombine.high %v161_v62, %v161_v62  ;;  %v172_v1 = vrot.slane %v161_v62, %v58_v28 }
  0x18   :  { %v179_v3 = vrot.slane %v165_v0, %v58_v28  ;;  %v180_v5 = vcombine.high %v172_v1, %v172_v1  ;;  %v182_v7 = vcombine.high %v162_v63, %v162_v63  ;;  %v189_v8 = vrot.slane %v162_v63, %v58_v28 }
  0x1a   :  { %v181_v9 = vcombine.high %v179_v3, %v179_v3  ;;  %v196_v10 = vrot.slane %v182_v7, %v58_v28  ;;  %v197_v11 = vcombine.high %v189_v8, %v189_v8  ;;  %v278_v12 = vpack.c.bf16 %v180_v5, %v172_v1 }
  0x1c   :  { %v198_v6 = vcombine.high %v196_v10, %v196_v10  ;;  %v279_v13 = vpack.c.bf16 %v181_v9, %v179_v3  ;;  %v280_v14 = vpack.c.bf16 %v197_v11, %v189_v8  ;;  %v233_v15 = vrot.slane %v278_v12, %v232_v2 }
  0x1e   :  { %v281_v16 = vpack.c.bf16 %v198_v6, %v196_v10  ;;  %v240_v17 = vrot.slane %v279_v13, %v232_v2  ;;  %v247_v18 = vrot.slane %v280_v14, %v232_v2 }
  0x20   :  { %v254_v19 = vrot.slane %v281_v16, %v232_v2  ;;  %v255_v20 = vcombine.low %v233_v15, %v240_v17 }
  0x22   :  { %v256_v21 = vcombine.low %v247_v18, %v254_v19  ;;  %v263_v22 = vrot.slane %v255_v20, %v232_v2 }
  0x24   :  { %v270_v4 = vrot.slane %v256_v21, %v232_v2 }
  0x26   :  { %v271_v23 = vcombine.low %v263_v22, %v270_v4 }
  0x28   :  { %273 = vst [vmem:[%s321_s3] sm:$0xff] %v271_v23 }

// kernel: generator_forward.12
= control target key start
LH: loop header
LB: loop body
LE: loop exit
PB: predicated region body
PF: predicated region fallthrough
CT: control target
= control target key end

     0   :  { %s422_s0 = inlined_call_operand.vmem [shape: bf16[128,128], index: 0, kind: input, shape index: {}]   ;;  %s423_s1 = inlined_call_operand.vmem [shape: f32[1,128], index: 1, kind: input, shape index: {}]   ;;  %s424_s2 = inlined_call_operand.vmem [shape: f32[1,128], index: 2, kind: input, shape index: {}]   ;;  %s425_s3 = inlined_call_operand.vmem [shape: bf16[128,128], index: 3, kind: output, shape index: {}]  }
   0x1   :  { %v227_v0 = vld [vmem:[%s422_s0] sm:$0xff]   ;;  %v298_v4 = vld [vmem:[%s422_s0 + $0x8] sm:$0xff]   ;;  %v299_v5 = vld [vmem:[%s422_s0 + $0x10] sm:$0xff]  }
   0x2   :  { %v338_v1 = vld [vmem:[%s423_s1] ss:$0 sm:$0xff]  ;;  %v228_v2 = vunpack.c.l.bf16 %v227_v0  ;;  %v229_v3 = vunpack.c.h.bf16 %v227_v0  ;;  %v300_v6 = vld [vmem:[%s422_s0 + $0x18] sm:$0xff]   ;;  %v232_v8 = vunpack.c.l.bf16 %v298_v4  ;;  %v233_v9 = vunpack.c.h.bf16 %v298_v4  ;;  %v302_v33 = vld [vmem:[%s422_s0 + $0x28] sm:$0xff]  }
   0x3   :  { %v352_v7 = vld [vmem:[%s424_s2] ss:$0 sm:$0xff]  ;;  %v236_v10 = vunpack.c.l.bf16 %v299_v5  ;;  %v237_v11 = vunpack.c.h.bf16 %v299_v5  ;;  %v240_v14 = vunpack.c.l.bf16 %v300_v6  ;;  %v241_v15 = vunpack.c.h.bf16 %v300_v6  ;;  %v303_v38 = vld [vmem:[%s422_s0 + $0x30] sm:$0xff]   ;;  %v304_v43 = vld [vmem:[%s422_s0 + $0x38] sm:$0xff]  }
   0x4   :  { %v53_v12 = vmul.f32 %v228_v2, %v338_v1  ;;  %v54_v13 = vmul.f32 %v229_v3, %v338_v1  ;;  %v55_v16 = vmul.f32 %v232_v8, %v338_v1  ;;  %v56_v17 = vmul.f32 %v233_v9, %v338_v1  ;;  %v301_v28 = vld [vmem:[%s422_s0 + $0x20] sm:$0xff]  }
   0x5   :  { %v57_v18 = vmul.f32 %v236_v10, %v338_v1  ;;  %v58_v19 = vmul.f32 %v237_v11, %v338_v1  ;;  %v59_v22 = vmul.f32 %v240_v14, %v338_v1  ;;  %v60_v23 = vmul.f32 %v241_v15, %v338_v1 }
   0x6   :  { %v76_v20 = vadd.f32 %v352_v7, %v53_v12  ;;  %v77_v21 = vadd.f32 %v352_v7, %v54_v13  ;;  %v78_v24 = vadd.f32 %v352_v7, %v55_v16  ;;  %v79_v25 = vadd.f32 %v352_v7, %v56_v17 }
   0x7   :  { %v80_v26 = vadd.f32 %v352_v7, %v57_v18  ;;  %v81_v27 = vadd.f32 %v352_v7, %v58_v19  ;;  %v82_v31 = vadd.f32 %v352_v7, %v59_v22  ;;  %v83_v32 = vadd.f32 %v352_v7, %v60_v23 }
   0x8   :  { %v92_v29 = vmax.f32 %v76_v20, 0.0  ;;  %v93_v30 = vmax.f32 %v77_v21, 0.0  ;;  %v94_v34 = vmax.f32 %v78_v24, 0.0  ;;  %v95_v35 = vmax.f32 %v79_v25, 0.0 }
   0x9   :  { %v96_v36 = vmax.f32 %v80_v26, 0.0  ;;  %v97_v37 = vmax.f32 %v81_v27, 0.0  ;;  %v98_v40 = vmax.f32 %v82_v31, 0.0  ;;  %v99_v41 = vmax.f32 %v83_v32, 0.0 }
   0xa   :  { %v261_v39 = vpack.c.bf16 %v93_v30, %v92_v29  ;;  %v244_v42 = vunpack.c.l.bf16 %v301_v28  ;;  %v266_v44 = vpack.c.bf16 %v95_v35, %v94_v34  ;;  %v245_v46 = vunpack.c.h.bf16 %v301_v28 }
   0xb   :  { %v271_v45 = vpack.c.bf16 %v97_v37, %v96_v36  ;;  %v248_v47 = vunpack.c.l.bf16 %v302_v33  ;;  %v276_v48 = vpack.c.bf16 %v99_v41, %v98_v40  ;;  %v249_v50 = vunpack.c.h.bf16 %v302_v33 }
   0xc   :  { %262 = vst [vmem:[%s425_s3] sm:$0xff] %v261_v39   ;;  %v61_v49 = vmul.f32 %v244_v42, %v338_v1  ;;  %v252_v51 = vunpack.c.l.bf16 %v303_v38  ;;  %305 = vst [vmem:[%s425_s3 + $0x8] sm:$0xff] %v266_v44   ;;  %v62_v52 = vmul.f32 %v245_v46, %v338_v1  ;;  %v253_v54 = vunpack.c.h.bf16 %v303_v38 }
   0xd   :  { %306 = vst [vmem:[%s425_s3 + $0x10] sm:$0xff] %v271_v45   ;;  %v63_v53 = vmul.f32 %v248_v47, %v338_v1  ;;  %v256_v55 = vunpack.c.l.bf16 %v304_v43  ;;  %307 = vst [vmem:[%s425_s3 + $0x18] sm:$0xff] %v276_v48   ;;  %v64_v57 = vmul.f32 %v249_v50, %v338_v1  ;;  %v257_v59 = vunpack.c.h.bf16 %v304_v43 }
   0xe   :  { %v84_v56 = vadd.f32 %v352_v7, %v61_v49  ;;  %v65_v58 = vmul.f32 %v252_v51, %v338_v1  ;;  %v85_v60 = vadd.f32 %v352_v7, %v62_v52  ;;  %v66_v62 = vmul.f32 %v253_v54, %v338_v1 }
   0xf   :  { %v86_v61 = vadd.f32 %v352_v7, %v63_v53  ;;  %v67_v63 = vmul.f32 %v256_v55, %v338_v1  ;;  %v87_v2 = vadd.f32 %v352_v7, %v64_v57  ;;  %v68_v4 = vmul.f32 %v257_v59, %v338_v1 }
  0x10   :  { %v100_v0 = vmax.f32 %v84_v56, 0.0  ;;  %v88_v3 = vadd.f32 %v352_v7, %v65_v58  ;;  %v101_v5 = vmax.f32 %v85_v60, 0.0  ;;  %v89_v8 = vadd.f32 %v352_v7, %v66_v62 }
  0x11   :  { %v102_v6 = vmax.f32 %v86_v61, 0.0  ;;  %v90_v9 = vadd.f32 %v352_v7, %v67_v63  ;;  %v103_v10 = vmax.f32 %v87_v2, 0.0  ;;  %v91_v12 = vadd.f32 %v352_v7, %v68_v4 }
  0x12   :  { %v104_v11 = vmax.f32 %v88_v3, 0.0  ;;  %v281_v13 = vpack.c.bf16 %v101_v5, %v100_v0  ;;  %v105_v14 = vmax.f32 %v89_v8, 0.0 }
  0x13   :  { %v106_v15 = vmax.f32 %v90_v9, 0.0  ;;  %v286_v16 = vpack.c.bf16 %v103_v10, %v102_v6  ;;  %v107_v17 = vmax.f32 %v91_v12, 0.0 }
  0x14   :  { %308 = vst [vmem:[%s425_s3 + $0x20] sm:$0xff] %v281_v13   ;;  %v291_v1 = vpack.c.bf16 %v105_v14, %v104_v11 }
  0x15   :  { %309 = vst [vmem:[%s425_s3 + $0x28] sm:$0xff] %v286_v16   ;;  %v296_v18 = vpack.c.bf16 %v107_v17, %v106_v15 }
  0x16   :  { %310 = vst [vmem:[%s425_s3 + $0x30] sm:$0xff] %v291_v1  }
  0x17   :  { %311 = vst [vmem:[%s425_s3 + $0x38] sm:$0xff] %v296_v18  }

// kernel: generator_forward.11
= control target key start
LH: loop header
LB: loop body
LE: loop exit
PB: predicated region body
PF: predicated region fallthrough
CT: control target
= control target key end

     0   :  { %s881_s15 = smov 0   ;;  %s883_s16 = smov 0   ;;  %s958_s0 = inlined_call_operand.vmem [shape: bf16[4,32,256], index: 0, kind: input, shape index: {}]   ;;  %s959_s1 = inlined_call_operand.vmem [shape: bf16[4,256,128], index: 1, kind: input, shape index: {}]   ;;  %s960_s2 = inlined_call_operand.vmem [shape: bf16[4,32,128], index: 2, kind: output, shape index: {0}]   ;;  %s961_s3 = inlined_call_operand.vmem [shape: f32[4,1,128], index: 3, kind: output, shape index: {1}]   ;;  %s962_s4 = inlined_call_operand.vmem [shape: f32[4,1,128], index: 4, kind: output, shape index: {2}]  }
   0x1   :  { %s885_s17 = smov 0  }
   0x2 LB: > { %s27_s18 = sadd.s32 1, %s849_s16  ;;  %p689_p0 = scmp.ge.s32.totalorder %s853_s17, 1  ;;  %s853_s17 = sphi %s885_s17, %s15_s17   ;;  %s849_s16 = sphi %s883_s16, %s964_s16   ;;  %s845_s15 = sphi %s881_s15, %s963_s15  }
   0x3   : > { %p29_p1 = scmp.ge.s32.totalorder %s27_s18, 4  ;;  %p199_p2 = scmp.lt.s32.totalorder %s853_s17, 5 }
   0x5   : > { %s966_s18 = smov (%p29_p1, %s27_s18), 0  ;;  %p200_p3 = pnand %p689_p0, %p199_p2 }
   0x6   : > { %p246_p4 = scmp.lt.s32.totalorder (!%p200_p3), %s845_s15, 3  ;;  %v855_v20 = vmov (!%p200_p3), 0.0  }
   0x7   : > { %203 = sbr.rel (%p200_p3) target bundleno = 290 (0x122), region = 28 }
   0xe   : > { %s968_s15 = smov (!%p246_p4, %s845_s15), 3 }
   0xf   : > { %s723_s19 = sshll.u32 %s968_s15, 7  ;;  %s722_s23 = sshll.u32 %s968_s15, 5 }
  0x10   : > { %s905_s22 = scalar_lea.vmem %s959_s1, %s723_s19  ;;  %s254_s26 = scalar_lea.vmem %s958_s0, %s722_s23 }
  0x11   : > { %v809_v0 = vld [vmem:[%s905_s22 + $0x40] sm:$0xff]   ;;  %v811_v2 = vld [vmem:[%s905_s22 + $0x48] sm:$0xff]   ;;  %v813_v4 = vld [vmem:[%s905_s22 + $0x50] sm:$0xff]   ;;  %s931_s29 = scalar_lea.vmem %s961_s3, %s968_s15  ;;  %s937_s6 = scalar_lea.vmem %s962_s4, %s968_s15 }
  0x12   : > { %v810_v1 = vld [vmem:[%s905_s22] sm:$0xff]   ;;  %740 = vmatprep.subr.bf16.mxu0 %v809_v0  ;;  %768 = vmatprep.subr.bf16.mxu1 %v809_v0  ;;  %v812_v3 = vld [vmem:[%s905_s22 + $0x8] sm:$0xff]   ;;  %v814_v5 = vld [vmem:[%s905_s22 + $0x10] sm:$0xff]   ;;  %503 = vst [vmem:[%s931_s29] sm:$0x1] %v855_v20  ;;  %s724_s7 = sshll.u32 %s968_s15, 4 }
  0x13   : > { %741 = vmatpush3.bf16.msra.mxu0 %v810_v1  ;;  %776 = vmatpush3.bf16.msra.mxu1 %v810_v1  ;;  %v815_v6 = vld [vmem:[%s905_s22 + $0x58] sm:$0xff]   ;;  %v817_v8 = vld [vmem:[%s905_s22 + $0x60] sm:$0xff]   ;;  %v819_v10 = vld [vmem:[%s905_s22 + $0x68] sm:$0xff]   ;;  %504 = vst [vmem:[%s937_s6] sm:$0x1] %v855_v20  ;;  %s269_s10 = scalar_lea.vmem %s960_s2, %s724_s7 }
  0x14   : > { %742 = vmatprep.subr.bf16.mxu0 %v811_v2  ;;  %769 = vmatprep.subr.bf16.mxu1 %v811_v2  ;;  %v816_v7 = vld [vmem:[%s905_s22 + $0x18] sm:$0xff]   ;;  %v818_v9 = vld [vmem:[%s905_s22 + $0x20] sm:$0xff]   ;;  %v820_v13 = vld [vmem:[%s905_s22 + $0x28] sm:$0xff]  }
  0x15   : > { %v827_v11 = vld [vmem:[%s254_s26 + $0x4] ss:$8 sps:$4 sm:$0xff]   ;;  %v830_v12 = vld [vmem:[%s254_s26 + $0x14] ss:$8 sps:$4 sm:$0xff]   ;;  %v825_v18 = vld [vmem:[%s254_s26] ss:$8 sps:$4 sm:$0xff]  }
  0x16   : > { %v821_v14 = vld [vmem:[%s905_s22 + $0x70] sm:$0xff]   ;;  %462 = vmatprep.mubr.bf16.mxu0 %v827_v11  ;;  %470 = vmatprep.mubr.bf16.mxu1 %v830_v12  ;;  %v823_v16 = vld [vmem:[%s905_s22 + $0x78] sm:$0xff]  }
  0x17   : > { %743 = vmatpush3.bf16.msra.mxu0 %v812_v3  ;;  %777 = vmatpush3.bf16.msra.mxu1 %v812_v3  ;;  %v822_v15 = vld [vmem:[%s905_s22 + $0x30] sm:$0xff]   ;;  %v824_v17 = vld [vmem:[%s905_s22 + $0x38] sm:$0xff]  }
  0x18   : > { %744 = vmatprep.subr.bf16.mxu0 %v813_v4  ;;  %770 = vmatprep.subr.bf16.mxu1 %v813_v4  ;;  %v828_v19 = vld [vmem:[%s254_s26 + $0x10] ss:$8 sps:$4 sm:$0xff]  }
  0x19   : > { %v505_v54 = vld [vmem:[%s931_s29] sm:$0x1] }
  0x1a   : > { %v517_v57 = vld [vmem:[%s937_s6] sm:$0x1] }
  0x1b   : > { %745 = vmatpush3.bf16.msra.mxu0 %v814_v5  ;;  %778 = vmatpush3.bf16.msra.mxu1 %v814_v5 }
  0x1c   : > { %746 = vmatprep.subr.bf16.mxu0 %v815_v6  ;;  %771 = vmatprep.subr.bf16.mxu1 %v815_v6 }
  0x1f   : > { %747 = vmatpush3.bf16.msra.mxu0 %v816_v7  ;;  %779 = vmatpush3.bf16.msra.mxu1 %v816_v7 }
  0x20   : > { %748 = vmatprep.subr.bf16.mxu0 %v817_v8  ;;  %772 = vmatprep.subr.bf16.mxu1 %v817_v8 }
  0x23   : > { %749 = vmatpush3.bf16.msra.mxu0 %v818_v9  ;;  %780 = vmatpush3.bf16.msra.mxu1 %v818_v9 }
  0x24   : > { %750 = vmatprep.subr.bf16.mxu0 %v819_v10  ;;  %773 = vmatprep.subr.bf16.mxu1 %v819_v10 }
  0x27   : > { %751 = vmatpush3.bf16.msra.mxu0 %v820_v13  ;;  %781 = vmatpush3.bf16.msra.mxu1 %v820_v13 }
  0x28   : > { %752 = vmatprep.subr.bf16.mxu0 %v821_v14  ;;  %774 = vmatprep.subr.bf16.mxu1 %v821_v14 }
  0x2b   : > { %753 = vmatpush3.bf16.msra.mxu0 %v822_v15  ;;  %782 = vmatpush3.bf16.msra.mxu1 %v822_v15 }
  0x2c   : > { %754 = vmatprep.subr.bf16.mxu0 %v823_v16  ;;  %775 = vmatprep.subr.bf16.mxu1 %v823_v16 }
  0x2f   : > { %755 = vmatpush3.bf16.msra.mxu0 %v824_v17  ;;  %783 = vmatpush3.bf16.msra.mxu1 %v824_v17 }
  0x32   : > { %463 = vmatmul.mubr.bf16.vlgmr.msra.gmra.mrb[0].mxu0 %v825_v18  ;;  %471 = vmatmul.mubr.bf16.vlgmr.msra.gmra.mrb[0].mxu1 %v828_v19 }
 0x105   : > { %v756_v21 = vpop.f32.mrb[0].mxu0  ;;  %v762_v22 = vpop.f32.mrb[0].mxu1 }
 0x106   : > { %v757_v23 = vpop.f32.mrb[1].mxu0  ;;  %v763_v24 = vpop.f32.mrb[1].mxu1 }
 0x107   : > { %v758_v25 = vadd.f32 %v757_v23, %v756_v21  ;;  %v759_v26 = vpop.f32.mrb[2].mxu0  ;;  %v764_v27 = vadd.f32 %v763_v24, %v762_v22  ;;  %v765_v28 = vpop.f32.mrb[2].mxu1 }
 0x108   : > { %v760_v29 = vpop.f32.mrb[3].mxu0  ;;  %v766_v30 = vpop.f32.mrb[3].mxu1 }
 0x109   : > { %v761_v31 = vadd.f32 %v760_v29, %v759_v26  ;;  %v767_v32 = vadd.f32 %v766_v30, %v765_v28  ;;  %v518_v33 = vmul.f32 %v758_v25, %v758_v25  ;;  %v520_v34 = vmul.f32 %v764_v27, %v764_v27 }
 0x10b   : > { %v732_v35 = vpack.c.bf16 %v761_v31, %v758_v25  ;;  %v506_v36 = vadd.f32 %v761_v31, %v758_v25  ;;  %v519_v37 = vmul.f32 %v761_v31, %v761_v31  ;;  %v737_v38 = vpack.c.bf16 %v767_v32, %v764_v27 }
 0x10c   : > { %v521_v42 = vmul.f32 %v767_v32, %v767_v32 }
 0x10d   : > { %733 = vst [vmem:[%s269_s10] sm:$0xff] %v732_v35   ;;  %v522_v39 = vadd.f32 %v519_v37, %v518_v33  ;;  %739 = vst [vmem:[%s269_s10 + $0x8] sm:$0xff] %v737_v38   ;;  %v507_v40 = vadd.f32 %v764_v27, %v506_v36 }
 0x10f   : > { %v508_v41 = vadd.f32 %v767_v32, %v507_v40  ;;  %v523_v43 = vadd.f32 %v522_v39, %v520_v34 }
 0x111   : > { %v509_v44 = vrot.slane %v508_v41, 4  ;;  %v524_v45 = vadd.f32 %v523_v43, %v521_v42 }
 0x113   : > { %v510_v46 = vadd.f32 %v509_v44, %v508_v41  ;;  %v525_v47 = vrot.slane %v524_v45, 4 }
 0x115   : > { %v511_v48 = vrot.slane %v510_v46, 2  ;;  %v526_v49 = vadd.f32 %v525_v47, %v524_v45 }
 0x117   : > { %v512_v50 = vadd.f32 %v511_v48, %v510_v46  ;;  %v527_v51 = vrot.slane %v526_v49, 2 }
 0x119   : > { %v513_v52 = vrot.slane %v512_v50, 1  ;;  %v528_v53 = vadd.f32 %v527_v51, %v526_v49 }
 0x11b   : > { %v514_v55 = vadd.f32 %v513_v52, %v512_v50  ;;  %v529_v56 = vrot.slane %v528_v53, 1 }
 0x11d   : > { %v515_v58 = vadd.f32 %v514_v55, %v505_v54  ;;  %v530_v59 = vadd.f32 %v529_v56, %v528_v53 }
 0x11f   : > { %516 = vst [vmem:[%s931_s29] sm:$0x1] %v515_v58  ;;  %v531_v60 = vadd.f32 %v530_v59, %v517_v57 }
 0x121   : > { %532 = vst [vmem:[%s937_s6] sm:$0x1] %v531_v60 }
 0x122 PF: > { %s15_s17 = sadd.s32 1, %s853_s17   ;;  %s963_s15 = smov %s849_s16 }
 0x123   : > { %p12_p5 = scmp.ge.s32.totalorder %s15_s17, 6   ;;  %s964_s16 = smov %s966_s18 }
 0x125   :  { %14 = sbr.rel (!%p12_p5) target bundleno = 2 (0x2), region = 89 }

// kernel: generator_forward.13
= control target key start
LH: loop header
LB: loop body
LE: loop exit
PB: predicated region body
PF: predicated region fallthrough
CT: control target
= control target key end

     0   :  { %s1065_s15 = smov 0   ;;  %s1067_s16 = smov 0   ;;  %s1157_s0 = inlined_call_operand.vmem [shape: bf16[4,128,128], index: 0, kind: input, shape index: {}]   ;;  %s1158_s1 = inlined_call_operand.vmem [shape: bf16[4,128,128], index: 1, kind: input, shape index: {}]   ;;  %s1159_s2 = inlined_call_operand.vmem [shape: bf16[4,128,128], index: 2, kind: output, shape index: {0}]   ;;  %s1160_s3 = inlined_call_operand.vmem [shape: f32[4,1,128], index: 3, kind: output, shape index: {1}]   ;;  %s1161_s4 = inlined_call_operand.vmem [shape: f32[4,1,128], index: 4, kind: output, shape index: {2}]  }
   0x1   :  { %s1069_s17 = smov 0  }
   0x2 LB: > { %s27_s18 = sadd.s32 1, %s1033_s16  ;;  %p803_p0 = scmp.ge.s32.totalorder %s1037_s17, 1  ;;  %s1037_s17 = sphi %s1069_s17, %s15_s17   ;;  %s1033_s16 = sphi %s1067_s16, %s1163_s16   ;;  %s1029_s15 = sphi %s1065_s15, %s1162_s15  }
   0x3   : > { %p29_p1 = scmp.ge.s32.totalorder %s27_s18, 4  ;;  %p198_p2 = scmp.lt.s32.totalorder %s1037_s17, 5 }
   0x5   : > { %s1165_s18 = smov (%p29_p1, %s27_s18), 0  ;;  %p199_p3 = pnand %p803_p0, %p198_p2 }
   0x6   : > { %p244_p4 = scmp.lt.s32.totalorder (!%p199_p3), %s1029_s15, 3  ;;  %v1039_v16 = vmov (!%p199_p3), 0.0  }
   0x7   : > { %202 = sbr.rel (%p199_p3) target bundleno = 312 (0x138), region = 28 }
   0xe   : > { %s1167_s15 = smov (!%p244_p4, %s1029_s15), 3 }
   0xf   : > { %s1086_s19 = sshll.u32 %s1167_s15, 6  ;;  %s1120_s28 = scalar_lea.vmem %s1160_s3, %s1167_s15 }
  0x10   : > { %s1092_s22 = scalar_lea.vmem %s1158_s1, %s1086_s19  ;;  %s1101_s25 = scalar_lea.vmem %s1157_s0, %s1086_s19  ;;  %584 = vst [vmem:[%s1120_s28] sm:$0x1] %v1039_v16 }
  0x11   : > { %v999_v0 = vld [vmem:[%s1092_s22] sm:$0xff]   ;;  %v1000_v1 = vld [vmem:[%s1092_s22 + $0x8] sm:$0xff]   ;;  %v1001_v2 = vld [vmem:[%s1092_s22 + $0x10] sm:$0xff]   ;;  %s1126_s5 = scalar_lea.vmem %s1161_s4, %s1167_s15  ;;  %s1134_s8 = scalar_lea.vmem %s1159_s2, %s1086_s19 }
  0x12   : > { %926 = vmatprep.subr.bf16.mxu0 %v999_v0  ;;  %958 = vmatprep.subr.bf16.mxu1 %v999_v0  ;;  %v1002_v3 = vld [vmem:[%s1092_s22 + $0x18] sm:$0xff]   ;;  %v1007_v4 = vld [vmem:[%s1101_s25] sm:$0xff]   ;;  %v1004_v7 = vld [vmem:[%s1092_s22 + $0x28] sm:$0xff]   ;;  %585 = vst [vmem:[%s1126_s5] sm:$0x1] %v1039_v16 }
  0x13   : > { %927 = vmatpush3.bf16.msra.mxu0 %v999_v0  ;;  %966 = vmatpush3.bf16.msra.mxu1 %v999_v0  ;;  %v1003_v5 = vld [vmem:[%s1092_s22 + $0x20] sm:$0xff]   ;;  %v1005_v8 = vld [vmem:[%s1092_s22 + $0x30] sm:$0xff]   ;;  %v1006_v9 = vld [vmem:[%s1092_s22 + $0x38] sm:$0xff]  }
  0x14   : > { %928 = vmatprep.subr.bf16.mxu0 %v1000_v1  ;;  %959 = vmatprep.subr.bf16.mxu1 %v1000_v1  ;;  %v1011_v6 = vld [vmem:[%s1101_s25 + $0x20] sm:$0xff]   ;;  %v1008_v10 = vld [vmem:[%s1101_s25 + $0x8] sm:$0xff]   ;;  %v1009_v12 = vld [vmem:[%s1101_s25 + $0x10] sm:$0xff]  }
  0x15   : > { %942 = vmatprep.mubr.bf16.mxu0 %v1007_v4  ;;  %950 = vmatprep.mubr.bf16.mxu1 %v1011_v6  ;;  %v1012_v11 = vld [vmem:[%s1101_s25 + $0x28] sm:$0xff]   ;;  %v1013_v13 = vld [vmem:[%s1101_s25 + $0x30] sm:$0xff]   ;;  %v1010_v14 = vld [vmem:[%s1101_s25 + $0x18] sm:$0xff]  }
  0x16   : > { %v1014_v15 = vld [vmem:[%s1101_s25 + $0x38] sm:$0xff]  }
  0x17   : > { %929 = vmatpush3.bf16.msra.mxu0 %v1000_v1  ;;  %967 = vmatpush3.bf16.msra.mxu1 %v1000_v1 }
  0x18   : > { %930 = vmatprep.subr.bf16.mxu0 %v1001_v2  ;;  %960 = vmatprep.subr.bf16.mxu1 %v1001_v2 }
  0x1b   : > { %931 = vmatpush3.bf16.msra.mxu0 %v1001_v2  ;;  %968 = vmatpush3.bf16.msra.mxu1 %v1001_v2 }
  0x1c   : > { %932 = vmatprep.subr.bf16.mxu0 %v1002_v3  ;;  %961 = vmatprep.subr.bf16.mxu1 %v1002_v3 }
  0x1f   : > { %933 = vmatpush3.bf16.msra.mxu0 %v1002_v3  ;;  %969 = vmatpush3.bf16.msra.mxu1 %v1002_v3 }
  0x20   : > { %934 = vmatprep.subr.bf16.mxu0 %v1003_v5  ;;  %962 = vmatprep.subr.bf16.mxu1 %v1003_v5 }
  0x23   : > { %935 = vmatpush3.bf16.msra.mxu0 %v1003_v5  ;;  %970 = vmatpush3.bf16.msra.mxu1 %v1003_v5 }
  0x24   : > { %936 = vmatprep.subr.bf16.mxu0 %v1004_v7  ;;  %963 = vmatprep.subr.bf16.mxu1 %v1004_v7 }
  0x27   : > { %937 = vmatpush3.bf16.msra.mxu0 %v1004_v7  ;;  %971 = vmatpush3.bf16.msra.mxu1 %v1004_v7 }
  0x28   : > { %938 = vmatprep.subr.bf16.mxu0 %v1005_v8  ;;  %964 = vmatprep.subr.bf16.mxu1 %v1005_v8 }
  0x2b   : > { %939 = vmatpush3.bf16.msra.mxu0 %v1005_v8  ;;  %972 = vmatpush3.bf16.msra.mxu1 %v1005_v8 }
  0x2c   : > { %940 = vmatprep.subr.bf16.mxu0 %v1006_v9  ;;  %965 = vmatprep.subr.bf16.mxu1 %v1006_v9 }
  0x2f   : > { %941 = vmatpush3.bf16.msra.mxu0 %v1006_v9  ;;  %973 = vmatpush3.bf16.msra.mxu1 %v1006_v9 }
  0x32   : > { %943 = vmatmul.mubr.bf16.vlgmr.msra.gmra.mrb[0].mxu0 %v1008_v10  ;;  %951 = vmatmul.mubr.bf16.vlgmr.msra.gmra.mrb[0].mxu1 %v1012_v11 }
  0x33   : > { %946 = vmatprep.mubr.bf16.mxu0 %v1009_v12  ;;  %954 = vmatprep.mubr.bf16.mxu1 %v1013_v13 }
  0x3a   : > { %947 = vmatmul.mubr.bf16.gmra.mrb[4].mxu0 %v1010_v14  ;;  %955 = vmatmul.mubr.bf16.gmra.mrb[4].mxu1 %v1014_v15 }
 0x105   : > { %v944_v17 = vpop.f32.mrb[0].mxu0  ;;  %v952_v18 = vpop.f32.mrb[0].mxu1 }
 0x106   : > { %v437_v19 = vpop.f32.mrb[1].mxu0  ;;  %v469_v20 = vpop.f32.mrb[1].mxu1  ;;  %v613_v32 = vmul.f32 %v944_v17, %v944_v17  ;;  %v621_v4 = vmul.f32 %v952_v18, %v952_v18 }
 0x107   : > { %v945_v21 = vpop.f32.mrb[2].mxu0  ;;  %v953_v22 = vpop.f32.mrb[2].mxu1  ;;  %v611_v23 = vmul.f32 %v437_v19, %v437_v19  ;;  %v619_v62 = vmul.f32 %v469_v20, %v469_v20 }
 0x108   : > { %v871_v24 = vpack.c.bf16 %v945_v21, %v944_v17  ;;  %v440_v25 = vpop.f32.mrb[3].mxu0  ;;  %v891_v26 = vpack.c.bf16 %v953_v22, %v952_v18  ;;  %v472_v27 = vpop.f32.mrb[3].mxu1  ;;  %v614_v35 = vmul.f32 %v945_v21, %v945_v21  ;;  %v622_v7 = vmul.f32 %v953_v22, %v953_v22 }
 0x109   : > { %v866_v28 = vpack.c.bf16 %v440_v25, %v437_v19  ;;  %v587_v29 = vadd.f32 %v440_v25, %v437_v19  ;;  %v612_v30 = vmul.f32 %v440_v25, %v440_v25  ;;  %v886_v31 = vpack.c.bf16 %v472_v27, %v469_v20 }
 0x10a   : > { %903 = vst [vmem:[%s1134_s8 + $0x8] sm:$0xff] %v871_v24   ;;  %907 = vst [vmem:[%s1134_s8 + $0x28] sm:$0xff] %v891_v26   ;;  %v620_v3 = vmul.f32 %v472_v27, %v472_v27 }
 0x10b   : > { %867 = vst [vmem:[%s1134_s8] sm:$0xff] %v866_v28   ;;  %v588_v33 = vadd.f32 %v944_v17, %v587_v29  ;;  %v627_v34 = vadd.f32 %v612_v30, %v611_v23  ;;  %906 = vst [vmem:[%s1134_s8 + $0x20] sm:$0xff] %v886_v31  }
 0x10d   : > { %v628_v36 = vadd.f32 %v627_v34, %v613_v32  ;;  %v948_v37 = vpop.f32.mrb[4].mxu0  ;;  %v589_v38 = vadd.f32 %v945_v21, %v588_v33  ;;  %v956_v39 = vpop.f32.mrb[4].mxu1  ;;  %v586_v32 = vld [vmem:[%s1120_s28] sm:$0x1] }
 0x10e   : > { %v453_v40 = vpop.f32.mrb[5].mxu0  ;;  %v485_v41 = vpop.f32.mrb[5].mxu1  ;;  %v617_v56 = vmul.f32 %v948_v37, %v948_v37  ;;  %v625_v16 = vmul.f32 %v956_v39, %v956_v39 }
 0x10f   : > { %v590_v42 = vadd.f32 %v589_v38, %v453_v40  ;;  %v615_v43 = vmul.f32 %v453_v40, %v453_v40  ;;  %v629_v44 = vadd.f32 %v628_v36, %v614_v35  ;;  %v949_v45 = vpop.f32.mrb[6].mxu0  ;;  %v957_v46 = vpop.f32.mrb[6].mxu1  ;;  %v623_v10 = vmul.f32 %v485_v41, %v485_v41  ;;  %v610_v35 = vld [vmem:[%s1126_s5] sm:$0x1] }
 0x110   : > { %v881_v47 = vpack.c.bf16 %v949_v45, %v948_v37  ;;  %v456_v48 = vpop.f32.mrb[7].mxu0  ;;  %v901_v49 = vpack.c.bf16 %v957_v46, %v956_v39  ;;  %v488_v50 = vpop.f32.mrb[7].mxu1  ;;  %v618_v59 = vmul.f32 %v949_v45, %v949_v45 }
 0x111   : > { %v630_v51 = vadd.f32 %v629_v44, %v615_v43  ;;  %v876_v52 = vpack.c.bf16 %v456_v48, %v453_v40  ;;  %v591_v53 = vadd.f32 %v590_v42, %v456_v48  ;;  %v616_v54 = vmul.f32 %v456_v48, %v456_v48 }
 0x112   : > { %905 = vst [vmem:[%s1134_s8 + $0x18] sm:$0xff] %v881_v47   ;;  %909 = vst [vmem:[%s1134_s8 + $0x38] sm:$0xff] %v901_v49   ;;  %v896_v55 = vpack.c.bf16 %v488_v50, %v485_v41  ;;  %v624_v15 = vmul.f32 %v488_v50, %v488_v50 }
 0x113   : > { %904 = vst [vmem:[%s1134_s8 + $0x10] sm:$0xff] %v876_v52   ;;  %v592_v57 = vadd.f32 %v948_v37, %v591_v53  ;;  %v631_v58 = vadd.f32 %v630_v51, %v616_v54 }
 0x114   : > { %908 = vst [vmem:[%s1134_s8 + $0x30] sm:$0xff] %v896_v55  }
 0x115   : > { %v632_v60 = vadd.f32 %v631_v58, %v617_v56  ;;  %v593_v61 = vadd.f32 %v949_v45, %v592_v57 }
 0x117   : > { %v594_v63 = vadd.f32 %v593_v61, %v469_v20  ;;  %v633_v0 = vadd.f32 %v632_v60, %v618_v59  ;;  %v626_v20 = vmul.f32 %v957_v46, %v957_v46 }
 0x119   : > { %v634_v1 = vadd.f32 %v633_v0, %v619_v62  ;;  %v595_v2 = vadd.f32 %v594_v63, %v472_v27 }
 0x11b   : > { %v596_v5 = vadd.f32 %v952_v18, %v595_v2  ;;  %v635_v6 = vadd.f32 %v634_v1, %v620_v3 }
 0x11d   : > { %v636_v8 = vadd.f32 %v635_v6, %v621_v4  ;;  %v597_v9 = vadd.f32 %v953_v22, %v596_v5 }
 0x11f   : > { %v598_v11 = vadd.f32 %v597_v9, %v485_v41  ;;  %v637_v12 = vadd.f32 %v636_v8, %v622_v7 }
 0x121   : > { %v638_v13 = vadd.f32 %v637_v12, %v623_v10  ;;  %v599_v14 = vadd.f32 %v598_v11, %v488_v50 }
 0x123   : > { %v600_v17 = vadd.f32 %v956_v39, %v599_v14  ;;  %v639_v19 = vadd.f32 %v638_v13, %v624_v15 }
 0x125   : > { %v601_v21 = vadd.f32 %v957_v46, %v600_v17  ;;  %v640_v23 = vadd.f32 %v639_v19, %v625_v16 }
 0x127   : > { %v602_v24 = vrot.slane %v601_v21, 4  ;;  %v641_v18 = vadd.f32 %v640_v23, %v626_v20 }
 0x129   : > { %v603_v25 = vadd.f32 %v602_v24, %v601_v21  ;;  %v642_v22 = vrot.slane %v641_v18, 4 }
 0x12b   : > { %v604_v26 = vrot.slane %v603_v25, 2  ;;  %v643_v27 = vadd.f32 %v642_v22, %v641_v18 }
 0x12d   : > { %v605_v28 = vadd.f32 %v604_v26, %v603_v25  ;;  %v644_v29 = vrot.slane %v643_v27, 2 }
 0x12f   : > { %v606_v30 = vrot.slane %v605_v28, 1  ;;  %v645_v31 = vadd.f32 %v644_v29, %v643_v27 }
 0x131   : > { %v607_v33 = vadd.f32 %v606_v30, %v605_v28  ;;  %v646_v34 = vrot.slane %v645_v31, 1 }
 0x133   : > { %v608_v36 = vadd.f32 %v607_v33, %v586_v32  ;;  %v647_v37 = vadd.f32 %v646_v34, %v645_v31 }
 0x135   : > { %609 = vst [vmem:[%s1120_s28] sm:$0x1] %v608_v36  ;;  %v648_v38 = vadd.f32 %v647_v37, %v610_v35 }
 0x137   : > { %649 = vst [vmem:[%s1126_s5] sm:$0x1] %v648_v38 }
 0x138 PF: > { %s15_s17 = sadd.s32 1, %s1037_s17   ;;  %s1162_s15 = smov %s1033_s16 }
 0x139   : > { %p12_p5 = scmp.ge.s32.totalorder %s15_s17, 6   ;;  %s1163_s16 = smov %s1165_s18 }
 0x13b   :  { %14 = sbr.rel (!%p12_p5) target bundleno = 2 (0x2), region = 89 }

// kernel: generator_forward.14
= control target key start
LH: loop header
LB: loop body
LE: loop exit
PB: predicated region body
PF: predicated region fallthrough
CT: control target
= control target key end

     0   :  { %s1502_s0 = inlined_call_operand.vmem [shape: bf16[512,128], index: 0, kind: input, shape index: {}]   ;;  %s1503_s1 = inlined_call_operand.vmem [shape: f32[1,128], index: 1, kind: input, shape index: {}]   ;;  %s1504_s2 = inlined_call_operand.vmem [shape: f32[1,128], index: 2, kind: input, shape index: {}]   ;;  %s1505_s3 = inlined_call_operand.vmem [shape: bf16[512,128], index: 3, kind: output, shape index: {}]  }
   0x1   :  { %v803_v0 = vld [vmem:[%s1502_s0] sm:$0xff]   ;;  %v1090_v4 = vld [vmem:[%s1502_s0 + $0x8] sm:$0xff]   ;;  %v1091_v5 = vld [vmem:[%s1502_s0 + $0x10] sm:$0xff]  }
   0x2   :  { %v1178_v1 = vld [vmem:[%s1503_s1] ss:$0 sm:$0xff]  ;;  %v804_v2 = vunpack.c.l.bf16 %v803_v0  ;;  %v805_v3 = vunpack.c.h.bf16 %v803_v0  ;;  %v1092_v6 = vld [vmem:[%s1502_s0 + $0x18] sm:$0xff]   ;;  %v808_v8 = vunpack.c.l.bf16 %v1090_v4  ;;  %v809_v9 = vunpack.c.h.bf16 %v1090_v4  ;;  %v1094_v33 = vld [vmem:[%s1502_s0 + $0x28] sm:$0xff]  }
   0x3   :  { %v1192_v7 = vld [vmem:[%s1504_s2] ss:$0 sm:$0xff]  ;;  %v812_v10 = vunpack.c.l.bf16 %v1091_v5  ;;  %v813_v11 = vunpack.c.h.bf16 %v1091_v5  ;;  %v816_v14 = vunpack.c.l.bf16 %v1092_v6  ;;  %v817_v15 = vunpack.c.h.bf16 %v1092_v6  ;;  %v1095_v38 = vld [vmem:[%s1502_s0 + $0x30] sm:$0xff]   ;;  %v1096_v43 = vld [vmem:[%s1502_s0 + $0x38] sm:$0xff]  }
   0x4   :  { %v149_v12 = vmul.f32 %v804_v2, %v1178_v1  ;;  %v150_v13 = vmul.f32 %v805_v3, %v1178_v1  ;;  %v151_v16 = vmul.f32 %v808_v8, %v1178_v1  ;;  %v152_v17 = vmul.f32 %v809_v9, %v1178_v1  ;;  %v1093_v28 = vld [vmem:[%s1502_s0 + $0x20] sm:$0xff]  }
   0x5   :  { %v153_v18 = vmul.f32 %v812_v10, %v1178_v1  ;;  %v154_v19 = vmul.f32 %v813_v11, %v1178_v1  ;;  %v155_v22 = vmul.f32 %v816_v14, %v1178_v1  ;;  %v156_v23 = vmul.f32 %v817_v15, %v1178_v1  ;;  %v1097_v0 = vld [vmem:[%s1502_s0 + $0x40] sm:$0xff]   ;;  %v1098_v11 = vld [vmem:[%s1502_s0 + $0x48] sm:$0xff]  }
   0x6   :  { %v220_v20 = vadd.f32 %v1192_v7, %v149_v12  ;;  %v221_v21 = vadd.f32 %v1192_v7, %v150_v13  ;;  %v222_v24 = vadd.f32 %v1192_v7, %v151_v16  ;;  %v223_v25 = vadd.f32 %v1192_v7, %v152_v17  ;;  %v1099_v16 = vld [vmem:[%s1502_s0 + $0x50] sm:$0xff]  }
   0x7   :  { %v224_v26 = vadd.f32 %v1192_v7, %v153_v18  ;;  %v225_v27 = vadd.f32 %v1192_v7, %v154_v19  ;;  %v226_v31 = vadd.f32 %v1192_v7, %v155_v22  ;;  %v227_v32 = vadd.f32 %v1192_v7, %v156_v23 }
   0x8   :  { %v284_v29 = vmax.f32 %v220_v20, 0.0  ;;  %v285_v30 = vmax.f32 %v221_v21, 0.0  ;;  %v286_v34 = vmax.f32 %v222_v24, 0.0  ;;  %v287_v35 = vmax.f32 %v223_v25, 0.0  ;;  %v1100_v25 = vld [vmem:[%s1502_s0 + $0x58] sm:$0xff]  }
   0x9   :  { %v288_v36 = vmax.f32 %v224_v26, 0.0  ;;  %v289_v37 = vmax.f32 %v225_v27, 0.0  ;;  %v290_v40 = vmax.f32 %v226_v31, 0.0  ;;  %v291_v41 = vmax.f32 %v227_v32, 0.0 }
   0xa   :  { %v933_v39 = vpack.c.bf16 %v285_v30, %v284_v29  ;;  %v820_v42 = vunpack.c.l.bf16 %v1093_v28  ;;  %v938_v44 = vpack.c.bf16 %v287_v35, %v286_v34  ;;  %v821_v46 = vunpack.c.h.bf16 %v1093_v28 }
   0xb   :  { %v943_v45 = vpack.c.bf16 %v289_v37, %v288_v36  ;;  %v824_v47 = vunpack.c.l.bf16 %v1094_v33  ;;  %v948_v48 = vpack.c.bf16 %v291_v41, %v290_v40  ;;  %v825_v50 = vunpack.c.h.bf16 %v1094_v33 }
   0xc   :  { %934 = vst [vmem:[%s1505_s3] sm:$0xff] %v933_v39   ;;  %v157_v49 = vmul.f32 %v820_v42, %v1178_v1  ;;  %v828_v51 = vunpack.c.l.bf16 %v1095_v38  ;;  %1121 = vst [vmem:[%s1505_s3 + $0x8] sm:$0xff] %v938_v44   ;;  %v158_v52 = vmul.f32 %v821_v46, %v1178_v1  ;;  %v829_v54 = vunpack.c.h.bf16 %v1095_v38  ;;  %v1101_v38 = vld [vmem:[%s1502_s0 + $0x60] sm:$0xff]  }
   0xd   :  { %1122 = vst [vmem:[%s1505_s3 + $0x10] sm:$0xff] %v943_v45   ;;  %v159_v53 = vmul.f32 %v824_v47, %v1178_v1  ;;  %v832_v55 = vunpack.c.l.bf16 %v1096_v43  ;;  %1123 = vst [vmem:[%s1505_s3 + $0x18] sm:$0xff] %v948_v48   ;;  %v160_v57 = vmul.f32 %v825_v50, %v1178_v1  ;;  %v833_v59 = vunpack.c.h.bf16 %v1096_v43 }
   0xe   :  { %v228_v56 = vadd.f32 %v1192_v7, %v157_v49  ;;  %v161_v58 = vmul.f32 %v828_v51, %v1178_v1  ;;  %v229_v60 = vadd.f32 %v1192_v7, %v158_v52  ;;  %v162_v62 = vmul.f32 %v829_v54, %v1178_v1  ;;  %v1102_v51 = vld [vmem:[%s1502_s0 + $0x68] sm:$0xff]  }
   0xf   :  { %v230_v61 = vadd.f32 %v1192_v7, %v159_v53  ;;  %v163_v63 = vmul.f32 %v832_v55, %v1178_v1  ;;  %v231_v3 = vadd.f32 %v1192_v7, %v160_v57  ;;  %v164_v5 = vmul.f32 %v833_v59, %v1178_v1 }
  0x10   :  { %v292_v2 = vmax.f32 %v228_v56, 0.0  ;;  %v232_v4 = vadd.f32 %v1192_v7, %v161_v58  ;;  %v293_v6 = vmax.f32 %v229_v60, 0.0  ;;  %v233_v9 = vadd.f32 %v1192_v7, %v162_v62  ;;  %v1103_v60 = vld [vmem:[%s1502_s0 + $0x70] sm:$0xff]  }
  0x11   :  { %v294_v8 = vmax.f32 %v230_v61, 0.0  ;;  %v234_v10 = vadd.f32 %v1192_v7, %v163_v63  ;;  %v295_v12 = vmax.f32 %v231_v3, 0.0  ;;  %v235_v14 = vadd.f32 %v1192_v7, %v164_v5 }
  0x12   :  { %v296_v13 = vmax.f32 %v232_v4, 0.0  ;;  %v836_v15 = vunpack.c.l.bf16 %v1097_v0  ;;  %v953_v17 = vpack.c.bf16 %v293_v6, %v292_v2  ;;  %v297_v18 = vmax.f32 %v233_v9, 0.0  ;;  %v1104_v2 = vld [vmem:[%s1502_s0 + $0x78] sm:$0xff]  }
  0x13   :  { %v298_v19 = vmax.f32 %v234_v10, 0.0  ;;  %v837_v20 = vunpack.c.h.bf16 %v1097_v0  ;;  %v958_v21 = vpack.c.bf16 %v295_v12, %v294_v8  ;;  %v299_v22 = vmax.f32 %v235_v14, 0.0  ;;  %v1105_v12 = vld [vmem:[%s1502_s0 + $0x80] sm:$0xff]  }
  0x14   :  { %v165_v23 = vmul.f32 %v836_v15, %v1178_v1  ;;  %v840_v24 = vunpack.c.l.bf16 %v1098_v11  ;;  %1124 = vst [vmem:[%s1505_s3 + $0x20] sm:$0xff] %v953_v17   ;;  %v963_v26 = vpack.c.bf16 %v297_v18, %v296_v13  ;;  %v841_v28 = vunpack.c.h.bf16 %v1098_v11 }
  0x15   :  { %v166_v27 = vmul.f32 %v837_v20, %v1178_v1  ;;  %v844_v29 = vunpack.c.l.bf16 %v1099_v16  ;;  %1125 = vst [vmem:[%s1505_s3 + $0x28] sm:$0xff] %v958_v21   ;;  %v968_v30 = vpack.c.bf16 %v299_v22, %v298_v19  ;;  %v845_v33 = vunpack.c.h.bf16 %v1099_v16 }
  0x16   :  { %v236_v31 = vadd.f32 %v1192_v7, %v165_v23  ;;  %v167_v32 = vmul.f32 %v840_v24, %v1178_v1  ;;  %1126 = vst [vmem:[%s1505_s3 + $0x30] sm:$0xff] %v963_v26   ;;  %v168_v35 = vmul.f32 %v841_v28, %v1178_v1  ;;  %v848_v37 = vunpack.c.l.bf16 %v1100_v25 }
  0x17   :  { %v237_v34 = vadd.f32 %v1192_v7, %v166_v27  ;;  %v169_v36 = vmul.f32 %v844_v29, %v1178_v1  ;;  %1127 = vst [vmem:[%s1505_s3 + $0x38] sm:$0xff] %v968_v30   ;;  %v170_v41 = vmul.f32 %v845_v33, %v1178_v1  ;;  %v849_v42 = vunpack.c.h.bf16 %v1100_v25  ;;  %v1106_v29 = vld [vmem:[%s1502_s0 + $0x88] sm:$0xff]  }
  0x18   :  { %v300_v39 = vmax.f32 %v236_v31, 0.0  ;;  %v238_v40 = vadd.f32 %v1192_v7, %v167_v32  ;;  %v239_v44 = vadd.f32 %v1192_v7, %v168_v35  ;;  %v171_v46 = vmul.f32 %v848_v37, %v1178_v1 }
  0x19   :  { %v301_v43 = vmax.f32 %v237_v34, 0.0  ;;  %v240_v45 = vadd.f32 %v1192_v7, %v169_v36  ;;  %v241_v48 = vadd.f32 %v1192_v7, %v170_v41  ;;  %v172_v49 = vmul.f32 %v849_v42, %v1178_v1  ;;  %v1107_v34 = vld [vmem:[%s1502_s0 + $0x90] sm:$0xff]  }
  0x1a   :  { %v302_v47 = vmax.f32 %v238_v40, 0.0  ;;  %v852_v50 = vunpack.c.l.bf16 %v1101_v38  ;;  %v303_v53 = vmax.f32 %v239_v44, 0.0  ;;  %v242_v55 = vadd.f32 %v1192_v7, %v171_v46 }
  0x1b   :  { %v973_v52 = vpack.c.bf16 %v301_v43, %v300_v39  ;;  %v304_v54 = vmax.f32 %v240_v45, 0.0  ;;  %v305_v56 = vmax.f32 %v241_v48, 0.0  ;;  %v243_v57 = vadd.f32 %v1192_v7, %v172_v49  ;;  %v1108_v43 = vld [vmem:[%s1502_s0 + $0x98] sm:$0xff]  }
  0x1c   :  { %v853_v58 = vunpack.c.h.bf16 %v1101_v38  ;;  %v173_v59 = vmul.f32 %v852_v50, %v1178_v1  ;;  %v978_v61 = vpack.c.bf16 %v303_v53, %v302_v47  ;;  %v306_v62 = vmax.f32 %v242_v55, 0.0 }
  0x1d   :  { %1128 = vst [vmem:[%s1505_s3 + $0x40] sm:$0xff] %v973_v52   ;;  %v856_v63 = vunpack.c.l.bf16 %v1102_v51  ;;  %v857_v0 = vunpack.c.h.bf16 %v1102_v51  ;;  %v983_v3 = vpack.c.bf16 %v305_v56, %v304_v54  ;;  %v307_v4 = vmax.f32 %v243_v57, 0.0  ;;  %v1109_v56 = vld [vmem:[%s1502_s0 + $0xa0] sm:$0xff]  }
  0x1e   :  { %v174_v5 = vmul.f32 %v853_v58, %v1178_v1  ;;  %v244_v6 = vadd.f32 %v1192_v7, %v173_v59  ;;  %1129 = vst [vmem:[%s1505_s3 + $0x48] sm:$0xff] %v978_v61   ;;  %v860_v10 = vunpack.c.l.bf16 %v1103_v60  ;;  %v861_v11 = vunpack.c.h.bf16 %v1103_v60 }
  0x1f   :  { %v175_v8 = vmul.f32 %v856_v63, %v1178_v1  ;;  %v176_v9 = vmul.f32 %v857_v0, %v1178_v1  ;;  %1130 = vst [vmem:[%s1505_s3 + $0x50] sm:$0xff] %v983_v3   ;;  %v988_v13 = vpack.c.bf16 %v307_v4, %v306_v62  ;;  %v864_v16 = vunpack.c.l.bf16 %v1104_v2 }
  0x20   :  { %v245_v14 = vadd.f32 %v1192_v7, %v174_v5  ;;  %v308_v15 = vmax.f32 %v244_v6, 0.0  ;;  %v177_v19 = vmul.f32 %v860_v10, %v1178_v1  ;;  %v178_v20 = vmul.f32 %v861_v11, %v1178_v1 }
  0x21   :  { %v246_v17 = vadd.f32 %v1192_v7, %v175_v8  ;;  %v247_v18 = vadd.f32 %v1192_v7, %v176_v9  ;;  %1131 = vst [vmem:[%s1505_s3 + $0x58] sm:$0xff] %v988_v13   ;;  %v865_v22 = vunpack.c.h.bf16 %v1104_v2  ;;  %v179_v23 = vmul.f32 %v864_v16, %v1178_v1  ;;  %v1110_v2 = vld [vmem:[%s1502_s0 + $0xa8] sm:$0xff]   ;;  %v1111_v16 = vld [vmem:[%s1502_s0 + $0xb0] sm:$0xff]  }
  0x22   :  { %v309_v21 = vmax.f32 %v245_v14, 0.0  ;;  %v868_v24 = vunpack.c.l.bf16 %v1105_v12  ;;  %v248_v27 = vadd.f32 %v1192_v7, %v177_v19  ;;  %v249_v28 = vadd.f32 %v1192_v7, %v178_v20 }
  0x23   :  { %v310_v25 = vmax.f32 %v246_v17, 0.0  ;;  %v311_v26 = vmax.f32 %v247_v18, 0.0  ;;  %v180_v31 = vmul.f32 %v865_v22, %v1178_v1  ;;  %v250_v32 = vadd.f32 %v1192_v7, %v179_v23 }
  0x24   :  { %v993_v30 = vpack.c.bf16 %v309_v21, %v308_v15  ;;  %v869_v33 = vunpack.c.h.bf16 %v1105_v12  ;;  %v312_v36 = vmax.f32 %v248_v27, 0.0  ;;  %v313_v37 = vmax.f32 %v249_v28, 0.0  ;;  %v1112_v21 = vld [vmem:[%s1502_s0 + $0xb8] sm:$0xff]  }
  0x25   :  { %v998_v35 = vpack.c.bf16 %v311_v26, %v310_v25  ;;  %v181_v38 = vmul.f32 %v868_v24, %v1178_v1  ;;  %v251_v39 = vadd.f32 %v1192_v7, %v180_v31  ;;  %v314_v40 = vmax.f32 %v250_v32, 0.0 }
  0x26   :  { %1132 = vst [vmem:[%s1505_s3 + $0x60] sm:$0xff] %v993_v30   ;;  %v182_v41 = vmul.f32 %v869_v33, %v1178_v1  ;;  %v872_v42 = vunpack.c.l.bf16 %v1106_v29  ;;  %v1003_v44 = vpack.c.bf16 %v313_v37, %v312_v36  ;;  %v873_v46 = vunpack.c.h.bf16 %v1106_v29 }
  0x27   :  { %1133 = vst [vmem:[%s1505_s3 + $0x68] sm:$0xff] %v998_v35   ;;  %v252_v45 = vadd.f32 %v1192_v7, %v181_v38  ;;  %v876_v47 = vunpack.c.l.bf16 %v1107_v34  ;;  %v315_v48 = vmax.f32 %v251_v39, 0.0  ;;  %v877_v51 = vunpack.c.h.bf16 %v1107_v34  ;;  %v1113_v34 = vld [vmem:[%s1502_s0 + $0xc0] sm:$0xff]  }
  0x28   :  { %v253_v49 = vadd.f32 %v1192_v7, %v182_v41  ;;  %v183_v50 = vmul.f32 %v872_v42, %v1178_v1  ;;  %1134 = vst [vmem:[%s1505_s3 + $0x70] sm:$0xff] %v1003_v44   ;;  %v184_v53 = vmul.f32 %v873_v46, %v1178_v1  ;;  %v880_v55 = vunpack.c.l.bf16 %v1108_v43 }
  0x29   :  { %v316_v52 = vmax.f32 %v252_v45, 0.0  ;;  %v185_v54 = vmul.f32 %v876_v47, %v1178_v1  ;;  %v1008_v57 = vpack.c.bf16 %v315_v48, %v314_v40  ;;  %v186_v60 = vmul.f32 %v877_v51, %v1178_v1  ;;  %v1114_v47 = vld [vmem:[%s1502_s0 + $0xc8] sm:$0xff]  }
  0x2a   :  { %v317_v58 = vmax.f32 %v253_v49, 0.0  ;;  %v254_v59 = vadd.f32 %v1192_v7, %v183_v50  ;;  %v255_v61 = vadd.f32 %v1192_v7, %v184_v53  ;;  %v881_v63 = vunpack.c.h.bf16 %v1108_v43 }
  0x2b   :  { %v256_v62 = vadd.f32 %v1192_v7, %v185_v54  ;;  %v187_v0 = vmul.f32 %v880_v55, %v1178_v1  ;;  %1135 = vst [vmem:[%s1505_s3 + $0x78] sm:$0xff] %v1008_v57   ;;  %v257_v5 = vadd.f32 %v1192_v7, %v186_v60  ;;  %v884_v6 = vunpack.c.l.bf16 %v1109_v56 }
  0x2c   :  { %v1013_v3 = vpack.c.bf16 %v317_v58, %v316_v52  ;;  %v318_v4 = vmax.f32 %v254_v59, 0.0  ;;  %v319_v8 = vmax.f32 %v255_v61, 0.0  ;;  %v188_v10 = vmul.f32 %v881_v63, %v1178_v1  ;;  %v1115_v52 = vld [vmem:[%s1502_s0 + $0xd0] sm:$0xff]   ;;  %v1116_v61 = vld [vmem:[%s1502_s0 + $0xd8] sm:$0xff]  }
  0x2d   :  { %v320_v9 = vmax.f32 %v256_v62, 0.0  ;;  %v258_v11 = vadd.f32 %v1192_v7, %v187_v0  ;;  %v321_v12 = vmax.f32 %v257_v5, 0.0  ;;  %v885_v13 = vunpack.c.h.bf16 %v1109_v56 }
  0x2e   :  { %1136 = vst [vmem:[%s1505_s3 + $0x80] sm:$0xff] %v1013_v3   ;;  %v189_v14 = vmul.f32 %v884_v6, %v1178_v1  ;;  %v888_v15 = vunpack.c.l.bf16 %v1110_v2  ;;  %v1018_v17 = vpack.c.bf16 %v319_v8, %v318_v4  ;;  %v259_v18 = vadd.f32 %v1192_v7, %v188_v10 }
  0x2f   :  { %v322_v19 = vmax.f32 %v258_v11, 0.0  ;;  %v889_v20 = vunpack.c.h.bf16 %v1110_v2  ;;  %v1023_v22 = vpack.c.bf16 %v321_v12, %v320_v9  ;;  %v190_v23 = vmul.f32 %v885_v13, %v1178_v1  ;;  %v1117_v12 = vld [vmem:[%s1502_s0 + $0xe0] sm:$0xff]  }
  0x30   :  { %v260_v24 = vadd.f32 %v1192_v7, %v189_v14  ;;  %v191_v25 = vmul.f32 %v888_v15, %v1178_v1  ;;  %1137 = vst [vmem:[%s1505_s3 + $0x88] sm:$0xff] %v1018_v17   ;;  %v323_v26 = vmax.f32 %v259_v18, 0.0  ;;  %v892_v28 = vunpack.c.l.bf16 %v1111_v16 }
  0x31   :  { %v192_v27 = vmul.f32 %v889_v20, %v1178_v1  ;;  %v893_v29 = vunpack.c.h.bf16 %v1111_v16  ;;  %1138 = vst [vmem:[%s1505_s3 + $0x90] sm:$0xff] %v1023_v22   ;;  %v261_v30 = vadd.f32 %v1192_v7, %v190_v23  ;;  %v896_v33 = vunpack.c.l.bf16 %v1112_v21 }
  0x32   :  { %v324_v31 = vmax.f32 %v260_v24, 0.0  ;;  %v262_v32 = vadd.f32 %v1192_v7, %v191_v25  ;;  %v1028_v35 = vpack.c.bf16 %v323_v26, %v322_v19  ;;  %v193_v37 = vmul.f32 %v892_v28, %v1178_v1 }
  0x33   :  { %v263_v36 = vadd.f32 %v1192_v7, %v192_v27  ;;  %v194_v38 = vmul.f32 %v893_v29, %v1178_v1  ;;  %v325_v39 = vmax.f32 %v261_v30, 0.0  ;;  %v897_v41 = vunpack.c.h.bf16 %v1112_v21  ;;  %v1118_v21 = vld [vmem:[%s1502_s0 + $0xe8] sm:$0xff]  }
  0x34   :  { %v326_v40 = vmax.f32 %v262_v32, 0.0  ;;  %v195_v42 = vmul.f32 %v896_v33, %v1178_v1  ;;  %1139 = vst [vmem:[%s1505_s3 + $0x98] sm:$0xff] %v1028_v35   ;;  %v264_v44 = vadd.f32 %v1192_v7, %v193_v37  ;;  %v900_v46 = vunpack.c.l.bf16 %v1113_v34 }
  0x35   :  { %v327_v43 = vmax.f32 %v263_v36, 0.0  ;;  %v265_v45 = vadd.f32 %v1192_v7, %v194_v38  ;;  %v1033_v48 = vpack.c.bf16 %v325_v39, %v324_v31  ;;  %v196_v49 = vmul.f32 %v897_v41, %v1178_v1  ;;  %v1120_v39 = vld [vmem:[%s1502_s0 + $0xf8] sm:$0xff]  }
  0x36   :  { %v266_v50 = vadd.f32 %v1192_v7, %v195_v42  ;;  %v901_v51 = vunpack.c.h.bf16 %v1113_v34  ;;  %v328_v54 = vmax.f32 %v264_v44, 0.0  ;;  %v197_v56 = vmul.f32 %v900_v46, %v1178_v1  ;;  %v1119_v34 = vld [vmem:[%s1502_s0 + $0xf0] sm:$0xff]  }
  0x37   :  { %v1038_v53 = vpack.c.bf16 %v327_v43, %v326_v40  ;;  %v329_v55 = vmax.f32 %v265_v45, 0.0  ;;  %1140 = vst [vmem:[%s1505_s3 + $0xa0] sm:$0xff] %v1033_v48   ;;  %v267_v57 = vadd.f32 %v1192_v7, %v196_v49  ;;  %v904_v60 = vunpack.c.l.bf16 %v1114_v47 }
  0x38   :  { %v330_v58 = vmax.f32 %v266_v50, 0.0  ;;  %v198_v59 = vmul.f32 %v901_v51, %v1178_v1  ;;  %v268_v63 = vadd.f32 %v1192_v7, %v197_v56  ;;  %v905_v0 = vunpack.c.h.bf16 %v1114_v47 }
  0x39   :  { %1141 = vst [vmem:[%s1505_s3 + $0xa8] sm:$0xff] %v1038_v53   ;;  %v1043_v62 = vpack.c.bf16 %v329_v55, %v328_v54  ;;  %v908_v2 = vunpack.c.l.bf16 %v1115_v52  ;;  %v331_v3 = vmax.f32 %v267_v57, 0.0  ;;  %v199_v5 = vmul.f32 %v904_v60, %v1178_v1 }
  0x3a   :  { %v269_v4 = vadd.f32 %v1192_v7, %v198_v59  ;;  %v909_v6 = vunpack.c.h.bf16 %v1115_v52  ;;  %v332_v8 = vmax.f32 %v268_v63, 0.0  ;;  %v200_v9 = vmul.f32 %v905_v0, %v1178_v1 }
  0x3b   :  { %1142 = vst [vmem:[%s1505_s3 + $0xb0] sm:$0xff] %v1043_v62   ;;  %v201_v10 = vmul.f32 %v908_v2, %v1178_v1  ;;  %v912_v11 = vunpack.c.l.bf16 %v1116_v61  ;;  %v1048_v13 = vpack.c.bf16 %v331_v3, %v330_v58  ;;  %v270_v15 = vadd.f32 %v1192_v7, %v199_v5 }
  0x3c   :  { %v333_v14 = vmax.f32 %v269_v4, 0.0  ;;  %v202_v16 = vmul.f32 %v909_v6, %v1178_v1  ;;  %v271_v17 = vadd.f32 %v1192_v7, %v200_v9  ;;  %v913_v19 = vunpack.c.h.bf16 %v1116_v61 }
  0x3d   :  { %v272_v18 = vadd.f32 %v1192_v7, %v201_v10  ;;  %v203_v20 = vmul.f32 %v912_v11, %v1178_v1  ;;  %1143 = vst [vmem:[%s1505_s3 + $0xb8] sm:$0xff] %v1048_v13   ;;  %v334_v23 = vmax.f32 %v270_v15, 0.0  ;;  %v916_v25 = vunpack.c.l.bf16 %v1117_v12 }
  0x3e   :  { %v1053_v22 = vpack.c.bf16 %v333_v14, %v332_v8  ;;  %v273_v24 = vadd.f32 %v1192_v7, %v202_v16  ;;  %v335_v26 = vmax.f32 %v271_v17, 0.0  ;;  %v204_v28 = vmul.f32 %v913_v19, %v1178_v1 }
  0x3f   :  { %v336_v27 = vmax.f32 %v272_v18, 0.0  ;;  %v274_v29 = vadd.f32 %v1192_v7, %v203_v20  ;;  %v917_v31 = vunpack.c.h.bf16 %v1117_v12  ;;  %v205_v32 = vmul.f32 %v916_v25, %v1178_v1 }
  0x40   :  { %1144 = vst [vmem:[%s1505_s3 + $0xc0] sm:$0xff] %v1053_v22   ;;  %v337_v30 = vmax.f32 %v273_v24, 0.0  ;;  %v920_v33 = vunpack.c.l.bf16 %v1118_v21  ;;  %v1058_v35 = vpack.c.bf16 %v335_v26, %v334_v23  ;;  %v275_v36 = vadd.f32 %v1192_v7, %v204_v28 }
  0x41   :  { %v338_v37 = vmax.f32 %v274_v29, 0.0  ;;  %v921_v38 = vunpack.c.h.bf16 %v1118_v21  ;;  %v206_v41 = vmul.f32 %v917_v31, %v1178_v1  ;;  %v276_v42 = vadd.f32 %v1192_v7, %v205_v32 }
  0x42   :  { %v1063_v40 = vpack.c.bf16 %v337_v30, %v336_v27  ;;  %v207_v43 = vmul.f32 %v920_v33, %v1178_v1  ;;  %1145 = vst [vmem:[%s1505_s3 + $0xc8] sm:$0xff] %v1058_v35   ;;  %v339_v44 = vmax.f32 %v275_v36, 0.0  ;;  %v924_v46 = vunpack.c.l.bf16 %v1119_v34 }
  0x43   :  { %v208_v45 = vmul.f32 %v921_v38, %v1178_v1  ;;  %v925_v47 = vunpack.c.h.bf16 %v1119_v34  ;;  %v277_v48 = vadd.f32 %v1192_v7, %v206_v41  ;;  %v340_v49 = vmax.f32 %v276_v42, 0.0 }
  0x44   :  { %1146 = vst [vmem:[%s1505_s3 + $0xd0] sm:$0xff] %v1063_v40   ;;  %v278_v50 = vadd.f32 %v1192_v7, %v207_v43  ;;  %v928_v51 = vunpack.c.l.bf16 %v1120_v39  ;;  %v1068_v52 = vpack.c.bf16 %v339_v44, %v338_v37  ;;  %v209_v54 = vmul.f32 %v924_v46, %v1178_v1 }
  0x45   :  { %v279_v53 = vadd.f32 %v1192_v7, %v208_v45  ;;  %v210_v55 = vmul.f32 %v925_v47, %v1178_v1  ;;  %v341_v56 = vmax.f32 %v277_v48, 0.0  ;;  %v929_v58 = vunpack.c.h.bf16 %v1120_v39 }
  0x46   :  { %v342_v57 = vmax.f32 %v278_v50, 0.0  ;;  %v211_v59 = vmul.f32 %v928_v51, %v1178_v1  ;;  %1147 = vst [vmem:[%s1505_s3 + $0xd8] sm:$0xff] %v1068_v52   ;;  %v280_v61 = vadd.f32 %v1192_v7, %v209_v54 }
  0x47   :  { %v343_v60 = vmax.f32 %v279_v53, 0.0  ;;  %v281_v62 = vadd.f32 %v1192_v7, %v210_v55  ;;  %v1073_v63 = vpack.c.bf16 %v341_v56, %v340_v49  ;;  %v212_v0 = vmul.f32 %v929_v58, %v1178_v1 }
  0x48   :  { %v282_v2 = vadd.f32 %v1192_v7, %v211_v59  ;;  %v344_v4 = vmax.f32 %v280_v61, 0.0 }
  0x49   :  { %v1078_v3 = vpack.c.bf16 %v343_v60, %v342_v57  ;;  %v345_v5 = vmax.f32 %v281_v62, 0.0  ;;  %1148 = vst [vmem:[%s1505_s3 + $0xe0] sm:$0xff] %v1073_v63   ;;  %v283_v6 = vadd.f32 %v1192_v7, %v212_v0 }
  0x4a   :  { %v346_v8 = vmax.f32 %v282_v2, 0.0 }
  0x4b   :  { %1149 = vst [vmem:[%s1505_s3 + $0xe8] sm:$0xff] %v1078_v3   ;;  %v1083_v9 = vpack.c.bf16 %v345_v5, %v344_v4  ;;  %v347_v10 = vmax.f32 %v283_v6, 0.0 }
  0x4d   :  { %1150 = vst [vmem:[%s1505_s3 + $0xf0] sm:$0xff] %v1083_v9   ;;  %v1088_v1 = vpack.c.bf16 %v347_v10, %v346_v8 }
  0x4f   :  { %1151 = vst [vmem:[%s1505_s3 + $0xf8] sm:$0xff] %v1088_v1  }

// kernel: generator_forward.15
= control target key start
LH: loop header
LB: loop body
LE: loop exit
PB: predicated region body
PF: predicated region fallthrough
CT: control target
= control target key end

     0   :  { %s1466_s15 = smov 0   ;;  %s1468_s16 = smov 0   ;;  %s1755_s0 = inlined_call_operand.vmem [shape: bf16[4,512,64], index: 0, kind: input, shape index: {}]   ;;  %s1756_s1 = inlined_call_operand.vmem [shape: bf16[4,64,128], index: 1, kind: input, shape index: {}]   ;;  %s1757_s2 = inlined_call_operand.vmem [shape: bf16[4,512,128], index: 2, kind: output, shape index: {0}]   ;;  %s1758_s3 = inlined_call_operand.vmem [shape: f32[4,1,128], index: 3, kind: output, shape index: {1}]   ;;  %s1759_s4 = inlined_call_operand.vmem [shape: f32[4,1,128], index: 4, kind: output, shape index: {2}]  }
   0x1   :  { %s1470_s17 = smov 0   ;;  %s1472_s18 = smov 0  }
   0x2   :  { %s1474_s19 = smov 0  }
   0x3 LB: > { %s24_s20 = sadd.s32 1, %s1430_s17  ;;  %s27_s21 = sadd.s32 1, %s1434_s18  ;;  %s1438_s19 = sphi %s1474_s19, %s15_s19   ;;  %s1434_s18 = sphi %s1472_s18, %s1763_s18   ;;  %s1430_s17 = sphi %s1470_s17, %s1762_s17   ;;  %s1426_s16 = sphi %s1468_s16, %s1761_s16   ;;  %s1422_s15 = sphi %s1466_s15, %s1760_s15  }
   0x4   : > { %p25_p0 = scmp.ge.s32.totalorder %s24_s20, 2  ;;  %p1063_p1 = scmp.ge.s32.totalorder %s1438_s19, 1 }
   0x5   : > { %p198_p2 = scmp.lt.s32.totalorder %s1438_s19, 9 }
   0x6   : > { %s1765_s20 = smov (%p25_p0, %s24_s20), 0  ;;  %s1767_s21 = smov (!%p25_p0, %s27_s21), %s1434_s18 }
   0x7   : > { %p199_p3 = pnand %p1063_p1, %p198_p2  ;;  %p29_p4 = scmp.ge.s32.totalorder %s1767_s21, 4 }
   0x8   : > { %s1064_s22 = sshll.u32 (!%p199_p3), %s1422_s15, 5  ;;  %p244_p5 = scmp.lt.s32.totalorder (!%p199_p3), %s1426_s16, 3  ;;  %vm419_vm0 = vcmask (!%p199_p3), 523264  }
   0x9   : > { %s1769_s21 = smov (%p29_p4, %s1767_s21), 0  ;;  %202 = sbr.rel (%p199_p3) target bundleno = 357 (0x165), region = 28 }
   0xa   : > { %p246_p6 = scmp.lt.s32.totalorder (!%p199_p3), %s1064_s22, 63  ;;  %p1140_p7 = scmp.ne.s32.totalorder (!%p199_p3), %s1422_s15, 0 }
  0x10   : > { %s1771_s16 = smov (!%p244_p5, %s1426_s16), 3  ;;  %s1773_s22 = smov (!%p246_p6, %s1064_s22), 63 }
  0x11   : > { %s1065_s23 = sshll.u32 %s1771_s16, 6  ;;  %s1143_s24 = sshll.u32 %s1771_s16, 5 }
  0x12   : > { %s1499_s25 = sadd.s32 %s1065_s23, %s1773_s22  ;;  %s257_s28 = scalar_lea.vmem %s1756_s1, %s1143_s24 }
  0x13   : > { %s1066_s29 = sshll.u32 %s1499_s25, 2  ;;  %s1508_s6 = scalar_lea.vmem %s1758_s3, %s1771_s16  ;;  %v1380_v0 = vld [vmem:[%s257_s28] sm:$0xff]   ;;  %v1381_v1 = vld [vmem:[%s257_s28 + $0x8] sm:$0xff]   ;;  %v1382_v2 = vld [vmem:[%s257_s28 + $0x10] sm:$0xff]  }
  0x14   : > { %s1515_s9 = scalar_lea.vmem %s1755_s0, %s1066_s29  ;;  %s1520_s12 = scalar_lea.vmem %s1759_s4, %s1771_s16  ;;  %1291 = vmatprep.subr.bf16.mxu0 %v1380_v0  ;;  %1331 = vmatprep.subr.bf16.mxu1 %v1380_v0  ;;  %v1383_v5 = vld [vmem:[%s257_s28 + $0x18] sm:$0xff]  }
  0x15   : > { %1292 = vmatpush3.bf16.msra.mxu0 %v1380_v0  ;;  %1335 = vmatpush3.bf16.msra.mxu1 %v1380_v0  ;;  %v1384_v3 = vld [vmem:[%s1515_s9] sm:$0xff]   ;;  %v1386_v6 = vld [vmem:[%s1515_s9 + $0x8] sm:$0xff]   ;;  %v1388_v8 = vld [vmem:[%s1515_s9 + $0x10] sm:$0xff]   ;;  %s1567_s16 = scalar_lea.vmem %s1757_s2, %s1066_s29 }
  0x16   : > { %1293 = vmatprep.subr.bf16.mxu0 %v1381_v1  ;;  %1332 = vmatprep.subr.bf16.mxu1 %v1381_v1  ;;  %v1385_v4 = vld [vmem:[%s1515_s9 + $0x40] sm:$0xff]   ;;  %v1387_v7 = vld [vmem:[%s1515_s9 + $0x48] sm:$0xff]   ;;  %v1389_v9 = vld [vmem:[%s1515_s9 + $0x50] sm:$0xff]  }
  0x17   : > { %1299 = vmatprep.mubr.msk.bf16.mxu0 %vm419_vm0, %v1384_v3  ;;  %1315 = vmatprep.mubr.msk.bf16.mxu1 %vm419_vm0, %v1385_v4  ;;  %v1390_v10 = vld [vmem:[%s1515_s9 + $0x18] sm:$0xff]   ;;  %v1392_v12 = vld [vmem:[%s1515_s9 + $0x20] sm:$0xff]   ;;  %v1394_v14 = vld [vmem:[%s1515_s9 + $0x28] sm:$0xff]   ;;  %v1440_v4 = vmov (!%p1140_p7), 0.0  }
  0x18   : > { %v1391_v11 = vld [vmem:[%s1515_s9 + $0x58] sm:$0xff]   ;;  %v1393_v13 = vld [vmem:[%s1515_s9 + $0x60] sm:$0xff]   ;;  %v1395_v15 = vld [vmem:[%s1515_s9 + $0x68] sm:$0xff]   ;;  %793 = vst [vmem:[%s1508_s6] sm:$0x1] (!%p1140_p7), %v1440_v4 }
  0x19   : > { %1294 = vmatpush3.bf16.msra.mxu0 %v1381_v1  ;;  %1336 = vmatpush3.bf16.msra.mxu1 %v1381_v1  ;;  %v1396_v16 = vld [vmem:[%s1515_s9 + $0x30] sm:$0xff]   ;;  %v1398_v18 = vld [vmem:[%s1515_s9 + $0x38] sm:$0xff]   ;;  %794 = vst [vmem:[%s1520_s12] sm:$0x1] (!%p1140_p7), %v1440_v4 }
  0x1a   : > { %1295 = vmatprep.subr.bf16.mxu0 %v1382_v2  ;;  %1333 = vmatprep.subr.bf16.mxu1 %v1382_v2  ;;  %v1397_v17 = vld [vmem:[%s1515_s9 + $0x70] sm:$0xff]   ;;  %v1399_v19 = vld [vmem:[%s1515_s9 + $0x78] sm:$0xff]  }
  0x1d   : > { %1296 = vmatpush3.bf16.msra.mxu0 %v1382_v2  ;;  %1337 = vmatpush3.bf16.msra.mxu1 %v1382_v2 }
  0x1e   : > { %1297 = vmatprep.subr.bf16.mxu0 %v1383_v5  ;;  %1334 = vmatprep.subr.bf16.mxu1 %v1383_v5 }
  0x21   : > { %1298 = vmatpush3.bf16.msra.mxu0 %v1383_v5  ;;  %1338 = vmatpush3.bf16.msra.mxu1 %v1383_v5 }
  0x24   : > { %1300 = vmatmul.mubr.msk.bf16.vlgmr.msra.gmra.mrb[0].mxu0 %vm419_vm0, %v1386_v6  ;;  %1316 = vmatmul.mubr.msk.bf16.vlgmr.msra.gmra.mrb[0].mxu1 %vm419_vm0, %v1387_v7 }
  0x25   : > { %1303 = vmatprep.mubr.msk.bf16.mxu0 %vm419_vm0, %v1388_v8  ;;  %1319 = vmatprep.mubr.msk.bf16.mxu1 %vm419_vm0, %v1389_v9 }
  0x2c   : > { %1304 = vmatmul.mubr.msk.bf16.gmra.mrb[4].mxu0 %vm419_vm0, %v1390_v10  ;;  %1320 = vmatmul.mubr.msk.bf16.gmra.mrb[4].mxu1 %vm419_vm0, %v1391_v11 }
  0x2d   : > { %1307 = vmatprep.mubr.msk.bf16.mxu0 %vm419_vm0, %v1392_v12  ;;  %1323 = vmatprep.mubr.msk.bf16.mxu1 %vm419_vm0, %v1393_v13 }
  0x34   : > { %1308 = vmatmul.mubr.msk.bf16.gmra.mrb[8].mxu0 %vm419_vm0, %v1394_v14  ;;  %1324 = vmatmul.mubr.msk.bf16.gmra.mrb[8].mxu1 %vm419_vm0, %v1395_v15 }
  0x35   : > { %1311 = vmatprep.mubr.msk.bf16.mxu0 %vm419_vm0, %v1396_v16  ;;  %1327 = vmatprep.mubr.msk.bf16.mxu1 %vm419_vm0, %v1397_v17 }
  0x3c   : > { %1312 = vmatmul.mubr.msk.bf16.gmra.mrb[12].mxu0 %vm419_vm0, %v1398_v18  ;;  %1328 = vmatmul.mubr.msk.bf16.gmra.mrb[12].mxu1 %vm419_vm0, %v1399_v19 }
  0xf7   : > { %v1554_v20 = vpop.f32.mrb[0].mxu0  ;;  %v1556_v21 = vpop.f32.mrb[0].mxu1 }
  0xf8   : > { %v1558_v22 = vpop.f32.mrb[1].mxu0  ;;  %v1560_v23 = vpop.f32.mrb[1].mxu1 }
  0xf9   : > { %v1569_v24 = vpop.f32.mrb[2].mxu0  ;;  %v1571_v25 = vpop.f32.mrb[2].mxu1 }
  0xfa   : > { %v1184_v26 = vpack.c.bf16 %v1569_v24, %v1554_v20  ;;  %v1224_v27 = vpack.c.bf16 %v1571_v25, %v1556_v21  ;;  %v1577_v28 = vpop.f32.mrb[3].mxu0  ;;  %v1579_v29 = vpop.f32.mrb[3].mxu1 }
  0xfb   : > { %v1179_v30 = vpack.c.bf16 %v1577_v28, %v1558_v22  ;;  %v1219_v31 = vpack.c.bf16 %v1579_v29, %v1560_v23 }
  0xfc   : > { %1256 = vst [vmem:[%s1567_s16 + $0x8] sm:$0xff] %v1184_v26   ;;  %1264 = vst [vmem:[%s1567_s16 + $0x48] sm:$0xff] %v1224_v27  }
  0xfd   : > { %1180 = vst [vmem:[%s1567_s16] sm:$0xff] %v1179_v30   ;;  %1263 = vst [vmem:[%s1567_s16 + $0x40] sm:$0xff] %v1219_v31  }
  0xff   : > { %v1589_v32 = vpop.f32.mrb[4].mxu0  ;;  %v1591_v33 = vpop.f32.mrb[4].mxu1 }
 0x100   : > { %v1593_v34 = vpop.f32.mrb[5].mxu0  ;;  %v1595_v35 = vpop.f32.mrb[5].mxu1 }
 0x101   : > { %v1597_v36 = vpop.f32.mrb[6].mxu0  ;;  %v1599_v37 = vpop.f32.mrb[6].mxu1 }
 0x102   : > { %v1194_v38 = vpack.c.bf16 %v1597_v36, %v1589_v32  ;;  %v1234_v39 = vpack.c.bf16 %v1599_v37, %v1591_v33  ;;  %v521_v40 = vpop.f32.mrb[7].mxu0  ;;  %v1605_v41 = vpop.f32.mrb[7].mxu1 }
 0x103   : > { %v1189_v42 = vpack.c.bf16 %v521_v40, %v1593_v34  ;;  %v1229_v43 = vpack.c.bf16 %v1605_v41, %v1595_v35 }
 0x104   : > { %1258 = vst [vmem:[%s1567_s16 + $0x18] sm:$0xff] %v1194_v38   ;;  %1266 = vst [vmem:[%s1567_s16 + $0x58] sm:$0xff] %v1234_v39  }
 0x105   : > { %1257 = vst [vmem:[%s1567_s16 + $0x10] sm:$0xff] %v1189_v42   ;;  %1265 = vst [vmem:[%s1567_s16 + $0x50] sm:$0xff] %v1229_v43  }
 0x107   : > { %v1614_v44 = vpop.f32.mrb[8].mxu0  ;;  %v1616_v45 = vpop.f32.mrb[8].mxu1 }
 0x108   : > { %v534_v46 = vpop.f32.mrb[9].mxu0  ;;  %v1618_v47 = vpop.f32.mrb[9].mxu1 }
 0x109   : > { %v1620_v48 = vpop.f32.mrb[10].mxu0  ;;  %v1622_v49 = vpop.f32.mrb[10].mxu1 }
 0x10a   : > { %v1204_v50 = vpack.c.bf16 %v1620_v48, %v1614_v44  ;;  %v1244_v51 = vpack.c.bf16 %v1622_v49, %v1616_v45  ;;  %v537_v52 = vpop.f32.mrb[11].mxu0  ;;  %v1628_v53 = vpop.f32.mrb[11].mxu1 }
 0x10b   : > { %v1199_v54 = vpack.c.bf16 %v537_v52, %v534_v46  ;;  %v1239_v55 = vpack.c.bf16 %v1628_v53, %v1618_v47 }
 0x10c   : > { %1260 = vst [vmem:[%s1567_s16 + $0x28] sm:$0xff] %v1204_v50   ;;  %1268 = vst [vmem:[%s1567_s16 + $0x68] sm:$0xff] %v1244_v51  }
 0x10d   : > { %1259 = vst [vmem:[%s1567_s16 + $0x20] sm:$0xff] %v1199_v54   ;;  %1267 = vst [vmem:[%s1567_s16 + $0x60] sm:$0xff] %v1239_v55  }
 0x10f   : > { %v1636_v56 = vpop.f32.mrb[12].mxu0  ;;  %v1638_v57 = vpop.f32.mrb[12].mxu1  ;;  %792 = sbr.rel (%p1140_p7) target bundleno = 278 (0x116), region = 32 }
 0x110   : > { %v550_v58 = vpop.f32.mrb[13].mxu0  ;;  %v1640_v59 = vpop.f32.mrb[13].mxu1 }
 0x111   : > { %v1314_v60 = vpop.f32.mrb[14].mxu0  ;;  %v1642_v61 = vpop.f32.mrb[14].mxu1 }
 0x112   : > { %v1214_v62 = vpack.c.bf16 %v1314_v60, %v1636_v56  ;;  %v1254_v63 = vpack.c.bf16 %v1642_v61, %v1638_v57  ;;  %v553_v0 = vpop.f32.mrb[15].mxu0  ;;  %v1647_v1 = vpop.f32.mrb[15].mxu1 }
 0x113   : > { %v1209_v2 = vpack.c.bf16 %v553_v0, %v550_v58  ;;  %v1249_v3 = vpack.c.bf16 %v1647_v1, %v1640_v59 }
 0x114   : > { %1262 = vst [vmem:[%s1567_s16 + $0x38] sm:$0xff] %v1214_v62   ;;  %1270 = vst [vmem:[%s1567_s16 + $0x78] sm:$0xff] %v1254_v63  }
 0x115   : > { %1261 = vst [vmem:[%s1567_s16 + $0x30] sm:$0xff] %v1209_v2   ;;  %1269 = vst [vmem:[%s1567_s16 + $0x70] sm:$0xff] %v1249_v3  }
 0x116 PF: > { %v796_v5 = vadd.f32 %v1577_v28, %v1558_v22  ;;  %v836_v8 = vmul.f32 %v1558_v22, %v1558_v22  ;;  %v837_v9 = vmul.f32 %v1577_v28, %v1577_v28  ;;  %v838_v11 = vmul.f32 %v1554_v20, %v1554_v20 }
 0x117   : > { %v839_v13 = vmul.f32 %v1569_v24, %v1569_v24  ;;  %v840_v16 = vmul.f32 %v1593_v34, %v1593_v34  ;;  %v841_v19 = vmul.f32 %v521_v40, %v521_v40  ;;  %v842_v27 = vmul.f32 %v1589_v32, %v1589_v32 }
 0x118   : > { %v797_v6 = vadd.f32 %v1554_v20, %v796_v5  ;;  %v868_v14 = vadd.f32 %v837_v9, %v836_v8  ;;  %v844_v38 = vmul.f32 %v534_v46, %v534_v46  ;;  %v845_v42 = vmul.f32 %v537_v52, %v537_v52 }
 0x119   : > { %v846_v50 = vmul.f32 %v1614_v44, %v1614_v44  ;;  %v847_v54 = vmul.f32 %v1620_v48, %v1620_v48  ;;  %v848_v62 = vmul.f32 %v550_v58, %v550_v58  ;;  %v849_v2 = vmul.f32 %v553_v0, %v553_v0 }
 0x11a   : > { %v798_v7 = vadd.f32 %v1569_v24, %v797_v6  ;;  %v869_v17 = vadd.f32 %v868_v14, %v838_v11  ;;  %v843_v24 = vmul.f32 %v1597_v36, %v1597_v36  ;;  %v850_v4 = vmul.f32 %v1636_v56, %v1636_v56 }
 0x11b   : > { %v851_v6 = vmul.f32 %v1314_v60, %v1314_v60  ;;  %v852_v8 = vmul.f32 %v1560_v23, %v1560_v23 }
 0x11c   : > { %v799_v10 = vadd.f32 %v798_v7, %v1593_v34  ;;  %v870_v22 = vadd.f32 %v869_v17, %v839_v13  ;;  %v855_v13 = vmul.f32 %v1571_v25, %v1571_v25  ;;  %v857_v17 = vmul.f32 %v1605_v41, %v1605_v41 }
 0x11e   : > { %v800_v12 = vadd.f32 %v799_v10, %v521_v40  ;;  %v871_v20 = vadd.f32 %v870_v22, %v840_v16 }
 0x120   : > { %v801_v15 = vadd.f32 %v1589_v32, %v800_v12  ;;  %v872_v30 = vadd.f32 %v871_v20, %v841_v19  ;;  %v858_v19 = vmul.f32 %v1591_v33, %v1591_v33  ;;  %v860_v20 = vmul.f32 %v1618_v47, %v1618_v47 }
 0x122   : > { %v802_v18 = vadd.f32 %v1597_v36, %v801_v15  ;;  %v873_v39 = vadd.f32 %v872_v30, %v842_v27  ;;  %v856_v15 = vmul.f32 %v1595_v35, %v1595_v35 }
 0x124   : > { %v803_v26 = vadd.f32 %v802_v18, %v534_v46  ;;  %v874_v43 = vadd.f32 %v873_v39, %v843_v24  ;;  %v861_v24 = vmul.f32 %v1628_v53, %v1628_v53  ;;  %v863_v39 = vmul.f32 %v1622_v49, %v1622_v49 }
 0x126   : > { %v804_v28 = vadd.f32 %v803_v26, %v537_v52  ;;  %v875_v51 = vadd.f32 %v874_v43, %v844_v38  ;;  %v859_v26 = vmul.f32 %v1599_v37, %v1599_v37 }
 0x128   : > { %v805_v31 = vadd.f32 %v1614_v44, %v804_v28  ;;  %v876_v55 = vadd.f32 %v875_v51, %v845_v42  ;;  %v864_v42 = vmul.f32 %v1640_v59, %v1640_v59  ;;  %v866_v51 = vmul.f32 %v1638_v57, %v1638_v57 }
 0x12a   : > { %v806_v34 = vadd.f32 %v1620_v48, %v805_v31  ;;  %v877_v63 = vadd.f32 %v876_v55, %v846_v50  ;;  %v862_v31 = vmul.f32 %v1616_v45, %v1616_v45 }
 0x12c   : > { %v807_v40 = vadd.f32 %v806_v34, %v550_v58  ;;  %v878_v3 = vadd.f32 %v877_v63, %v847_v54  ;;  %v867_v54 = vmul.f32 %v1642_v61, %v1642_v61 }
 0x12e   : > { %v808_v32 = vadd.f32 %v807_v40, %v553_v0  ;;  %v879_v5 = vadd.f32 %v878_v3, %v848_v62  ;;  %v853_v0 = vmul.f32 %v1579_v29, %v1579_v29  ;;  %v865_v40 = vmul.f32 %v1647_v1, %v1647_v1 }
 0x130   : > { %v809_v36 = vadd.f32 %v1636_v56, %v808_v32  ;;  %v880_v7 = vadd.f32 %v879_v5, %v849_v2  ;;  %v854_v56 = vmul.f32 %v1556_v21, %v1556_v21 }
 0x132   : > { %v810_v46 = vadd.f32 %v1314_v60, %v809_v36  ;;  %v881_v58 = vadd.f32 %v880_v7, %v850_v4 }
 0x134   : > { %v811_v52 = vadd.f32 %v810_v46, %v1560_v23  ;;  %v882_v10 = vadd.f32 %v881_v58, %v851_v6  ;;  %v835_v6 = vld [vmem:[%s1520_s12] sm:$0x1] }
 0x136   : > { %v812_v44 = vadd.f32 %v811_v52, %v1579_v29  ;;  %v883_v12 = vadd.f32 %v882_v10, %v852_v8 }
 0x138   : > { %v813_v48 = vadd.f32 %v1556_v21, %v812_v44  ;;  %v884_v14 = vadd.f32 %v883_v12, %v853_v0 }
 0x13a   : > { %v814_v9 = vadd.f32 %v1571_v25, %v813_v48  ;;  %v885_v16 = vadd.f32 %v884_v14, %v854_v56 }
 0x13c   : > { %v815_v11 = vadd.f32 %v814_v9, %v1595_v35  ;;  %v886_v18 = vadd.f32 %v885_v16, %v855_v13 }
 0x13e   : > { %v816_v60 = vadd.f32 %v815_v11, %v1605_v41  ;;  %v887_v22 = vadd.f32 %v886_v18, %v856_v15 }
 0x140   : > { %v817_v23 = vadd.f32 %v1591_v33, %v816_v60  ;;  %v888_v27 = vadd.f32 %v887_v22, %v857_v17 }
 0x142   : > { %v818_v29 = vadd.f32 %v1599_v37, %v817_v23  ;;  %v889_v28 = vadd.f32 %v888_v27, %v858_v19 }
 0x144   : > { %v819_v21 = vadd.f32 %v818_v29, %v1618_v47  ;;  %v890_v30 = vadd.f32 %v889_v28, %v859_v26 }
 0x146   : > { %v820_v25 = vadd.f32 %v819_v21, %v1628_v53  ;;  %v891_v38 = vadd.f32 %v890_v30, %v860_v20 }
 0x148   : > { %v821_v35 = vadd.f32 %v1616_v45, %v820_v25  ;;  %v892_v34 = vadd.f32 %v891_v38, %v861_v24 }
 0x14a   : > { %v822_v41 = vadd.f32 %v1622_v49, %v821_v35  ;;  %v893_v53 = vadd.f32 %v892_v34, %v862_v31 }
 0x14c   : > { %v823_v33 = vadd.f32 %v822_v41, %v1640_v59  ;;  %v894_v45 = vadd.f32 %v893_v53, %v863_v39 }
 0x14e   : > { %v824_v37 = vadd.f32 %v823_v33, %v1647_v1  ;;  %v895_v49 = vadd.f32 %v894_v45, %v864_v42  ;;  %v795_v1 = vld [vmem:[%s1508_s6] sm:$0x1] }
 0x150   : > { %v825_v47 = vadd.f32 %v1638_v57, %v824_v37  ;;  %v896_v59 = vadd.f32 %v895_v49, %v865_v40 }
 0x152   : > { %v826_v43 = vadd.f32 %v1642_v61, %v825_v47  ;;  %v897_v36 = vadd.f32 %v896_v59, %v866_v51 }
 0x154   : > { %v827_v50 = vrot.slane %v826_v43, 4  ;;  %v898_v63 = vadd.f32 %v897_v36, %v867_v54 }
 0x156   : > { %v828_v32 = vadd.f32 %v827_v50, %v826_v43  ;;  %v899_v2 = vrot.slane %v898_v63, 4 }
 0x158   : > { %v829_v55 = vrot.slane %v828_v32, 2  ;;  %v900_v52 = vadd.f32 %v899_v2, %v898_v63 }
 0x15a   : > { %v830_v62 = vadd.f32 %v829_v55, %v828_v32  ;;  %v901_v57 = vrot.slane %v900_v52, 2 }
 0x15c   : > { %v831_v46 = vrot.slane %v830_v62, 1  ;;  %v902_v5 = vadd.f32 %v901_v57, %v900_v52 }
 0x15e   : > { %v832_v3 = vadd.f32 %v831_v46, %v830_v62  ;;  %v903_v44 = vrot.slane %v902_v5, 1 }
 0x160   : > { %v833_v4 = vadd.f32 %v832_v3, %v795_v1  ;;  %v904_v7 = vadd.f32 %v903_v44, %v902_v5 }
 0x162   : > { %834 = vst [vmem:[%s1508_s6] sm:$0x1] %v833_v4  ;;  %v905_v61 = vadd.f32 %v904_v7, %v835_v6 }
 0x164   : > { %906 = vst [vmem:[%s1520_s12] sm:$0x1] %v905_v61 }
 0x165 PF: > { %s15_s19 = sadd.s32 1, %s1438_s19   ;;  %s1760_s15 = smov %s1430_s17 }
 0x166   : > { %p12_p8 = scmp.ge.s32.totalorder %s15_s19, 10   ;;  %s1761_s16 = smov %s1434_s18 }
 0x167   : > { %s1762_s17 = smov %s1765_s20  ;;  %s1763_s18 = smov %s1769_s21 }
 0x168   :  { %14 = sbr.rel (!%p12_p8) target bundleno = 3 (0x3), region = 89 }

// kernel: generator_forward.16
= control target key start
LH: loop header
LB: loop body
LE: loop exit
PB: predicated region body
PF: predicated region fallthrough
CT: control target
= control target key end

     0   :  { %s2533_s12 = smov 0   ;;  %s2965_s0 = inlined_call_operand.vmem [shape: bf16[2048,128], index: 0, kind: input, shape index: {}]   ;;  %s2966_s1 = inlined_call_operand.vmem [shape: f32[1,128], index: 1, kind: input, shape index: {}]   ;;  %s2967_s2 = inlined_call_operand.vmem [shape: f32[1,128], index: 2, kind: input, shape index: {}]   ;;  %s2968_s3 = inlined_call_operand.vmem [shape: bf16[2048,128], index: 3, kind: output, shape index: {}]  }
   0x1 LB: > { %s1524_s13 = sadd.s32 4294967295, %s2511_s12   ;;  %p1528_p0 = scmp.ge.s32.totalorder %s2511_s12, 1  ;;  %s2511_s12 = sphi %s2533_s12, %s13_s12  }
   0x2   : > { %p138_p1 = scmp.lt.s32.totalorder %s2511_s12, 3 }
   0x4   : > { %p139_p2 = pnand %p1528_p0, %p138_p1 }
   0x5   : > { %s1529_s14 = sshll.u32 (!%p139_p2), %s1524_s13, 7  ;;  %v2554_v0 = vld [vmem:[%s2966_s1] ss:$0 sm:$0xff] (!%p139_p2) }
   0x6   : > { %142 = sbr.rel (%p139_p2) target bundleno = 167 (0xa7), region = 32  ;;  %p163_p3 = scmp.lt.s32.totalorder (!%p139_p2), %s1529_s14, 255  ;;  %v2563_v9 = vld [vmem:[%s2967_s2] ss:$0 sm:$0xff] (!%p139_p2) }
   0xd   : > { %s2970_s14 = smov (!%p163_p3, %s1529_s14), 255 }
   0xe   : > { %s1530_s15 = sshll.u32 %s2970_s14, 2 }
   0xf   : > { %s2549_s18 = scalar_lea.vmem %s2965_s0, %s1530_s15  ;;  %s2588_s25 = scalar_lea.vmem %s2968_s3, %s1530_s15 }
  0x10   : > { %v1794_v1 = vld [vmem:[%s2549_s18] sm:$0xff]   ;;  %v2369_v2 = vld [vmem:[%s2549_s18 + $0x8] sm:$0xff]   ;;  %v2370_v3 = vld [vmem:[%s2549_s18 + $0x10] sm:$0xff]  }
  0x11   : > { %v1795_v4 = vunpack.c.l.bf16 %v1794_v1  ;;  %v1796_v5 = vunpack.c.h.bf16 %v1794_v1  ;;  %v1799_v6 = vunpack.c.l.bf16 %v2369_v2  ;;  %v1800_v7 = vunpack.c.h.bf16 %v2369_v2  ;;  %v2371_v8 = vld [vmem:[%s2549_s18 + $0x18] sm:$0xff]   ;;  %v2372_v30 = vld [vmem:[%s2549_s18 + $0x20] sm:$0xff]   ;;  %v2373_v35 = vld [vmem:[%s2549_s18 + $0x28] sm:$0xff]  }
  0x12   : > { %v1803_v10 = vunpack.c.l.bf16 %v2370_v3  ;;  %v1804_v11 = vunpack.c.h.bf16 %v2370_v3  ;;  %v1807_v12 = vunpack.c.l.bf16 %v2371_v8  ;;  %v1808_v13 = vunpack.c.h.bf16 %v2371_v8  ;;  %v2374_v40 = vld [vmem:[%s2549_s18 + $0x30] sm:$0xff]   ;;  %v2375_v45 = vld [vmem:[%s2549_s18 + $0x38] sm:$0xff]   ;;  %v2376_v3 = vld [vmem:[%s2549_s18 + $0x40] sm:$0xff]  }
  0x13   : > { %v437_v14 = vmul.f32 %v1795_v4, %v2554_v0  ;;  %v438_v15 = vmul.f32 %v1796_v5, %v2554_v0  ;;  %v439_v16 = vmul.f32 %v1799_v6, %v2554_v0  ;;  %v440_v17 = vmul.f32 %v1800_v7, %v2554_v0 }
  0x14   : > { %v441_v18 = vmul.f32 %v1803_v10, %v2554_v0  ;;  %v442_v19 = vmul.f32 %v1804_v11, %v2554_v0  ;;  %v443_v20 = vmul.f32 %v1807_v12, %v2554_v0  ;;  %v444_v21 = vmul.f32 %v1808_v13, %v2554_v0  ;;  %v2377_v13 = vld [vmem:[%s2549_s18 + $0x48] sm:$0xff]  }
  0x15   : > { %v572_v22 = vadd.f32 %v2563_v9, %v437_v14  ;;  %v573_v23 = vadd.f32 %v2563_v9, %v438_v15  ;;  %v574_v24 = vadd.f32 %v2563_v9, %v439_v16  ;;  %v575_v25 = vadd.f32 %v2563_v9, %v440_v17 }
  0x16   : > { %v576_v26 = vadd.f32 %v2563_v9, %v441_v18  ;;  %v577_v27 = vadd.f32 %v2563_v9, %v442_v19  ;;  %v578_v28 = vadd.f32 %v2563_v9, %v443_v20  ;;  %v579_v29 = vadd.f32 %v2563_v9, %v444_v21  ;;  %v2378_v18 = vld [vmem:[%s2549_s18 + $0x50] sm:$0xff]  }
  0x17   : > { %v700_v31 = vmax.f32 %v572_v22, 0.0  ;;  %v701_v32 = vmax.f32 %v573_v23, 0.0  ;;  %v702_v33 = vmax.f32 %v574_v24, 0.0  ;;  %v703_v34 = vmax.f32 %v575_v25, 0.0  ;;  %v2379_v23 = vld [vmem:[%s2549_s18 + $0x58] sm:$0xff]  }
  0x18   : > { %v704_v36 = vmax.f32 %v576_v26, 0.0  ;;  %v705_v37 = vmax.f32 %v577_v27, 0.0  ;;  %v706_v38 = vmax.f32 %v578_v28, 0.0  ;;  %v707_v39 = vmax.f32 %v579_v29, 0.0 }
  0x19   : > { %v2052_v41 = vpack.c.bf16 %v701_v32, %v700_v31  ;;  %v2057_v42 = vpack.c.bf16 %v703_v34, %v702_v33  ;;  %v1811_v43 = vunpack.c.l.bf16 %v2372_v30  ;;  %v1812_v44 = vunpack.c.h.bf16 %v2372_v30 }
  0x1a   : > { %v2062_v46 = vpack.c.bf16 %v705_v37, %v704_v36  ;;  %v2067_v47 = vpack.c.bf16 %v707_v39, %v706_v38  ;;  %v1815_v48 = vunpack.c.l.bf16 %v2373_v35  ;;  %v1816_v49 = vunpack.c.h.bf16 %v2373_v35 }
  0x1b   : > { %2053 = vst [vmem:[%s2588_s25] sm:$0xff] %v2052_v41   ;;  %2432 = vst [vmem:[%s2588_s25 + $0x8] sm:$0xff] %v2057_v42   ;;  %v445_v50 = vmul.f32 %v1811_v43, %v2554_v0  ;;  %v446_v51 = vmul.f32 %v1812_v44, %v2554_v0  ;;  %v1819_v52 = vunpack.c.l.bf16 %v2374_v40  ;;  %v1820_v53 = vunpack.c.h.bf16 %v2374_v40  ;;  %v2380_v40 = vld [vmem:[%s2549_s18 + $0x60] sm:$0xff]  }
  0x1c   : > { %2433 = vst [vmem:[%s2588_s25 + $0x10] sm:$0xff] %v2062_v46   ;;  %2434 = vst [vmem:[%s2588_s25 + $0x18] sm:$0xff] %v2067_v47   ;;  %v447_v54 = vmul.f32 %v1815_v48, %v2554_v0  ;;  %v448_v55 = vmul.f32 %v1816_v49, %v2554_v0  ;;  %v1823_v56 = vunpack.c.l.bf16 %v2375_v45  ;;  %v1824_v57 = vunpack.c.h.bf16 %v2375_v45 }
  0x1d   : > { %v580_v58 = vadd.f32 %v2563_v9, %v445_v50  ;;  %v581_v59 = vadd.f32 %v2563_v9, %v446_v51  ;;  %v449_v60 = vmul.f32 %v1819_v52, %v2554_v0  ;;  %v450_v61 = vmul.f32 %v1820_v53, %v2554_v0  ;;  %v2381_v53 = vld [vmem:[%s2549_s18 + $0x68] sm:$0xff]  }
  0x1e   : > { %v582_v62 = vadd.f32 %v2563_v9, %v447_v54  ;;  %v583_v63 = vadd.f32 %v2563_v9, %v448_v55  ;;  %v451_v1 = vmul.f32 %v1823_v56, %v2554_v0  ;;  %v452_v2 = vmul.f32 %v1824_v57, %v2554_v0 }
  0x1f   : > { %v708_v4 = vmax.f32 %v580_v58, 0.0  ;;  %v709_v5 = vmax.f32 %v581_v59, 0.0  ;;  %v584_v6 = vadd.f32 %v2563_v9, %v449_v60  ;;  %v585_v7 = vadd.f32 %v2563_v9, %v450_v61  ;;  %v2382_v58 = vld [vmem:[%s2549_s18 + $0x70] sm:$0xff]  }
  0x20   : > { %v710_v8 = vmax.f32 %v582_v62, 0.0  ;;  %v711_v10 = vmax.f32 %v583_v63, 0.0  ;;  %v586_v11 = vadd.f32 %v2563_v9, %v451_v1  ;;  %v587_v12 = vadd.f32 %v2563_v9, %v452_v2  ;;  %v2383_v63 = vld [vmem:[%s2549_s18 + $0x78] sm:$0xff]  }
  0x21   : > { %v2072_v14 = vpack.c.bf16 %v709_v5, %v708_v4  ;;  %v712_v15 = vmax.f32 %v584_v6, 0.0  ;;  %v713_v16 = vmax.f32 %v585_v7, 0.0  ;;  %v1827_v17 = vunpack.c.l.bf16 %v2376_v3 }
  0x22   : > { %v2077_v19 = vpack.c.bf16 %v711_v10, %v710_v8  ;;  %v714_v20 = vmax.f32 %v586_v11, 0.0  ;;  %v715_v21 = vmax.f32 %v587_v12, 0.0  ;;  %v1828_v22 = vunpack.c.h.bf16 %v2376_v3 }
  0x23   : > { %2435 = vst [vmem:[%s2588_s25 + $0x20] sm:$0xff] %v2072_v14   ;;  %v2082_v24 = vpack.c.bf16 %v713_v16, %v712_v15  ;;  %v453_v25 = vmul.f32 %v1827_v17, %v2554_v0  ;;  %v1831_v26 = vunpack.c.l.bf16 %v2377_v13  ;;  %v1832_v27 = vunpack.c.h.bf16 %v2377_v13  ;;  %v2384_v14 = vld [vmem:[%s2549_s18 + $0x80] sm:$0xff]  }
  0x24   : > { %2436 = vst [vmem:[%s2588_s25 + $0x28] sm:$0xff] %v2077_v19   ;;  %v2087_v28 = vpack.c.bf16 %v715_v21, %v714_v20  ;;  %v454_v29 = vmul.f32 %v1828_v22, %v2554_v0  ;;  %v1835_v30 = vunpack.c.l.bf16 %v2378_v18  ;;  %v1836_v31 = vunpack.c.h.bf16 %v2378_v18 }
  0x25   : > { %2437 = vst [vmem:[%s2588_s25 + $0x30] sm:$0xff] %v2082_v24   ;;  %v588_v32 = vadd.f32 %v2563_v9, %v453_v25  ;;  %v455_v33 = vmul.f32 %v1831_v26, %v2554_v0  ;;  %v456_v34 = vmul.f32 %v1832_v27, %v2554_v0  ;;  %v1839_v35 = vunpack.c.l.bf16 %v2379_v23 }
  0x26   : > { %2438 = vst [vmem:[%s2588_s25 + $0x38] sm:$0xff] %v2087_v28   ;;  %v589_v36 = vadd.f32 %v2563_v9, %v454_v29  ;;  %v457_v37 = vmul.f32 %v1835_v30, %v2554_v0  ;;  %v458_v38 = vmul.f32 %v1836_v31, %v2554_v0  ;;  %v1840_v39 = vunpack.c.h.bf16 %v2379_v23  ;;  %v2385_v31 = vld [vmem:[%s2549_s18 + $0x88] sm:$0xff]  }
  0x27   : > { %v716_v41 = vmax.f32 %v588_v32, 0.0  ;;  %v590_v42 = vadd.f32 %v2563_v9, %v455_v33  ;;  %v591_v43 = vadd.f32 %v2563_v9, %v456_v34  ;;  %v459_v44 = vmul.f32 %v1839_v35, %v2554_v0 }
  0x28   : > { %v717_v45 = vmax.f32 %v589_v36, 0.0  ;;  %v592_v46 = vadd.f32 %v2563_v9, %v457_v37  ;;  %v593_v47 = vadd.f32 %v2563_v9, %v458_v38  ;;  %v460_v48 = vmul.f32 %v1840_v39, %v2554_v0  ;;  %v2386_v36 = vld [vmem:[%s2549_s18 + $0x90] sm:$0xff]  }
  0x29   : > { %v718_v49 = vmax.f32 %v590_v42, 0.0  ;;  %v719_v50 = vmax.f32 %v591_v43, 0.0  ;;  %v594_v51 = vadd.f32 %v2563_v9, %v459_v44  ;;  %v1843_v52 = vunpack.c.l.bf16 %v2380_v40 }
  0x2a   : > { %v2092_v54 = vpack.c.bf16 %v717_v45, %v716_v41  ;;  %v720_v55 = vmax.f32 %v592_v46, 0.0  ;;  %v721_v56 = vmax.f32 %v593_v47, 0.0  ;;  %v595_v57 = vadd.f32 %v2563_v9, %v460_v48  ;;  %v2387_v41 = vld [vmem:[%s2549_s18 + $0x98] sm:$0xff]  }
  0x2b   : > { %v2097_v59 = vpack.c.bf16 %v719_v50, %v718_v49  ;;  %v722_v60 = vmax.f32 %v594_v51, 0.0  ;;  %v1844_v61 = vunpack.c.h.bf16 %v2380_v40  ;;  %v461_v62 = vmul.f32 %v1843_v52, %v2554_v0 }
  0x2c   : > { %2439 = vst [vmem:[%s2588_s25 + $0x40] sm:$0xff] %v2092_v54   ;;  %v2102_v1 = vpack.c.bf16 %v721_v56, %v720_v55  ;;  %v723_v2 = vmax.f32 %v595_v57, 0.0  ;;  %v1847_v3 = vunpack.c.l.bf16 %v2381_v53  ;;  %v1848_v4 = vunpack.c.h.bf16 %v2381_v53  ;;  %v2388_v54 = vld [vmem:[%s2549_s18 + $0xa0] sm:$0xff]  }
  0x2d   : > { %2440 = vst [vmem:[%s2588_s25 + $0x48] sm:$0xff] %v2097_v59   ;;  %v462_v5 = vmul.f32 %v1844_v61, %v2554_v0  ;;  %v596_v6 = vadd.f32 %v2563_v9, %v461_v62  ;;  %v1851_v7 = vunpack.c.l.bf16 %v2382_v58  ;;  %v1852_v8 = vunpack.c.h.bf16 %v2382_v58 }
  0x2e   : > { %2441 = vst [vmem:[%s2588_s25 + $0x50] sm:$0xff] %v2102_v1   ;;  %v2107_v10 = vpack.c.bf16 %v723_v2, %v722_v60  ;;  %v463_v11 = vmul.f32 %v1847_v3, %v2554_v0  ;;  %v464_v12 = vmul.f32 %v1848_v4, %v2554_v0  ;;  %v1855_v13 = vunpack.c.l.bf16 %v2383_v63  ;;  %v2389_v4 = vld [vmem:[%s2549_s18 + $0xa8] sm:$0xff]  }
  0x2f   : > { %v597_v15 = vadd.f32 %v2563_v9, %v462_v5  ;;  %v724_v16 = vmax.f32 %v596_v6, 0.0  ;;  %v465_v17 = vmul.f32 %v1851_v7, %v2554_v0  ;;  %v466_v18 = vmul.f32 %v1852_v8, %v2554_v0 }
  0x30   : > { %2442 = vst [vmem:[%s2588_s25 + $0x58] sm:$0xff] %v2107_v10   ;;  %v598_v19 = vadd.f32 %v2563_v9, %v463_v11  ;;  %v599_v20 = vadd.f32 %v2563_v9, %v464_v12  ;;  %v1856_v21 = vunpack.c.h.bf16 %v2383_v63  ;;  %v467_v22 = vmul.f32 %v1855_v13, %v2554_v0 }
  0x31   : > { %v725_v23 = vmax.f32 %v597_v15, 0.0  ;;  %v600_v24 = vadd.f32 %v2563_v9, %v465_v17  ;;  %v601_v25 = vadd.f32 %v2563_v9, %v466_v18  ;;  %v1859_v26 = vunpack.c.l.bf16 %v2384_v14 }
  0x32   : > { %v726_v27 = vmax.f32 %v598_v19, 0.0  ;;  %v727_v28 = vmax.f32 %v599_v20, 0.0  ;;  %v468_v29 = vmul.f32 %v1856_v21, %v2554_v0  ;;  %v602_v30 = vadd.f32 %v2563_v9, %v467_v22  ;;  %v2391_v19 = vld [vmem:[%s2549_s18 + $0xb8] sm:$0xff]  }
  0x33   : > { %v2112_v32 = vpack.c.bf16 %v725_v23, %v724_v16  ;;  %v728_v33 = vmax.f32 %v600_v24, 0.0  ;;  %v729_v34 = vmax.f32 %v601_v25, 0.0  ;;  %v1860_v35 = vunpack.c.h.bf16 %v2384_v14  ;;  %v2390_v14 = vld [vmem:[%s2549_s18 + $0xb0] sm:$0xff]  }
  0x34   : > { %v2117_v37 = vpack.c.bf16 %v727_v28, %v726_v27  ;;  %v603_v38 = vadd.f32 %v2563_v9, %v468_v29  ;;  %v730_v39 = vmax.f32 %v602_v30, 0.0  ;;  %v469_v40 = vmul.f32 %v1859_v26, %v2554_v0 }
  0x35   : > { %2443 = vst [vmem:[%s2588_s25 + $0x60] sm:$0xff] %v2112_v32   ;;  %v2122_v42 = vpack.c.bf16 %v729_v34, %v728_v33  ;;  %v470_v43 = vmul.f32 %v1860_v35, %v2554_v0  ;;  %v1863_v44 = vunpack.c.l.bf16 %v2385_v31  ;;  %v1864_v45 = vunpack.c.h.bf16 %v2385_v31  ;;  %v2392_v32 = vld [vmem:[%s2549_s18 + $0xc0] sm:$0xff]  }
  0x36   : > { %2444 = vst [vmem:[%s2588_s25 + $0x68] sm:$0xff] %v2117_v37   ;;  %v731_v46 = vmax.f32 %v603_v38, 0.0  ;;  %v604_v47 = vadd.f32 %v2563_v9, %v469_v40  ;;  %v1867_v48 = vunpack.c.l.bf16 %v2386_v36  ;;  %v1868_v49 = vunpack.c.h.bf16 %v2386_v36 }
  0x37   : > { %2445 = vst [vmem:[%s2588_s25 + $0x70] sm:$0xff] %v2122_v42   ;;  %v605_v50 = vadd.f32 %v2563_v9, %v470_v43  ;;  %v471_v51 = vmul.f32 %v1863_v44, %v2554_v0  ;;  %v472_v52 = vmul.f32 %v1864_v45, %v2554_v0  ;;  %v1871_v53 = vunpack.c.l.bf16 %v2387_v41  ;;  %v2393_v45 = vld [vmem:[%s2549_s18 + $0xc8] sm:$0xff]  }
  0x38   : > { %v2127_v55 = vpack.c.bf16 %v731_v46, %v730_v39  ;;  %v732_v56 = vmax.f32 %v604_v47, 0.0  ;;  %v473_v57 = vmul.f32 %v1867_v48, %v2554_v0  ;;  %v474_v58 = vmul.f32 %v1868_v49, %v2554_v0 }
  0x39   : > { %v733_v59 = vmax.f32 %v605_v50, 0.0  ;;  %v606_v60 = vadd.f32 %v2563_v9, %v471_v51  ;;  %v607_v61 = vadd.f32 %v2563_v9, %v472_v52  ;;  %v1872_v62 = vunpack.c.h.bf16 %v2387_v41 }
  0x3a   : > { %2446 = vst [vmem:[%s2588_s25 + $0x78] sm:$0xff] %v2127_v55   ;;  %v608_v63 = vadd.f32 %v2563_v9, %v473_v57  ;;  %v609_v1 = vadd.f32 %v2563_v9, %v474_v58  ;;  %v475_v2 = vmul.f32 %v1871_v53, %v2554_v0  ;;  %v1875_v3 = vunpack.c.l.bf16 %v2388_v54 }
  0x3b   : > { %v2132_v5 = vpack.c.bf16 %v733_v59, %v732_v56  ;;  %v734_v6 = vmax.f32 %v606_v60, 0.0  ;;  %v735_v7 = vmax.f32 %v607_v61, 0.0  ;;  %v476_v8 = vmul.f32 %v1872_v62, %v2554_v0 }
  0x3c   : > { %v736_v10 = vmax.f32 %v608_v63, 0.0  ;;  %v737_v11 = vmax.f32 %v609_v1, 0.0  ;;  %v610_v12 = vadd.f32 %v2563_v9, %v475_v2  ;;  %v1876_v13 = vunpack.c.h.bf16 %v2388_v54  ;;  %v2394_v54 = vld [vmem:[%s2549_s18 + $0xd0] sm:$0xff]   ;;  %v2395_v63 = vld [vmem:[%s2549_s18 + $0xd8] sm:$0xff]  }
  0x3d   : > { %2447 = vst [vmem:[%s2588_s25 + $0x80] sm:$0xff] %v2132_v5   ;;  %v2137_v15 = vpack.c.bf16 %v735_v7, %v734_v6  ;;  %v611_v16 = vadd.f32 %v2563_v9, %v476_v8  ;;  %v477_v17 = vmul.f32 %v1875_v3, %v2554_v0  ;;  %v1879_v18 = vunpack.c.l.bf16 %v2389_v4 }
  0x3e   : > { %v2142_v20 = vpack.c.bf16 %v737_v11, %v736_v10  ;;  %v738_v21 = vmax.f32 %v610_v12, 0.0  ;;  %v478_v22 = vmul.f32 %v1876_v13, %v2554_v0  ;;  %v1880_v23 = vunpack.c.h.bf16 %v2389_v4  ;;  %v2396_v10 = vld [vmem:[%s2549_s18 + $0xe0] sm:$0xff]  }
  0x3f   : > { %2448 = vst [vmem:[%s2588_s25 + $0x88] sm:$0xff] %v2137_v15   ;;  %v739_v24 = vmax.f32 %v611_v16, 0.0  ;;  %v612_v25 = vadd.f32 %v2563_v9, %v477_v17  ;;  %v479_v26 = vmul.f32 %v1879_v18, %v2554_v0  ;;  %v1883_v27 = vunpack.c.l.bf16 %v2390_v14 }
  0x40   : > { %2449 = vst [vmem:[%s2588_s25 + $0x90] sm:$0xff] %v2142_v20   ;;  %v613_v28 = vadd.f32 %v2563_v9, %v478_v22  ;;  %v480_v29 = vmul.f32 %v1880_v23, %v2554_v0  ;;  %v1884_v30 = vunpack.c.h.bf16 %v2390_v14  ;;  %v1887_v31 = vunpack.c.l.bf16 %v2391_v19  ;;  %v2397_v23 = vld [vmem:[%s2549_s18 + $0xe8] sm:$0xff]  }
  0x41   : > { %v2147_v33 = vpack.c.bf16 %v739_v24, %v738_v21  ;;  %v740_v34 = vmax.f32 %v612_v25, 0.0  ;;  %v614_v35 = vadd.f32 %v2563_v9, %v479_v26  ;;  %v481_v36 = vmul.f32 %v1883_v27, %v2554_v0 }
  0x42   : > { %v741_v37 = vmax.f32 %v613_v28, 0.0  ;;  %v615_v38 = vadd.f32 %v2563_v9, %v480_v29  ;;  %v482_v39 = vmul.f32 %v1884_v30, %v2554_v0  ;;  %v1888_v40 = vunpack.c.h.bf16 %v2391_v19 }
  0x43   : > { %2450 = vst [vmem:[%s2588_s25 + $0x98] sm:$0xff] %v2147_v33   ;;  %v742_v41 = vmax.f32 %v614_v35, 0.0  ;;  %v616_v42 = vadd.f32 %v2563_v9, %v481_v36  ;;  %v483_v43 = vmul.f32 %v1887_v31, %v2554_v0  ;;  %v1891_v44 = vunpack.c.l.bf16 %v2392_v32 }
  0x44   : > { %v2152_v46 = vpack.c.bf16 %v741_v37, %v740_v34  ;;  %v743_v47 = vmax.f32 %v615_v38, 0.0  ;;  %v617_v48 = vadd.f32 %v2563_v9, %v482_v39  ;;  %v484_v49 = vmul.f32 %v1888_v40, %v2554_v0 }
  0x45   : > { %v744_v50 = vmax.f32 %v616_v42, 0.0  ;;  %v618_v51 = vadd.f32 %v2563_v9, %v483_v43  ;;  %v1892_v52 = vunpack.c.h.bf16 %v2392_v32  ;;  %v485_v53 = vmul.f32 %v1891_v44, %v2554_v0  ;;  %v2398_v32 = vld [vmem:[%s2549_s18 + $0xf0] sm:$0xff]  }
  0x46   : > { %2451 = vst [vmem:[%s2588_s25 + $0xa0] sm:$0xff] %v2152_v46   ;;  %v2157_v55 = vpack.c.bf16 %v743_v47, %v742_v41  ;;  %v745_v56 = vmax.f32 %v617_v48, 0.0  ;;  %v619_v57 = vadd.f32 %v2563_v9, %v484_v49  ;;  %v1895_v58 = vunpack.c.l.bf16 %v2393_v45  ;;  %v2399_v41 = vld [vmem:[%s2549_s18 + $0xf8] sm:$0xff]  }
  0x47   : > { %v746_v59 = vmax.f32 %v618_v51, 0.0  ;;  %v486_v60 = vmul.f32 %v1892_v52, %v2554_v0  ;;  %v620_v61 = vadd.f32 %v2563_v9, %v485_v53  ;;  %v1896_v62 = vunpack.c.h.bf16 %v2393_v45 }
  0x48   : > { %2452 = vst [vmem:[%s2588_s25 + $0xa8] sm:$0xff] %v2157_v55   ;;  %v2162_v1 = vpack.c.bf16 %v745_v56, %v744_v50  ;;  %v747_v2 = vmax.f32 %v619_v57, 0.0  ;;  %v487_v3 = vmul.f32 %v1895_v58, %v2554_v0  ;;  %v1899_v4 = vunpack.c.l.bf16 %v2394_v54  ;;  %v2400_v50 = vld [vmem:[%s2549_s18 + $0x100] sm:$0xff]  }
  0x49   : > { %v621_v5 = vadd.f32 %v2563_v9, %v486_v60  ;;  %v748_v6 = vmax.f32 %v620_v61, 0.0  ;;  %v488_v7 = vmul.f32 %v1896_v62, %v2554_v0  ;;  %v1900_v8 = vunpack.c.h.bf16 %v2394_v54 }
  0x4a   : > { %2453 = vst [vmem:[%s2588_s25 + $0xb0] sm:$0xff] %v2162_v1   ;;  %v2167_v11 = vpack.c.bf16 %v747_v2, %v746_v59  ;;  %v622_v12 = vadd.f32 %v2563_v9, %v487_v3  ;;  %v489_v13 = vmul.f32 %v1899_v4, %v2554_v0  ;;  %v1903_v14 = vunpack.c.l.bf16 %v2395_v63 }
  0x4b   : > { %v749_v15 = vmax.f32 %v621_v5, 0.0  ;;  %v623_v16 = vadd.f32 %v2563_v9, %v488_v7  ;;  %v490_v17 = vmul.f32 %v1900_v8, %v2554_v0  ;;  %v1904_v18 = vunpack.c.h.bf16 %v2395_v63  ;;  %v2401_v63 = vld [vmem:[%s2549_s18 + $0x108] sm:$0xff]  }
  0x4c   : > { %2454 = vst [vmem:[%s2588_s25 + $0xb8] sm:$0xff] %v2167_v11   ;;  %v750_v19 = vmax.f32 %v622_v12, 0.0  ;;  %v624_v20 = vadd.f32 %v2563_v9, %v489_v13  ;;  %v491_v21 = vmul.f32 %v1903_v14, %v2554_v0  ;;  %v1907_v22 = vunpack.c.l.bf16 %v2396_v10 }
  0x4d   : > { %v2172_v24 = vpack.c.bf16 %v749_v15, %v748_v6  ;;  %v751_v25 = vmax.f32 %v623_v16, 0.0  ;;  %v625_v26 = vadd.f32 %v2563_v9, %v490_v17  ;;  %v492_v27 = vmul.f32 %v1904_v18, %v2554_v0 }
  0x4e   : > { %v752_v28 = vmax.f32 %v624_v20, 0.0  ;;  %v626_v29 = vadd.f32 %v2563_v9, %v491_v21  ;;  %v1908_v30 = vunpack.c.h.bf16 %v2396_v10  ;;  %v493_v31 = vmul.f32 %v1907_v22, %v2554_v0  ;;  %v2402_v10 = vld [vmem:[%s2549_s18 + $0x110] sm:$0xff]  }
  0x4f   : > { %2455 = vst [vmem:[%s2588_s25 + $0xc0] sm:$0xff] %v2172_v24   ;;  %v2177_v33 = vpack.c.bf16 %v751_v25, %v750_v19  ;;  %v753_v34 = vmax.f32 %v625_v26, 0.0  ;;  %v627_v35 = vadd.f32 %v2563_v9, %v492_v27  ;;  %v1911_v36 = vunpack.c.l.bf16 %v2397_v23  ;;  %v2403_v19 = vld [vmem:[%s2549_s18 + $0x118] sm:$0xff]  }
  0x50   : > { %v754_v37 = vmax.f32 %v626_v29, 0.0  ;;  %v494_v38 = vmul.f32 %v1908_v30, %v2554_v0  ;;  %v628_v39 = vadd.f32 %v2563_v9, %v493_v31  ;;  %v1912_v40 = vunpack.c.h.bf16 %v2397_v23 }
  0x51   : > { %2456 = vst [vmem:[%s2588_s25 + $0xc8] sm:$0xff] %v2177_v33   ;;  %v2182_v42 = vpack.c.bf16 %v753_v34, %v752_v28  ;;  %v755_v43 = vmax.f32 %v627_v35, 0.0  ;;  %v495_v44 = vmul.f32 %v1911_v36, %v2554_v0  ;;  %v1915_v45 = vunpack.c.l.bf16 %v2398_v32  ;;  %v2404_v28 = vld [vmem:[%s2549_s18 + $0x120] sm:$0xff]  }
  0x52   : > { %v629_v46 = vadd.f32 %v2563_v9, %v494_v38  ;;  %v756_v47 = vmax.f32 %v628_v39, 0.0  ;;  %v496_v48 = vmul.f32 %v1912_v40, %v2554_v0  ;;  %v1916_v49 = vunpack.c.h.bf16 %v2398_v32 }
  0x53   : > { %2457 = vst [vmem:[%s2588_s25 + $0xd0] sm:$0xff] %v2182_v42   ;;  %v2187_v51 = vpack.c.bf16 %v755_v43, %v754_v37  ;;  %v630_v52 = vadd.f32 %v2563_v9, %v495_v44  ;;  %v497_v53 = vmul.f32 %v1915_v45, %v2554_v0  ;;  %v1919_v54 = vunpack.c.l.bf16 %v2399_v41 }
  0x54   : > { %v757_v55 = vmax.f32 %v629_v46, 0.0  ;;  %v631_v56 = vadd.f32 %v2563_v9, %v496_v48  ;;  %v498_v57 = vmul.f32 %v1916_v49, %v2554_v0  ;;  %v1920_v58 = vunpack.c.h.bf16 %v2399_v41  ;;  %v2405_v41 = vld [vmem:[%s2549_s18 + $0x128] sm:$0xff]  }
  0x55   : > { %2458 = vst [vmem:[%s2588_s25 + $0xd8] sm:$0xff] %v2187_v51   ;;  %v758_v59 = vmax.f32 %v630_v52, 0.0  ;;  %v632_v60 = vadd.f32 %v2563_v9, %v497_v53  ;;  %v499_v61 = vmul.f32 %v1919_v54, %v2554_v0  ;;  %v1923_v62 = vunpack.c.l.bf16 %v2400_v50 }
  0x56   : > { %v2192_v1 = vpack.c.bf16 %v757_v55, %v756_v47  ;;  %v759_v2 = vmax.f32 %v631_v56, 0.0  ;;  %v633_v3 = vadd.f32 %v2563_v9, %v498_v57  ;;  %v500_v4 = vmul.f32 %v1920_v58, %v2554_v0 }
  0x57   : > { %v760_v5 = vmax.f32 %v632_v60, 0.0  ;;  %v634_v6 = vadd.f32 %v2563_v9, %v499_v61  ;;  %v1924_v7 = vunpack.c.h.bf16 %v2400_v50  ;;  %v501_v8 = vmul.f32 %v1923_v62, %v2554_v0  ;;  %v2406_v50 = vld [vmem:[%s2549_s18 + $0x130] sm:$0xff]  }
  0x58   : > { %2459 = vst [vmem:[%s2588_s25 + $0xe0] sm:$0xff] %v2192_v1   ;;  %v2197_v11 = vpack.c.bf16 %v759_v2, %v758_v59  ;;  %v761_v12 = vmax.f32 %v633_v3, 0.0  ;;  %v635_v13 = vadd.f32 %v2563_v9, %v500_v4  ;;  %v1927_v14 = vunpack.c.l.bf16 %v2401_v63  ;;  %v2407_v59 = vld [vmem:[%s2549_s18 + $0x138] sm:$0xff]  }
  0x59   : > { %v762_v15 = vmax.f32 %v634_v6, 0.0  ;;  %v502_v16 = vmul.f32 %v1924_v7, %v2554_v0  ;;  %v636_v17 = vadd.f32 %v2563_v9, %v501_v8  ;;  %v1928_v18 = vunpack.c.h.bf16 %v2401_v63 }
  0x5a   : > { %2460 = vst [vmem:[%s2588_s25 + $0xe8] sm:$0xff] %v2197_v11   ;;  %v2202_v20 = vpack.c.bf16 %v761_v12, %v760_v5  ;;  %v763_v21 = vmax.f32 %v635_v13, 0.0  ;;  %v503_v22 = vmul.f32 %v1927_v14, %v2554_v0  ;;  %v1931_v23 = vunpack.c.l.bf16 %v2402_v10  ;;  %v2408_v5 = vld [vmem:[%s2549_s18 + $0x140] sm:$0xff]  }
  0x5b   : > { %v637_v24 = vadd.f32 %v2563_v9, %v502_v16  ;;  %v764_v25 = vmax.f32 %v636_v17, 0.0  ;;  %v504_v26 = vmul.f32 %v1928_v18, %v2554_v0  ;;  %v1932_v27 = vunpack.c.h.bf16 %v2402_v10 }
  0x5c   : > { %2461 = vst [vmem:[%s2588_s25 + $0xf0] sm:$0xff] %v2202_v20   ;;  %v2207_v29 = vpack.c.bf16 %v763_v21, %v762_v15  ;;  %v638_v30 = vadd.f32 %v2563_v9, %v503_v22  ;;  %v505_v31 = vmul.f32 %v1931_v23, %v2554_v0  ;;  %v1935_v32 = vunpack.c.l.bf16 %v2403_v19 }
  0x5d   : > { %v765_v33 = vmax.f32 %v637_v24, 0.0  ;;  %v639_v34 = vadd.f32 %v2563_v9, %v504_v26  ;;  %v506_v35 = vmul.f32 %v1932_v27, %v2554_v0  ;;  %v1936_v36 = vunpack.c.h.bf16 %v2403_v19  ;;  %v2409_v19 = vld [vmem:[%s2549_s18 + $0x148] sm:$0xff]  }
  0x5e   : > { %2462 = vst [vmem:[%s2588_s25 + $0xf8] sm:$0xff] %v2207_v29   ;;  %v766_v37 = vmax.f32 %v638_v30, 0.0  ;;  %v640_v38 = vadd.f32 %v2563_v9, %v505_v31  ;;  %v507_v39 = vmul.f32 %v1935_v32, %v2554_v0  ;;  %v1939_v40 = vunpack.c.l.bf16 %v2404_v28 }
  0x5f   : > { %v2212_v42 = vpack.c.bf16 %v765_v33, %v764_v25  ;;  %v767_v43 = vmax.f32 %v639_v34, 0.0  ;;  %v641_v44 = vadd.f32 %v2563_v9, %v506_v35  ;;  %v508_v45 = vmul.f32 %v1936_v36, %v2554_v0 }
  0x60   : > { %v768_v46 = vmax.f32 %v640_v38, 0.0  ;;  %v642_v47 = vadd.f32 %v2563_v9, %v507_v39  ;;  %v1940_v48 = vunpack.c.h.bf16 %v2404_v28  ;;  %v509_v49 = vmul.f32 %v1939_v40, %v2554_v0  ;;  %v2410_v28 = vld [vmem:[%s2549_s18 + $0x150] sm:$0xff]  }
  0x61   : > { %2463 = vst [vmem:[%s2588_s25 + $0x100] sm:$0xff] %v2212_v42   ;;  %v2217_v51 = vpack.c.bf16 %v767_v43, %v766_v37  ;;  %v769_v52 = vmax.f32 %v641_v44, 0.0  ;;  %v643_v53 = vadd.f32 %v2563_v9, %v508_v45  ;;  %v1943_v54 = vunpack.c.l.bf16 %v2405_v41  ;;  %v2411_v37 = vld [vmem:[%s2549_s18 + $0x158] sm:$0xff]  }
  0x62   : > { %v770_v55 = vmax.f32 %v642_v47, 0.0  ;;  %v510_v56 = vmul.f32 %v1940_v48, %v2554_v0  ;;  %v644_v57 = vadd.f32 %v2563_v9, %v509_v49  ;;  %v1944_v58 = vunpack.c.h.bf16 %v2405_v41 }
  0x63   : > { %2464 = vst [vmem:[%s2588_s25 + $0x108] sm:$0xff] %v2217_v51   ;;  %v2222_v60 = vpack.c.bf16 %v769_v52, %v768_v46  ;;  %v771_v61 = vmax.f32 %v643_v53, 0.0  ;;  %v511_v62 = vmul.f32 %v1943_v54, %v2554_v0  ;;  %v1947_v63 = vunpack.c.l.bf16 %v2406_v50  ;;  %v2412_v46 = vld [vmem:[%s2549_s18 + $0x160] sm:$0xff]  }
  0x64   : > { %v645_v1 = vadd.f32 %v2563_v9, %v510_v56  ;;  %v772_v2 = vmax.f32 %v644_v57, 0.0  ;;  %v512_v3 = vmul.f32 %v1944_v58, %v2554_v0  ;;  %v1948_v4 = vunpack.c.h.bf16 %v2406_v50 }
  0x65   : > { %2465 = vst [vmem:[%s2588_s25 + $0x110] sm:$0xff] %v2222_v60   ;;  %v2227_v6 = vpack.c.bf16 %v771_v61, %v770_v55  ;;  %v646_v7 = vadd.f32 %v2563_v9, %v511_v62  ;;  %v513_v8 = vmul.f32 %v1947_v63, %v2554_v0  ;;  %v1951_v10 = vunpack.c.l.bf16 %v2407_v59 }
  0x66   : > { %v773_v11 = vmax.f32 %v645_v1, 0.0  ;;  %v647_v12 = vadd.f32 %v2563_v9, %v512_v3  ;;  %v514_v13 = vmul.f32 %v1948_v4, %v2554_v0  ;;  %v1952_v14 = vunpack.c.h.bf16 %v2407_v59  ;;  %v2413_v59 = vld [vmem:[%s2549_s18 + $0x168] sm:$0xff]  }
  0x67   : > { %2466 = vst [vmem:[%s2588_s25 + $0x118] sm:$0xff] %v2227_v6   ;;  %v774_v15 = vmax.f32 %v646_v7, 0.0  ;;  %v648_v16 = vadd.f32 %v2563_v9, %v513_v8  ;;  %v515_v17 = vmul.f32 %v1951_v10, %v2554_v0  ;;  %v1955_v18 = vunpack.c.l.bf16 %v2408_v5 }
  0x68   : > { %v2232_v20 = vpack.c.bf16 %v773_v11, %v772_v2  ;;  %v775_v21 = vmax.f32 %v647_v12, 0.0  ;;  %v649_v22 = vadd.f32 %v2563_v9, %v514_v13  ;;  %v516_v23 = vmul.f32 %v1952_v14, %v2554_v0 }
  0x69   : > { %v776_v24 = vmax.f32 %v648_v16, 0.0  ;;  %v650_v25 = vadd.f32 %v2563_v9, %v515_v17  ;;  %v1956_v26 = vunpack.c.h.bf16 %v2408_v5  ;;  %v517_v27 = vmul.f32 %v1955_v18, %v2554_v0  ;;  %v2414_v5 = vld [vmem:[%s2549_s18 + $0x170] sm:$0xff]  }
  0x6a   : > { %2467 = vst [vmem:[%s2588_s25 + $0x120] sm:$0xff] %v2232_v20   ;;  %v2237_v29 = vpack.c.bf16 %v775_v21, %v774_v15  ;;  %v777_v30 = vmax.f32 %v649_v22, 0.0  ;;  %v651_v31 = vadd.f32 %v2563_v9, %v516_v23  ;;  %v1959_v32 = vunpack.c.l.bf16 %v2409_v19  ;;  %v2415_v15 = vld [vmem:[%s2549_s18 + $0x178] sm:$0xff]  }
  0x6b   : > { %v778_v33 = vmax.f32 %v650_v25, 0.0  ;;  %v518_v34 = vmul.f32 %v1956_v26, %v2554_v0  ;;  %v652_v35 = vadd.f32 %v2563_v9, %v517_v27  ;;  %v1960_v36 = vunpack.c.h.bf16 %v2409_v19 }
  0x6c   : > { %2468 = vst [vmem:[%s2588_s25 + $0x128] sm:$0xff] %v2237_v29   ;;  %v2242_v38 = vpack.c.bf16 %v777_v30, %v776_v24  ;;  %v779_v39 = vmax.f32 %v651_v31, 0.0  ;;  %v519_v40 = vmul.f32 %v1959_v32, %v2554_v0  ;;  %v1963_v41 = vunpack.c.l.bf16 %v2410_v28  ;;  %v2416_v24 = vld [vmem:[%s2549_s18 + $0x180] sm:$0xff]  }
  0x6d   : > { %v653_v42 = vadd.f32 %v2563_v9, %v518_v34  ;;  %v780_v43 = vmax.f32 %v652_v35, 0.0  ;;  %v520_v44 = vmul.f32 %v1960_v36, %v2554_v0  ;;  %v1964_v45 = vunpack.c.h.bf16 %v2410_v28  ;;  %v2851_v35 = vld [vmem:[%s2966_s1] ss:$0 sm:$0xff] }
  0x6e   : > { %2469 = vst [vmem:[%s2588_s25 + $0x130] sm:$0xff] %v2242_v38   ;;  %v2247_v47 = vpack.c.bf16 %v779_v39, %v778_v33  ;;  %v654_v48 = vadd.f32 %v2563_v9, %v519_v40  ;;  %v521_v49 = vmul.f32 %v1963_v41, %v2554_v0  ;;  %v1967_v50 = vunpack.c.l.bf16 %v2411_v37  ;;  %v2417_v38 = vld [vmem:[%s2549_s18 + $0x188] sm:$0xff]  }
  0x6f   : > { %v781_v51 = vmax.f32 %v653_v42, 0.0  ;;  %v655_v52 = vadd.f32 %v2563_v9, %v520_v44  ;;  %v522_v53 = vmul.f32 %v1964_v45, %v2554_v0  ;;  %v1968_v54 = vunpack.c.h.bf16 %v2411_v37 }
  0x70   : > { %2470 = vst [vmem:[%s2588_s25 + $0x138] sm:$0xff] %v2247_v47   ;;  %v782_v55 = vmax.f32 %v654_v48, 0.0  ;;  %v656_v56 = vadd.f32 %v2563_v9, %v521_v49  ;;  %v523_v57 = vmul.f32 %v1967_v50, %v2554_v0  ;;  %v1971_v58 = vunpack.c.l.bf16 %v2412_v46  ;;  %v2418_v47 = vld [vmem:[%s2549_s18 + $0x190] sm:$0xff]  }
  0x71   : > { %v2252_v60 = vpack.c.bf16 %v781_v51, %v780_v43  ;;  %v783_v61 = vmax.f32 %v655_v52, 0.0  ;;  %v657_v62 = vadd.f32 %v2563_v9, %v522_v53  ;;  %v524_v63 = vmul.f32 %v1968_v54, %v2554_v0  ;;  %v2860_v43 = vld [vmem:[%s2967_s2] ss:$0 sm:$0xff] }
  0x72   : > { %v784_v1 = vmax.f32 %v656_v56, 0.0  ;;  %v658_v2 = vadd.f32 %v2563_v9, %v523_v57  ;;  %v1972_v3 = vunpack.c.h.bf16 %v2412_v46  ;;  %v525_v4 = vmul.f32 %v1971_v58, %v2554_v0 }
  0x73   : > { %2471 = vst [vmem:[%s2588_s25 + $0x140] sm:$0xff] %v2252_v60   ;;  %v2257_v6 = vpack.c.bf16 %v783_v61, %v782_v55  ;;  %v785_v7 = vmax.f32 %v657_v62, 0.0  ;;  %v659_v8 = vadd.f32 %v2563_v9, %v524_v63  ;;  %v1975_v10 = vunpack.c.l.bf16 %v2413_v59  ;;  %v2419_v55 = vld [vmem:[%s2549_s18 + $0x198] sm:$0xff]  }
  0x74   : > { %v786_v11 = vmax.f32 %v658_v2, 0.0  ;;  %v526_v12 = vmul.f32 %v1972_v3, %v2554_v0  ;;  %v660_v13 = vadd.f32 %v2563_v9, %v525_v4  ;;  %v1976_v14 = vunpack.c.h.bf16 %v2413_v59 }
  0x75   : > { %2472 = vst [vmem:[%s2588_s25 + $0x148] sm:$0xff] %v2257_v6   ;;  %v2262_v16 = vpack.c.bf16 %v785_v7, %v784_v1  ;;  %v787_v17 = vmax.f32 %v659_v8, 0.0  ;;  %v527_v18 = vmul.f32 %v1975_v10, %v2554_v0  ;;  %v1979_v19 = vunpack.c.l.bf16 %v2414_v5  ;;  %v2420_v1 = vld [vmem:[%s2549_s18 + $0x1a0] sm:$0xff]  }
  0x76   : > { %v661_v20 = vadd.f32 %v2563_v9, %v526_v12  ;;  %v788_v21 = vmax.f32 %v660_v13, 0.0  ;;  %v528_v22 = vmul.f32 %v1976_v14, %v2554_v0  ;;  %v1980_v23 = vunpack.c.h.bf16 %v2414_v5 }
  0x77   : > { %2473 = vst [vmem:[%s2588_s25 + $0x150] sm:$0xff] %v2262_v16   ;;  %v2267_v25 = vpack.c.bf16 %v787_v17, %v786_v11  ;;  %v662_v26 = vadd.f32 %v2563_v9, %v527_v18  ;;  %v529_v27 = vmul.f32 %v1979_v19, %v2554_v0  ;;  %v1983_v28 = vunpack.c.l.bf16 %v2415_v15 }
  0x78   : > { %v789_v29 = vmax.f32 %v661_v20, 0.0  ;;  %v663_v30 = vadd.f32 %v2563_v9, %v528_v22  ;;  %v530_v31 = vmul.f32 %v1980_v23, %v2554_v0  ;;  %v1984_v32 = vunpack.c.h.bf16 %v2415_v15  ;;  %v2421_v15 = vld [vmem:[%s2549_s18 + $0x1a8] sm:$0xff]  }
  0x79   : > { %2474 = vst [vmem:[%s2588_s25 + $0x158] sm:$0xff] %v2267_v25   ;;  %v790_v33 = vmax.f32 %v662_v26, 0.0  ;;  %v664_v34 = vadd.f32 %v2563_v9, %v529_v27  ;;  %v531_v36 = vmul.f32 %v2851_v35, %v1983_v28  ;;  %v1987_v37 = vunpack.c.l.bf16 %v2416_v24 }
  0x7a   : > { %v2272_v39 = vpack.c.bf16 %v789_v29, %v788_v21  ;;  %v791_v40 = vmax.f32 %v663_v30, 0.0  ;;  %v665_v0 = vadd.f32 %v2563_v9, %v530_v31  ;;  %v532_v41 = vmul.f32 %v2851_v35, %v1984_v32 }
  0x7b   : > { %v792_v42 = vmax.f32 %v664_v34, 0.0  ;;  %v666_v44 = vadd.f32 %v2860_v43, %v531_v36  ;;  %v1988_v45 = vunpack.c.h.bf16 %v2416_v24  ;;  %v533_v46 = vmul.f32 %v2851_v35, %v1987_v37  ;;  %v2422_v24 = vld [vmem:[%s2549_s18 + $0x1b0] sm:$0xff]  }
  0x7c   : > { %2475 = vst [vmem:[%s2588_s25 + $0x160] sm:$0xff] %v2272_v39   ;;  %v2277_v48 = vpack.c.bf16 %v791_v40, %v790_v33  ;;  %v793_v49 = vmax.f32 %v665_v0, 0.0  ;;  %v667_v9 = vadd.f32 %v2860_v43, %v532_v41  ;;  %v1991_v50 = vunpack.c.l.bf16 %v2417_v38  ;;  %v2423_v33 = vld [vmem:[%s2549_s18 + $0x1b8] sm:$0xff]  }
  0x7d   : > { %v794_v51 = vmax.f32 %v666_v44, 0.0  ;;  %v534_v52 = vmul.f32 %v2851_v35, %v1988_v45  ;;  %v668_v53 = vadd.f32 %v2860_v43, %v533_v46  ;;  %v1992_v54 = vunpack.c.h.bf16 %v2417_v38 }
  0x7e   : > { %2476 = vst [vmem:[%s2588_s25 + $0x168] sm:$0xff] %v2277_v48   ;;  %v2282_v56 = vpack.c.bf16 %v793_v49, %v792_v42  ;;  %v795_v57 = vmax.f32 %v667_v9, 0.0  ;;  %v535_v58 = vmul.f32 %v2851_v35, %v1991_v50  ;;  %v1995_v59 = vunpack.c.l.bf16 %v2418_v47  ;;  %v2424_v42 = vld [vmem:[%s2549_s18 + $0x1c0] sm:$0xff]  }
  0x7f   : > { %v669_v60 = vadd.f32 %v2860_v43, %v534_v52  ;;  %v796_v61 = vmax.f32 %v668_v53, 0.0  ;;  %v536_v62 = vmul.f32 %v2851_v35, %v1992_v54  ;;  %v1996_v63 = vunpack.c.h.bf16 %v2418_v47 }
  0x80   : > { %2477 = vst [vmem:[%s2588_s25 + $0x170] sm:$0xff] %v2282_v56   ;;  %v2287_v2 = vpack.c.bf16 %v795_v57, %v794_v51  ;;  %v670_v3 = vadd.f32 %v2860_v43, %v535_v58  ;;  %v537_v4 = vmul.f32 %v2851_v35, %v1995_v59  ;;  %v1999_v5 = vunpack.c.l.bf16 %v2419_v55 }
  0x81   : > { %v797_v6 = vmax.f32 %v669_v60, 0.0  ;;  %v671_v7 = vadd.f32 %v2860_v43, %v536_v62  ;;  %v538_v8 = vmul.f32 %v2851_v35, %v1996_v63  ;;  %v2000_v10 = vunpack.c.h.bf16 %v2419_v55  ;;  %v2425_v55 = vld [vmem:[%s2549_s18 + $0x1c8] sm:$0xff]  }
  0x82   : > { %2478 = vst [vmem:[%s2588_s25 + $0x178] sm:$0xff] %v2287_v2   ;;  %v798_v11 = vmax.f32 %v670_v3, 0.0  ;;  %v672_v12 = vadd.f32 %v2860_v43, %v537_v4  ;;  %v539_v13 = vmul.f32 %v2851_v35, %v1999_v5  ;;  %v2003_v14 = vunpack.c.l.bf16 %v2420_v1 }
  0x83   : > { %v2292_v16 = vpack.c.bf16 %v797_v6, %v796_v61  ;;  %v799_v17 = vmax.f32 %v671_v7, 0.0  ;;  %v673_v18 = vadd.f32 %v2860_v43, %v538_v8  ;;  %v540_v19 = vmul.f32 %v2851_v35, %v2000_v10 }
  0x84   : > { %v800_v20 = vmax.f32 %v672_v12, 0.0  ;;  %v674_v21 = vadd.f32 %v2860_v43, %v539_v13  ;;  %v2004_v22 = vunpack.c.h.bf16 %v2420_v1  ;;  %v541_v23 = vmul.f32 %v2851_v35, %v2003_v14  ;;  %v2426_v1 = vld [vmem:[%s2549_s18 + $0x1d0] sm:$0xff]  }
  0x85   : > { %2479 = vst [vmem:[%s2588_s25 + $0x180] sm:$0xff] %v2292_v16   ;;  %v2297_v25 = vpack.c.bf16 %v799_v17, %v798_v11  ;;  %v801_v26 = vmax.f32 %v673_v18, 0.0  ;;  %v675_v27 = vadd.f32 %v2860_v43, %v540_v19  ;;  %v2007_v28 = vunpack.c.l.bf16 %v2421_v15  ;;  %v2427_v11 = vld [vmem:[%s2549_s18 + $0x1d8] sm:$0xff]  }
  0x86   : > { %v802_v29 = vmax.f32 %v674_v21, 0.0  ;;  %v542_v30 = vmul.f32 %v2851_v35, %v2004_v22  ;;  %v676_v31 = vadd.f32 %v2860_v43, %v541_v23  ;;  %v2008_v32 = vunpack.c.h.bf16 %v2421_v15 }
  0x87   : > { %2480 = vst [vmem:[%s2588_s25 + $0x188] sm:$0xff] %v2297_v25   ;;  %v2302_v34 = vpack.c.bf16 %v801_v26, %v800_v20  ;;  %v803_v36 = vmax.f32 %v675_v27, 0.0  ;;  %v543_v37 = vmul.f32 %v2851_v35, %v2007_v28  ;;  %v2011_v38 = vunpack.c.l.bf16 %v2422_v24  ;;  %v2428_v20 = vld [vmem:[%s2549_s18 + $0x1e0] sm:$0xff]  }
  0x88   : > { %v677_v39 = vadd.f32 %v2860_v43, %v542_v30  ;;  %v804_v40 = vmax.f32 %v676_v31, 0.0  ;;  %v544_v0 = vmul.f32 %v2851_v35, %v2008_v32  ;;  %v2012_v41 = vunpack.c.h.bf16 %v2422_v24 }
  0x89   : > { %2481 = vst [vmem:[%s2588_s25 + $0x190] sm:$0xff] %v2302_v34   ;;  %v2307_v44 = vpack.c.bf16 %v803_v36, %v802_v29  ;;  %v678_v45 = vadd.f32 %v2860_v43, %v543_v37  ;;  %v545_v46 = vmul.f32 %v2851_v35, %v2011_v38  ;;  %v2015_v47 = vunpack.c.l.bf16 %v2423_v33 }
  0x8a   : > { %v805_v48 = vmax.f32 %v677_v39, 0.0  ;;  %v679_v49 = vadd.f32 %v2860_v43, %v544_v0  ;;  %v546_v9 = vmul.f32 %v2851_v35, %v2012_v41  ;;  %v2016_v50 = vunpack.c.h.bf16 %v2423_v33  ;;  %v2429_v33 = vld [vmem:[%s2549_s18 + $0x1e8] sm:$0xff]  }
  0x8b   : > { %2482 = vst [vmem:[%s2588_s25 + $0x198] sm:$0xff] %v2307_v44   ;;  %v806_v51 = vmax.f32 %v678_v45, 0.0  ;;  %v680_v52 = vadd.f32 %v2860_v43, %v545_v46  ;;  %v547_v53 = vmul.f32 %v2851_v35, %v2015_v47  ;;  %v2019_v54 = vunpack.c.l.bf16 %v2424_v42 }
  0x8c   : > { %v2312_v56 = vpack.c.bf16 %v805_v48, %v804_v40  ;;  %v807_v57 = vmax.f32 %v679_v49, 0.0  ;;  %v681_v58 = vadd.f32 %v2860_v43, %v546_v9  ;;  %v548_v59 = vmul.f32 %v2851_v35, %v2016_v50 }
  0x8d   : > { %v808_v60 = vmax.f32 %v680_v52, 0.0  ;;  %v682_v61 = vadd.f32 %v2860_v43, %v547_v53  ;;  %v2020_v62 = vunpack.c.h.bf16 %v2424_v42  ;;  %v549_v63 = vmul.f32 %v2851_v35, %v2019_v54  ;;  %v2430_v42 = vld [vmem:[%s2549_s18 + $0x1f0] sm:$0xff]  }
  0x8e   : > { %2483 = vst [vmem:[%s2588_s25 + $0x1a0] sm:$0xff] %v2312_v56   ;;  %v2317_v2 = vpack.c.bf16 %v807_v57, %v806_v51  ;;  %v809_v3 = vmax.f32 %v681_v58, 0.0  ;;  %v683_v4 = vadd.f32 %v2860_v43, %v548_v59  ;;  %v2023_v5 = vunpack.c.l.bf16 %v2425_v55  ;;  %v2431_v51 = vld [vmem:[%s2549_s18 + $0x1f8] sm:$0xff]  }
  0x8f   : > { %v810_v6 = vmax.f32 %v682_v61, 0.0  ;;  %v550_v7 = vmul.f32 %v2851_v35, %v2020_v62  ;;  %v684_v8 = vadd.f32 %v2860_v43, %v549_v63  ;;  %v2024_v10 = vunpack.c.h.bf16 %v2425_v55 }
  0x90   : > { %2484 = vst [vmem:[%s2588_s25 + $0x1a8] sm:$0xff] %v2317_v2   ;;  %v2322_v12 = vpack.c.bf16 %v809_v3, %v808_v60  ;;  %v811_v13 = vmax.f32 %v683_v4, 0.0  ;;  %v551_v14 = vmul.f32 %v2851_v35, %v2023_v5  ;;  %v2027_v15 = vunpack.c.l.bf16 %v2426_v1 }
  0x91   : > { %v685_v16 = vadd.f32 %v2860_v43, %v550_v7  ;;  %v812_v17 = vmax.f32 %v684_v8, 0.0  ;;  %v552_v18 = vmul.f32 %v2851_v35, %v2024_v10  ;;  %v2028_v19 = vunpack.c.h.bf16 %v2426_v1 }
  0x92   : > { %2485 = vst [vmem:[%s2588_s25 + $0x1b0] sm:$0xff] %v2322_v12   ;;  %v2327_v21 = vpack.c.bf16 %v811_v13, %v810_v6  ;;  %v686_v22 = vadd.f32 %v2860_v43, %v551_v14  ;;  %v553_v23 = vmul.f32 %v2851_v35, %v2027_v15  ;;  %v2031_v24 = vunpack.c.l.bf16 %v2427_v11 }
  0x93   : > { %v813_v25 = vmax.f32 %v685_v16, 0.0  ;;  %v687_v26 = vadd.f32 %v2860_v43, %v552_v18  ;;  %v554_v27 = vmul.f32 %v2851_v35, %v2028_v19  ;;  %v2032_v28 = vunpack.c.h.bf16 %v2427_v11 }
  0x94   : > { %2486 = vst [vmem:[%s2588_s25 + $0x1b8] sm:$0xff] %v2327_v21   ;;  %v814_v29 = vmax.f32 %v686_v22, 0.0  ;;  %v688_v30 = vadd.f32 %v2860_v43, %v553_v23  ;;  %v555_v31 = vmul.f32 %v2851_v35, %v2031_v24  ;;  %v2035_v32 = vunpack.c.l.bf16 %v2428_v20 }
  0x95   : > { %v2332_v34 = vpack.c.bf16 %v813_v25, %v812_v17  ;;  %v815_v36 = vmax.f32 %v687_v26, 0.0  ;;  %v689_v37 = vadd.f32 %v2860_v43, %v554_v27  ;;  %v556_v38 = vmul.f32 %v2851_v35, %v2032_v28 }
  0x96   : > { %v816_v39 = vmax.f32 %v688_v30, 0.0  ;;  %v690_v40 = vadd.f32 %v2860_v43, %v555_v31  ;;  %v2036_v0 = vunpack.c.h.bf16 %v2428_v20  ;;  %v557_v41 = vmul.f32 %v2851_v35, %v2035_v32 }
  0x97   : > { %2487 = vst [vmem:[%s2588_s25 + $0x1c0] sm:$0xff] %v2332_v34   ;;  %v2337_v44 = vpack.c.bf16 %v815_v36, %v814_v29  ;;  %v817_v45 = vmax.f32 %v689_v37, 0.0  ;;  %v691_v46 = vadd.f32 %v2860_v43, %v556_v38  ;;  %v2039_v47 = vunpack.c.l.bf16 %v2429_v33 }
  0x98   : > { %v818_v48 = vmax.f32 %v690_v40, 0.0  ;;  %v558_v49 = vmul.f32 %v2851_v35, %v2036_v0  ;;  %v692_v9 = vadd.f32 %v2860_v43, %v557_v41  ;;  %v2040_v50 = vunpack.c.h.bf16 %v2429_v33 }
  0x99   : > { %2488 = vst [vmem:[%s2588_s25 + $0x1c8] sm:$0xff] %v2337_v44   ;;  %v2342_v52 = vpack.c.bf16 %v817_v45, %v816_v39  ;;  %v819_v53 = vmax.f32 %v691_v46, 0.0  ;;  %v559_v54 = vmul.f32 %v2851_v35, %v2039_v47  ;;  %v2043_v55 = vunpack.c.l.bf16 %v2430_v42 }
  0x9a   : > { %v693_v56 = vadd.f32 %v2860_v43, %v558_v49  ;;  %v820_v57 = vmax.f32 %v692_v9, 0.0  ;;  %v560_v58 = vmul.f32 %v2851_v35, %v2040_v50  ;;  %v2044_v59 = vunpack.c.h.bf16 %v2430_v42 }
  0x9b   : > { %2489 = vst [vmem:[%s2588_s25 + $0x1d0] sm:$0xff] %v2342_v52   ;;  %v2347_v60 = vpack.c.bf16 %v819_v53, %v818_v48  ;;  %v694_v61 = vadd.f32 %v2860_v43, %v559_v54  ;;  %v561_v62 = vmul.f32 %v2851_v35, %v2043_v55  ;;  %v2047_v63 = vunpack.c.l.bf16 %v2431_v51 }
  0x9c   : > { %v821_v1 = vmax.f32 %v693_v56, 0.0  ;;  %v695_v2 = vadd.f32 %v2860_v43, %v560_v58  ;;  %v562_v3 = vmul.f32 %v2851_v35, %v2044_v59  ;;  %v2048_v4 = vunpack.c.h.bf16 %v2431_v51 }
  0x9d   : > { %2490 = vst [vmem:[%s2588_s25 + $0x1d8] sm:$0xff] %v2347_v60   ;;  %v822_v5 = vmax.f32 %v694_v61, 0.0  ;;  %v696_v6 = vadd.f32 %v2860_v43, %v561_v62  ;;  %v563_v7 = vmul.f32 %v2851_v35, %v2047_v63 }
  0x9e   : > { %v2352_v8 = vpack.c.bf16 %v821_v1, %v820_v57  ;;  %v823_v10 = vmax.f32 %v695_v2, 0.0  ;;  %v697_v11 = vadd.f32 %v2860_v43, %v562_v3  ;;  %v564_v12 = vmul.f32 %v2851_v35, %v2048_v4 }
  0x9f   : > { %v824_v13 = vmax.f32 %v696_v6, 0.0  ;;  %v698_v14 = vadd.f32 %v2860_v43, %v563_v7 }
  0xa0   : > { %2491 = vst [vmem:[%s2588_s25 + $0x1e0] sm:$0xff] %v2352_v8   ;;  %v2357_v15 = vpack.c.bf16 %v823_v10, %v822_v5  ;;  %v825_v16 = vmax.f32 %v697_v11, 0.0  ;;  %v699_v17 = vadd.f32 %v2860_v43, %v564_v12 }
  0xa1   : > { %v826_v18 = vmax.f32 %v698_v14, 0.0 }
  0xa2   : > { %2492 = vst [vmem:[%s2588_s25 + $0x1e8] sm:$0xff] %v2357_v15   ;;  %v2362_v19 = vpack.c.bf16 %v825_v16, %v824_v13  ;;  %v827_v20 = vmax.f32 %v699_v17, 0.0 }
  0xa4   : > { %2493 = vst [vmem:[%s2588_s25 + $0x1f0] sm:$0xff] %v2362_v19   ;;  %v2367_v21 = vpack.c.bf16 %v827_v20, %v826_v18 }
  0xa6   : > { %2494 = vst [vmem:[%s2588_s25 + $0x1f8] sm:$0xff] %v2367_v21  }
  0xa7 PF: > { %s13_s12 = sadd.s32 1, %s2511_s12  }
  0xa8   : > { %p10_p4 = scmp.ge.s32.totalorder %s13_s12, 4  }
  0xaa   :  { %12 = sbr.rel (!%p10_p4) target bundleno = 1 (0x1), region = 62 }

// kernel: generator_forward.17
= control target key start
LH: loop header
LB: loop body
LE: loop exit
PB: predicated region body
PF: predicated region fallthrough
CT: control target
= control target key end

     0   :  { %s993_s9 = smov 0   ;;  %s995_s10 = smov 0   ;;  %s1119_s0 = inlined_call_operand.vmem [shape: bf16[4,2048,32], index: 0, kind: input, shape index: {}]   ;;  %s1120_s1 = inlined_call_operand.vmem [shape: bf16[4,32,128], index: 1, kind: input, shape index: {}]   ;;  %s1121_s2 = inlined_call_operand.vmem [shape: f32[4,2048,128], index: 2, kind: output, shape index: {}]  }
   0x1   :  { %s997_s11 = smov 0   ;;  %s999_s12 = smov 0  }
   0x2   :  { %s1001_s13 = smov 0  }
   0x3 LB: > { %s21_s14 = sadd.s32 1, %s968_s11  ;;  %s24_s15 = sadd.s32 1, %s972_s12  ;;  %s976_s13 = sphi %s1001_s13, %s12_s13   ;;  %s972_s12 = sphi %s999_s12, %s1125_s12   ;;  %s968_s11 = sphi %s997_s11, %s1124_s11   ;;  %s964_s10 = sphi %s995_s10, %s1123_s10   ;;  %s960_s9 = sphi %s993_s9, %s1122_s9  }
   0x4   : > { %p22_p0 = scmp.ge.s32.totalorder %s21_s14, 8  ;;  %p712_p1 = scmp.ge.s32.totalorder %s976_s13, 1 }
   0x5   : > { %p143_p2 = scmp.lt.s32.totalorder %s976_s13, 33 }
   0x6   : > { %s1127_s14 = smov (%p22_p0, %s21_s14), 0  ;;  %s1129_s15 = smov (!%p22_p0, %s24_s15), %s972_s12 }
   0x7   : > { %p144_p3 = pnand %p712_p1, %p143_p2  ;;  %p26_p4 = scmp.ge.s32.totalorder %s1129_s15, 4 }
   0x8   : > { %s713_s16 = sshll.u32 (!%p144_p3), %s960_s9, 5  ;;  %p179_p5 = scmp.lt.s32.totalorder (!%p144_p3), %s964_s10, 3  ;;  %vm332_vm0 = vcmask (!%p144_p3), 261120  }
   0x9   : > { %s1131_s15 = smov (%p26_p4, %s1129_s15), 0  ;;  %147 = sbr.rel (%p144_p3) target bundleno = 286 (0x11e), region = 28 }
   0xa   : > { %p181_p6 = scmp.lt.s32.totalorder (!%p144_p3), %s713_s16, 255 }
  0x10   : > { %s1133_s10 = smov (!%p179_p5, %s964_s10), 3  ;;  %s1135_s16 = smov (!%p181_p6, %s713_s16), 255 }
  0x11   : > { %s714_s17 = sshll.u32 %s1133_s10, 8  ;;  %s757_s18 = sshll.u32 %s1133_s10, 4 }
  0x12   : > { %s1023_s19 = sadd.s32 %s714_s17, %s1135_s16  ;;  %s192_s22 = scalar_lea.vmem %s1120_s1, %s757_s18 }
  0x13   : > { %s715_s23 = sshll.u32 %s1023_s19, 2  ;;  %v856_v0 = vld [vmem:[%s192_s22] sm:$0xff]   ;;  %v857_v1 = vld [vmem:[%s192_s22 + $0x8] sm:$0xff]   ;;  %s720_s27 = sshll.u32 %s1023_s19, 3 }
  0x14   : > { %s1032_s26 = scalar_lea.vmem %s1119_s0, %s715_s23  ;;  %776 = vmatprep.subr.bf16.mxu0 %v856_v0  ;;  %812 = vmatprep.subr.bf16.mxu1 %v856_v0  ;;  %s1070_s30 = scalar_lea.vmem %s1121_s2, %s720_s27 }
  0x15   : > { %v858_v2 = vld [vmem:[%s1032_s26] sm:$0xff]   ;;  %777 = vmatpush3.bf16.msra.mxu0 %v856_v0  ;;  %814 = vmatpush3.bf16.msra.mxu1 %v856_v0  ;;  %v860_v4 = vld [vmem:[%s1032_s26 + $0x8] sm:$0xff]   ;;  %v862_v6 = vld [vmem:[%s1032_s26 + $0x10] sm:$0xff]  }
  0x16   : > { %v859_v3 = vld [vmem:[%s1032_s26 + $0x40] sm:$0xff]   ;;  %778 = vmatprep.subr.bf16.mxu0 %v857_v1  ;;  %813 = vmatprep.subr.bf16.mxu1 %v857_v1  ;;  %v861_v5 = vld [vmem:[%s1032_s26 + $0x48] sm:$0xff]   ;;  %v863_v7 = vld [vmem:[%s1032_s26 + $0x50] sm:$0xff]  }
  0x17   : > { %780 = vmatprep.mubr.msk.bf16.mxu0 %vm332_vm0, %v858_v2  ;;  %796 = vmatprep.mubr.msk.bf16.mxu1 %vm332_vm0, %v859_v3  ;;  %v864_v8 = vld [vmem:[%s1032_s26 + $0x18] sm:$0xff]   ;;  %v866_v10 = vld [vmem:[%s1032_s26 + $0x20] sm:$0xff]   ;;  %v868_v12 = vld [vmem:[%s1032_s26 + $0x28] sm:$0xff]  }
  0x18   : > { %v865_v9 = vld [vmem:[%s1032_s26 + $0x58] sm:$0xff]   ;;  %v867_v11 = vld [vmem:[%s1032_s26 + $0x60] sm:$0xff]   ;;  %v869_v13 = vld [vmem:[%s1032_s26 + $0x68] sm:$0xff]  }
  0x19   : > { %779 = vmatpush3.bf16.msra.mxu0 %v857_v1  ;;  %815 = vmatpush3.bf16.msra.mxu1 %v857_v1  ;;  %v870_v14 = vld [vmem:[%s1032_s26 + $0x30] sm:$0xff]   ;;  %v872_v16 = vld [vmem:[%s1032_s26 + $0x38] sm:$0xff]  }
  0x1a   : > { %v871_v15 = vld [vmem:[%s1032_s26 + $0x70] sm:$0xff]   ;;  %v873_v17 = vld [vmem:[%s1032_s26 + $0x78] sm:$0xff]  }
  0x1c   : > { %781 = vmatmul.mubr.msk.bf16.vlgmr.msra.gmra.mrb[0].mxu0 %vm332_vm0, %v860_v4  ;;  %797 = vmatmul.mubr.msk.bf16.vlgmr.msra.gmra.mrb[0].mxu1 %vm332_vm0, %v861_v5 }
  0x1d   : > { %784 = vmatprep.mubr.msk.bf16.mxu0 %vm332_vm0, %v862_v6  ;;  %800 = vmatprep.mubr.msk.bf16.mxu1 %vm332_vm0, %v863_v7 }
  0x24   : > { %785 = vmatmul.mubr.msk.bf16.gmra.mrb[4].mxu0 %vm332_vm0, %v864_v8  ;;  %801 = vmatmul.mubr.msk.bf16.gmra.mrb[4].mxu1 %vm332_vm0, %v865_v9 }
  0x25   : > { %788 = vmatprep.mubr.msk.bf16.mxu0 %vm332_vm0, %v866_v10  ;;  %804 = vmatprep.mubr.msk.bf16.mxu1 %vm332_vm0, %v867_v11 }
  0x2c   : > { %789 = vmatmul.mubr.msk.bf16.gmra.mrb[8].mxu0 %vm332_vm0, %v868_v12  ;;  %805 = vmatmul.mubr.msk.bf16.gmra.mrb[8].mxu1 %vm332_vm0, %v869_v13 }
  0x2d   : > { %792 = vmatprep.mubr.msk.bf16.mxu0 %vm332_vm0, %v870_v14  ;;  %808 = vmatprep.mubr.msk.bf16.mxu1 %vm332_vm0, %v871_v15 }
  0x34   : > { %793 = vmatmul.mubr.msk.bf16.gmra.mrb[12].mxu0 %vm332_vm0, %v872_v16  ;;  %809 = vmatmul.mubr.msk.bf16.gmra.mrb[12].mxu1 %vm332_vm0, %v873_v17 }
  0xef   : > { %v782_v18 = vpop.f32.mrb[0].mxu0  ;;  %v798_v19 = vpop.f32.mrb[0].mxu1 }
  0xf0   : > { %874 = vtanh.f32 %v782_v18  ;;  %v415_v20 = vpop.f32.mrb[1].mxu0  ;;  %v479_v21 = vpop.f32.mrb[1].mxu1 }
  0xf1   : > { %876 = vtanh.f32 %v798_v19  ;;  %v783_v22 = vpop.f32.mrb[2].mxu0  ;;  %v799_v23 = vpop.f32.mrb[2].mxu1 }
  0xf2   : > { %878 = vtanh.f32 %v415_v20  ;;  %v418_v24 = vpop.f32.mrb[3].mxu0  ;;  %v482_v25 = vpop.f32.mrb[3].mxu1 }
  0xf3   : > { %880 = vtanh.f32 %v479_v21 }
  0xf4   : > { %882 = vtanh.f32 %v783_v22 }
  0xf5   : > { %884 = vtanh.f32 %v799_v23 }
  0xf6   : > { %886 = vtanh.f32 %v418_v24 }
  0xf7   : > { %888 = vtanh.f32 %v482_v25  ;;  %v786_v26 = vpop.f32.mrb[4].mxu0  ;;  %v802_v27 = vpop.f32.mrb[4].mxu1 }
  0xf8   : > { %890 = vtanh.f32 %v786_v26  ;;  %v431_v28 = vpop.f32.mrb[5].mxu0  ;;  %v495_v29 = vpop.f32.mrb[5].mxu1 }
  0xf9   : > { %892 = vtanh.f32 %v802_v27  ;;  %v787_v30 = vpop.f32.mrb[6].mxu0  ;;  %v803_v31 = vpop.f32.mrb[6].mxu1 }
  0xfa   : > { %v875_v32 = vpop.eup %874  ;;  %894 = vtanh.f32 %v431_v28  ;;  %v434_v33 = vpop.f32.mrb[7].mxu0 }
  0xfb   : > { %v498_v34 = vpop.f32.mrb[7].mxu1  ;;  %v877_v35 = vpop.eup %876  ;;  %576 = vst [vmem:[%s1070_s30 + $0x10] sm:$0xff] %v875_v32  ;;  %896 = vtanh.f32 %v495_v29 }
  0xfc   : > { %v879_v36 = vpop.eup %878  ;;  %592 = vst [vmem:[%s1070_s30 + $0x90] sm:$0xff] %v877_v35  ;;  %898 = vtanh.f32 %v787_v30 }
  0xfd   : > { %v881_v37 = vpop.eup %880  ;;  %574 = vst [vmem:[%s1070_s30] sm:$0xff] %v879_v36  ;;  %900 = vtanh.f32 %v803_v31 }
  0xfe   : > { %v883_v38 = vpop.eup %882  ;;  %590 = vst [vmem:[%s1070_s30 + $0x80] sm:$0xff] %v881_v37  ;;  %902 = vtanh.f32 %v434_v33 }
  0xff   : > { %v885_v39 = vpop.eup %884  ;;  %577 = vst [vmem:[%s1070_s30 + $0x18] sm:$0xff] %v883_v38  ;;  %904 = vtanh.f32 %v498_v34  ;;  %v790_v40 = vpop.f32.mrb[8].mxu0 }
 0x100   : > { %v806_v41 = vpop.f32.mrb[8].mxu1  ;;  %v887_v42 = vpop.eup %886  ;;  %593 = vst [vmem:[%s1070_s30 + $0x98] sm:$0xff] %v885_v39  ;;  %906 = vtanh.f32 %v790_v40 }
 0x101   : > { %v447_v43 = vpop.f32.mrb[9].mxu0  ;;  %v511_v44 = vpop.f32.mrb[9].mxu1  ;;  %575 = vst [vmem:[%s1070_s30 + $0x8] sm:$0xff] %v887_v42  ;;  %908 = vtanh.f32 %v806_v41 }
 0x102   : > { %v889_v45 = vpop.eup %888  ;;  %v791_v46 = vpop.f32.mrb[10].mxu0  ;;  %910 = vtanh.f32 %v447_v43 }
 0x103   : > { %v807_v47 = vpop.f32.mrb[10].mxu1  ;;  %v891_v48 = vpop.eup %890  ;;  %591 = vst [vmem:[%s1070_s30 + $0x88] sm:$0xff] %v889_v45  ;;  %912 = vtanh.f32 %v511_v44 }
 0x104   : > { %v450_v49 = vpop.f32.mrb[11].mxu0  ;;  %v514_v50 = vpop.f32.mrb[11].mxu1  ;;  %580 = vst [vmem:[%s1070_s30 + $0x30] sm:$0xff] %v891_v48  ;;  %914 = vtanh.f32 %v791_v46 }
 0x105   : > { %v893_v51 = vpop.eup %892  ;;  %916 = vtanh.f32 %v807_v47 }
 0x106   : > { %v895_v52 = vpop.eup %894  ;;  %596 = vst [vmem:[%s1070_s30 + $0xb0] sm:$0xff] %v893_v51  ;;  %918 = vtanh.f32 %v450_v49 }
 0x107   : > { %v897_v53 = vpop.eup %896  ;;  %578 = vst [vmem:[%s1070_s30 + $0x20] sm:$0xff] %v895_v52  ;;  %920 = vtanh.f32 %v514_v50  ;;  %v794_v56 = vpop.f32.mrb[12].mxu0 }
 0x108   : > { %v899_v54 = vpop.eup %898  ;;  %594 = vst [vmem:[%s1070_s30 + $0xa0] sm:$0xff] %v897_v53  ;;  %v810_v57 = vpop.f32.mrb[12].mxu1  ;;  %922 = vtanh.f32 %v794_v56 }
 0x109   : > { %v901_v55 = vpop.eup %900  ;;  %581 = vst [vmem:[%s1070_s30 + $0x38] sm:$0xff] %v899_v54  ;;  %v463_v59 = vpop.f32.mrb[13].mxu0  ;;  %924 = vtanh.f32 %v810_v57 }
 0x10a   : > { %v903_v58 = vpop.eup %902  ;;  %597 = vst [vmem:[%s1070_s30 + $0xb8] sm:$0xff] %v901_v55  ;;  %v527_v60 = vpop.f32.mrb[13].mxu1  ;;  %926 = vtanh.f32 %v463_v59 }
 0x10b   : > { %v905_v61 = vpop.eup %904  ;;  %579 = vst [vmem:[%s1070_s30 + $0x28] sm:$0xff] %v903_v58  ;;  %v795_v62 = vpop.f32.mrb[14].mxu0  ;;  %928 = vtanh.f32 %v527_v60 }
 0x10c   : > { %v811_v63 = vpop.f32.mrb[14].mxu1  ;;  %v907_v0 = vpop.eup %906  ;;  %595 = vst [vmem:[%s1070_s30 + $0xa8] sm:$0xff] %v905_v61  ;;  %930 = vtanh.f32 %v795_v62 }
 0x10d   : > { %v466_v1 = vpop.f32.mrb[15].mxu0  ;;  %v530_v2 = vpop.f32.mrb[15].mxu1  ;;  %584 = vst [vmem:[%s1070_s30 + $0x50] sm:$0xff] %v907_v0  ;;  %932 = vtanh.f32 %v811_v63 }
 0x10e   : > { %v909_v3 = vpop.eup %908  ;;  %934 = vtanh.f32 %v466_v1 }
 0x10f   : > { %v911_v4 = vpop.eup %910  ;;  %600 = vst [vmem:[%s1070_s30 + $0xd0] sm:$0xff] %v909_v3  ;;  %936 = vtanh.f32 %v530_v2 }
 0x110   : > { %v913_v5 = vpop.eup %912  ;;  %582 = vst [vmem:[%s1070_s30 + $0x40] sm:$0xff] %v911_v4 }
 0x111   : > { %v915_v6 = vpop.eup %914  ;;  %598 = vst [vmem:[%s1070_s30 + $0xc0] sm:$0xff] %v913_v5 }
 0x112   : > { %v917_v7 = vpop.eup %916  ;;  %585 = vst [vmem:[%s1070_s30 + $0x58] sm:$0xff] %v915_v6 }
 0x113   : > { %v919_v8 = vpop.eup %918  ;;  %601 = vst [vmem:[%s1070_s30 + $0xd8] sm:$0xff] %v917_v7 }
 0x114   : > { %v921_v9 = vpop.eup %920  ;;  %583 = vst [vmem:[%s1070_s30 + $0x48] sm:$0xff] %v919_v8 }
 0x115   : > { %v923_v10 = vpop.eup %922  ;;  %599 = vst [vmem:[%s1070_s30 + $0xc8] sm:$0xff] %v921_v9 }
 0x116   : > { %v925_v11 = vpop.eup %924  ;;  %588 = vst [vmem:[%s1070_s30 + $0x70] sm:$0xff] %v923_v10 }
 0x117   : > { %v927_v12 = vpop.eup %926  ;;  %604 = vst [vmem:[%s1070_s30 + $0xf0] sm:$0xff] %v925_v11 }
 0x118   : > { %v929_v13 = vpop.eup %928  ;;  %586 = vst [vmem:[%s1070_s30 + $0x60] sm:$0xff] %v927_v12 }
 0x119   : > { %v931_v14 = vpop.eup %930  ;;  %602 = vst [vmem:[%s1070_s30 + $0xe0] sm:$0xff] %v929_v13 }
 0x11a   : > { %v933_v15 = vpop.eup %932  ;;  %589 = vst [vmem:[%s1070_s30 + $0x78] sm:$0xff] %v931_v14 }
 0x11b   : > { %v935_v16 = vpop.eup %934  ;;  %605 = vst [vmem:[%s1070_s30 + $0xf8] sm:$0xff] %v933_v15 }
 0x11c   : > { %v937_v17 = vpop.eup %936  ;;  %587 = vst [vmem:[%s1070_s30 + $0x68] sm:$0xff] %v935_v16 }
 0x11d   : > { %603 = vst [vmem:[%s1070_s30 + $0xe8] sm:$0xff] %v937_v17 }
 0x11e PF: > { %s12_s13 = sadd.s32 1, %s976_s13   ;;  %s1122_s9 = smov %s968_s11 }
 0x11f   : > { %p9_p7 = scmp.ge.s32.totalorder %s12_s13, 34   ;;  %s1123_s10 = smov %s972_s12 }
 0x120   : > { %s1124_s11 = smov %s1127_s14  ;;  %s1125_s12 = smov %s1131_s15 }
 0x121   :  { %11 = sbr.rel (!%p9_p7) target bundleno = 3 (0x3), region = 61 }

</bundles_post_ra>
